<compile_context>
chip_gen: v6e
topology: v6e:2x2x1
jax: 0.10.0
libtpu: 0.0.40
codegen_flags: <defaults>
</compile_context>

<pallas_src>
import functools

import numpy as np
import jax
import jax.numpy as jnp
from jax import lax
from jax.experimental import pallas as pl
from jax.experimental.pallas import tpu as pltpu

_GN_EPS = 1e-5  # PyTorch GroupNorm default eps


def _round_up(x, m):
    return ((x + m - 1) // m) * m


def _cdiv(a, b):
    return (a + b - 1) // b


# ---------------------------------------------------------------------------
# Pass 1: conv as K^3 shifted GEMM taps + streamed per-channel sum / sum^2
# ---------------------------------------------------------------------------
def _conv_stats_kernel(xa_ref, xb_ref, w_ref, mask_ref, y_ref, stats_ref,
                       win_ref, *, shifts, tq):
    # xa_ref/xb_ref: (1, CinP, tq)   current / next flat-input tile (halo)
    # w_ref        : (T, Cout, CinP) one (Cout, CinP) matrix per conv tap
    # mask_ref     : (1, tq)         1.0 at valid output positions, else 0.0
    # y_ref        : (1, Cout, tq)   conv output tile (f32, padded-grid layout)
    # stats_ref    : (1, Cout, 2)    [sum, sum_sq]; VMEM-resident across S tiles
    # win_ref      : (CinP, 2*tq)    scratch: stitched current+next tile
    qi = pl.program_id(1)

    @pl.when(qi == 0)
    def _():
        stats_ref[...] = jnp.zeros_like(stats_ref)

    # Stitch the two consecutive tiles so every shifted tap window is a static
    # slice of VMEM (no HBM im2col, no dynamic lane offsets).
    win_ref[:, :tq] = xa_ref[0]
    win_ref[:, tq:] = xb_ref[0]
    win = win_ref[...]

    cout = y_ref.shape[1]
    acc = jnp.zeros((cout, tq), jnp.float32)
    for t, s in enumerate(shifts):               # K^3 static taps, unrolled
        acc = acc + jnp.dot(w_ref[t], win[:, s:s + tq],
                            preferred_element_type=jnp.float32)

    y_ref[0] = acc

    # Streamed GroupNorm statistics (num_groups == Cout -> per-channel stats).
    m = mask_ref[...]                            # (1, tq)
    am = acc * m
    stats_ref[0, :, 0:1] += jnp.sum(am, axis=-1, keepdims=True)
    stats_ref[0, :, 1:2] += jnp.sum(am * acc, axis=-1, keepdims=True)


# ---------------------------------------------------------------------------
# Pass 2: normalise + affine + ReLU (lane-dense element-wise)
# ---------------------------------------------------------------------------
def _norm_relu_kernel(y_ref, stats_ref, params_ref, o_ref, *, inv_count, eps):
    st = stats_ref[0]                            # (Cout, 2)
    mean = st[:, 0:1] * inv_count
    var = st[:, 1:2] * inv_count - mean * mean
    gamma = params_ref[:, 0:1]
    beta = params_ref[:, 1:2]
    yhat = (y_ref[0] - mean) * lax.rsqrt(var + eps)
    o_ref[0] = jnp.maximum(yhat * gamma + beta, 0.0).astype(o_ref.dtype)


_PAD_MODE = {'reflect': 'reflect', 'replicate': 'edge',
             'circular': 'wrap', 'zeros': 'constant'}


def deconv_block_forward(x, w, b, gamma, beta, *, scale_factor=2, padding=0,
                         stride=1, padding_mode='reflect',
                         compute_dtype=jnp.bfloat16, tile_q=1024, eps=_GN_EPS):
    """Deconv_block forward. x: (N, Cin, D, H, W); w: (Cout, Cin, KD, KH, KW).

    Returns NCDHW.  The conv bias `b` is accepted for API parity but is not
    needed: per-channel GroupNorm (num_groups == out_channels) exactly cancels
    a per-channel constant bias.
    """
    # TODO(synk): stride != 1, non-integer Upsample scale factors,
    # norm_type='batch' and num_groups != out_channels are not implemented.
    if stride != 1:
        raise NotImplementedError("stride != 1 not supported")
    del b  # folded away by per-channel GroupNorm

    N, Cin, D, H, W = x.shape
    Cout, _, KD, KH, KW = w.shape

    # ---- Upsample (nearest, integer scale factors) --------------------------
    if isinstance(scale_factor, (list, tuple)):
        sf = tuple(int(s) for s in scale_factor)
    else:
        sf = (int(scale_factor),) * 3
    x_up = x
    for ax, s in zip((2, 3, 4), sf):
        if s != 1:
            x_up = jnp.repeat(x_up, s, axis=ax)
    Du, Hu, Wu = D * sf[0], H * sf[1], W * sf[2]

    # ---- Padding (PyTorch Conv3d padding_mode semantics) --------------------
    p = int(padding)
    if p > 0:
        x_pad = jnp.pad(x_up, ((0, 0), (0, 0), (p, p), (p, p), (p, p)),
                        mode=_PAD_MODE[padding_mode])
    else:
        x_pad = x_up
    Dp, Hp, Wp = Du + 2 * p, Hu + 2 * p, Wu + 2 * p
    Do, Ho, Wo = Dp - KD + 1, Hp - KH + 1, Wp - KW + 1
    HpWp = Hp * Wp

    # ---- Flatten padded grid, derive S tiling --------------------------------
    Lq = Do * HpWp                                       # flat range holding outputs
    smax = (KD - 1) * HpWp + (KH - 1) * Wp + (KW - 1)    # largest tap shift
    TQ = _round_up(max(int(tile_q), smax, 128), 128)     # lane-dense S tile
    nqt = _cdiv(Lq, TQ)
    Lq_pad = nqt * TQ
    Lx_total = (nqt + 1) * TQ                            # current tile + halo tile

    CinP = _round_up(Cin, 8)                             # pad contraction to sublanes
    x_pad = jnp.pad(x_pad, ((0, 0), (0, CinP - Cin), (0, 0), (0, 0), (0, 0)))
    x_lin = x_pad.reshape(N, CinP, Dp * HpWp)
    x_lin = jnp.pad(x_lin, ((0, 0), (0, 0), (0, Lx_total - Dp * HpWp)))
    x_lin = x_lin.astype(compute_dtype)

    T = KD * KH * KW
    w_taps = jnp.transpose(w, (2, 3, 4, 0, 1)).reshape(T, Cout, Cin)
    w_taps = jnp.pad(w_taps, ((0, 0), (0, 0), (0, CinP - Cin))).astype(compute_dtype)
    shifts = tuple(kd * HpWp + kh * Wp + kw
                   for kd in range(KD) for kh in range(KH) for kw in range(KW))

    # Valid-output mask on the padded grid (junk positions excluded from GN).
    q = jnp.arange(Lq_pad, dtype=jnp.int32)
    valid = (q < Lq) & ((q % HpWp) // Wp < Ho) & (q % Wp < Wo)
    mask = valid.astype(jnp.float32).reshape(1, Lq_pad)
    count = float(Do * Ho * Wo)

    params = jnp.stack([gamma.astype(jnp.float32),
                        beta.astype(jnp.float32)], axis=-1)          # (Cout, 2)

    vmem_cap = 48 * 1024 * 1024  # safe on v5e/v6e (128 MiB) and v7x (64 MiB)

    conv_out, stats = pl.pallas_call(
        functools.partial(_conv_stats_kernel, shifts=shifts, tq=TQ),
        out_shape=(jax.ShapeDtypeStruct((N, Cout, Lq_pad), jnp.float32),
                   jax.ShapeDtypeStruct((N, Cout, 2), jnp.float32)),
        grid_spec=pltpu.PrefetchScalarGridSpec(
            num_scalar_prefetch=0,
            grid=(N, nqt),
            in_specs=[
                pl.BlockSpec((1, CinP, TQ), lambda n, qi: (n, 0, qi)),      # current
                pl.BlockSpec((1, CinP, TQ), lambda n, qi: (n, 0, qi + 1)),  # halo
                pl.BlockSpec((T, Cout, CinP), lambda n, qi: (0, 0, 0)),     # weights
                pl.BlockSpec((1, TQ), lambda n, qi: (0, qi)),               # mask
            ],
            out_specs=[
                pl.BlockSpec((1, Cout, TQ), lambda n, qi: (n, 0, qi)),      # conv y
                pl.BlockSpec((1, Cout, 2), lambda n, qi: (n, 0, 0)),        # stats
            ],
            scratch_shapes=[pltpu.VMEM((CinP, 2 * TQ), compute_dtype)],
        ),
        compiler_params=pltpu.CompilerParams(
            dimension_semantics=("parallel", "arbitrary"),
            vmem_limit_bytes=vmem_cap),
    )(x_lin, x_lin, w_taps, mask)

    out_flat = pl.pallas_call(
        functools.partial(_norm_relu_kernel, inv_count=1.0 / count, eps=eps),
        out_shape=jax.ShapeDtypeStruct((N, Cout, Lq_pad), x.dtype),
        grid_spec=pltpu.PrefetchScalarGridSpec(
            num_scalar_prefetch=0,
            grid=(N, nqt),
            in_specs=[
                pl.BlockSpec((1, Cout, TQ), lambda n, qi: (n, 0, qi)),
                pl.BlockSpec((1, Cout, 2), lambda n, qi: (n, 0, 0)),
                pl.BlockSpec((Cout, 2), lambda n, qi: (0, 0)),
            ],
            out_specs=pl.BlockSpec((1, Cout, TQ), lambda n, qi: (n, 0, qi)),
        ),
        compiler_params=pltpu.CompilerParams(
            dimension_semantics=("parallel", "parallel"),
            vmem_limit_bytes=vmem_cap),
    )(conv_out, stats, params)

    # Compact padded-grid layout -> NCDHW (already channels-first; just slice).
    out = out_flat[:, :, :Lq].reshape(N, Cout, Do, Hp, Wp)[:, :, :, :Ho, :Wo]
    return out


def deconv_block_reference(x, w, b, gamma, beta, *, scale_factor=2, padding=0,
                           padding_mode='reflect', eps=_GN_EPS):
    """Pure-JAX reference (no Pallas) matching the PyTorch module."""
    if isinstance(scale_factor, (list, tuple)):
        sf = tuple(int(s) for s in scale_factor)
    else:
        sf = (int(scale_factor),) * 3
    x_up = x
    for ax, s in zip((2, 3, 4), sf):
        if s != 1:
            x_up = jnp.repeat(x_up, s, axis=ax)
    p = int(padding)
    if p > 0:
        x_up = jnp.pad(x_up, ((0, 0), (0, 0), (p, p), (p, p), (p, p)),
                       mode=_PAD_MODE[padding_mode])
    dn = lax.conv_dimension_numbers(x_up.shape, w.shape,
                                    ('NCDHW', 'OIDHW', 'NCDHW'))
    y = lax.conv_general_dilated(x_up, w, window_strides=(1, 1, 1),
                                 padding='VALID', dimension_numbers=dn,
                                 precision=lax.Precision.HIGHEST)
    y = y + b[None, :, None, None, None]
    mean = jnp.mean(y, axis=(2, 3, 4), keepdims=True)
    var = jnp.mean((y - mean) ** 2, axis=(2, 3, 4), keepdims=True)
    yhat = (y - mean) * lax.rsqrt(var + eps)
    y = yhat * gamma[None, :, None, None, None] + beta[None, :, None, None, None]
    return jnp.maximum(y, 0.0)


if __name__ == "__main__":
    # Small shapes consistent with the module: NCDHW input, 2x nearest upsample,
    # 3x3x3 conv with reflect padding=1, GroupNorm(groups=Cout), ReLU.
    N, Cin, Cout, D, H, W = 2, 4, 8, 8, 8, 8
    SF, K, PAD = 2, 3, 1

    key = jax.random.PRNGKey(0)
    kx, kw, kb, kg, kbe = jax.random.split(key, 5)
    x = jax.random.normal(kx, (N, Cin, D, H, W), dtype=jnp.float32)
    w = jax.random.normal(kw, (Cout, Cin, K, K, K), dtype=jnp.float32)
    w = w * (1.0 / np.sqrt(Cin * K * K * K))
    b = 0.1 * jax.random.normal(kb, (Cout,), dtype=jnp.float32)
    gamma = 1.0 + 0.1 * jax.random.normal(kg, (Cout,), dtype=jnp.float32)
    beta = 0.1 * jax.random.normal(kbe, (Cout,), dtype=jnp.float32)

    ref = jax.block_until_ready(
        deconv_block_reference(x, w, b, gamma, beta,
                               scale_factor=SF, padding=PAD,
                               padding_mode='reflect'))

    # f32 GEMM path (tight tolerance).
    out_f32 = jax.block_until_ready(
        deconv_block_forward(x, w, b, gamma, beta, scale_factor=SF,
                             padding=PAD, padding_mode='reflect',
                             compute_dtype=jnp.float32))
    np.testing.assert_allclose(np.asarray(out_f32), np.asarray(ref),
                               rtol=2e-3, atol=2e-3)

    # bf16 GEMM path (MXU fast path on v6e/v7x; looser tolerance for bf16 inputs).
    out_bf16 = jax.block_until_ready(
        deconv_block_forward(x, w, b, gamma, beta, scale_factor=SF,
                             padding=PAD, padding_mode='reflect',
                             compute_dtype=jnp.bfloat16))
    np.testing.assert_allclose(np.asarray(out_bf16), np.asarray(ref),
                               rtol=4e-2, atol=4e-2)

    print("KERNEL_OK")
</pallas_src>

<mosaic_0001>
module attributes {stable_mosaic.version = 11 : i64} {
  func.func @_conv_stats_kernel(%arg0: i32, %arg1: i32, %arg2: memref<1x8x1024xf32, #tpu.memory_space<vmem>>, %arg3: memref<1x8x1024xf32, #tpu.memory_space<vmem>>, %arg4: memref<27x8x8xf32, #tpu.memory_space<vmem>>, %arg5: memref<1x1024xf32, #tpu.memory_space<vmem>>, %arg6: memref<1x8x1024xf32, #tpu.memory_space<vmem>>, %arg7: memref<1x8x2xf32, #tpu.memory_space<vmem>>, %arg8: memref<8x2048xf32, #tpu.memory_space<vmem>>) attributes {dimension_semantics = [#tpu.dimension_semantics<parallel>, #tpu.dimension_semantics<arbitrary>], iteration_bounds = array<i64: 2, 6>, scalar_prefetch = 0 : i64, scratch_operands = 1 : i64, tpu.core_type = #tpu.core_type<tc>, window_params = [{transform_indices = @transform_0, window_bounds = array<i64: 1, 8, 1024>}, {transform_indices = @transform_1, window_bounds = array<i64: 1, 8, 1024>}, {pipeline_mode = #tpu.pipeline_mode<synchronous>, transform_indices = @transform_2, window_bounds = array<i64: 27, 8, 8>}, {transform_indices = @transform_3, window_bounds = array<i64: 1, 1024>}, {transform_indices = @transform_4, window_bounds = array<i64: 1, 8, 1024>}, {transform_indices = @transform_5, window_bounds = array<i64: 1, 8, 2>}]} {
    %c0_i32 = arith.constant 0 : i32
    %0 = arith.cmpi eq, %arg1, %c0_i32 : i32
    %1 = arith.extui %0 : i1 to i32
    %c0_i32_0 = arith.constant 0 : i32
    %2 = arith.cmpi ne, %1, %c0_i32_0 : i32
    scf.if %2 {
      %cst_112 = arith.constant 0.000000e+00 : f32
      %169 = vector.broadcast %cst_112 : f32 to vector<1x8x2xf32>
      %c0_113 = arith.constant 0 : index
      %c0_114 = arith.constant 0 : index
      %c0_115 = arith.constant 0 : index
      %170 = vector.load %arg7[%c0_113, %c0_114, %c0_115] : memref<1x8x2xf32, #tpu.memory_space<vmem>>, vector<1x8x2xf32>
      tpu.vector_store %arg7[%c0_113, %c0_114, %c0_115], %169 {strides = array<i32>} : memref<1x8x2xf32, #tpu.memory_space<vmem>>, vector<1x8x2xf32>,
    } else {
    }
    %c0 = arith.constant 0 : index
    %c0_1 = arith.constant 0 : index
    %c0_2 = arith.constant 0 : index
    %3 = vector.load %arg2[%c0, %c0_1, %c0_2] : memref<1x8x1024xf32, #tpu.memory_space<vmem>>, vector<1x8x1024xf32>
    %4 = vector.shape_cast %3 : vector<1x8x1024xf32> to vector<8x1024xf32>
    %c0_3 = arith.constant 0 : index
    %c0_4 = arith.constant 0 : index
    %5 = vector.load %arg8[%c0_3, %c0_4] : memref<8x2048xf32, #tpu.memory_space<vmem>>, vector<8x1024xf32>
    tpu.vector_store %arg8[%c0_3, %c0_4], %4 {strides = array<i32>} : memref<8x2048xf32, #tpu.memory_space<vmem>>, vector<8x1024xf32>,
    %c0_5 = arith.constant 0 : index
    %c0_6 = arith.constant 0 : index
    %c0_7 = arith.constant 0 : index
    %6 = vector.load %arg3[%c0_5, %c0_6, %c0_7] : memref<1x8x1024xf32, #tpu.memory_space<vmem>>, vector<1x8x1024xf32>
    %7 = vector.shape_cast %6 : vector<1x8x1024xf32> to vector<8x1024xf32>
    %c0_8 = arith.constant 0 : index
    %c1024 = arith.constant 1024 : index
    %8 = vector.load %arg8[%c0_8, %c1024] : memref<8x2048xf32, #tpu.memory_space<vmem>>, vector<8x1024xf32>
    tpu.vector_store %arg8[%c0_8, %c1024], %7 {strides = array<i32>} : memref<8x2048xf32, #tpu.memory_space<vmem>>, vector<8x1024xf32>,
    %c0_9 = arith.constant 0 : index
    %c0_10 = arith.constant 0 : index
    %9 = vector.load %arg8[%c0_9, %c0_10] : memref<8x2048xf32, #tpu.memory_space<vmem>>, vector<8x2048xf32>
    %cst = arith.constant 0.000000e+00 : f32
    %10 = vector.broadcast %cst : f32 to vector<8x1024xf32>
    %c0_11 = arith.constant 0 : index
    %c0_12 = arith.constant 0 : index
    %c0_13 = arith.constant 0 : index
    %11 = vector.load %arg4[%c0_11, %c0_12, %c0_13] : memref<27x8x8xf32, #tpu.memory_space<vmem>>, vector<1x8x8xf32>
    %12 = vector.shape_cast %11 : vector<1x8x8xf32> to vector<8x8xf32>
    %13 = vector.extract_strided_slice %9 {offsets = [0, 0], sizes = [8, 1024], strides = [1, 1]} : vector<8x2048xf32> to vector<8x1024xf32>
    %cst_14 = arith.constant dense<0.000000e+00> : vector<8x1024xf32>
    %14 = tpu.matmul %12, %13, %cst_14 {dimension_numbers = #tpu.dot_dimension_numbers<[1], [0], [0], [1], [0, 0, 1, 1], [], []>} : vector<8x8xf32>, vector<8x1024xf32>, vector<8x1024xf32> -> vector<8x1024xf32>
    %15 = arith.addf %10, %14 : vector<8x1024xf32>
    %c1 = arith.constant 1 : index
    %c0_15 = arith.constant 0 : index
    %c0_16 = arith.constant 0 : index
    %16 = vector.load %arg4[%c1, %c0_15, %c0_16] : memref<27x8x8xf32, #tpu.memory_space<vmem>>, vector<1x8x8xf32>
    %17 = vector.shape_cast %16 : vector<1x8x8xf32> to vector<8x8xf32>
    %18 = vector.extract_strided_slice %9 {offsets = [0, 1], sizes = [8, 1024], strides = [1, 1]} : vector<8x2048xf32> to vector<8x1024xf32>
    %cst_17 = arith.constant dense<0.000000e+00> : vector<8x1024xf32>
    %19 = tpu.matmul %17, %18, %cst_17 {dimension_numbers = #tpu.dot_dimension_numbers<[1], [0], [0], [1], [0, 0, 1, 1], [], []>} : vector<8x8xf32>, vector<8x1024xf32>, vector<8x1024xf32> -> vector<8x1024xf32>
    %20 = arith.addf %15, %19 : vector<8x1024xf32>
    %c2 = arith.constant 2 : index
    %c0_18 = arith.constant 0 : index
    %c0_19 = arith.constant 0 : index
    %21 = vector.load %arg4[%c2, %c0_18, %c0_19] : memref<27x8x8xf32, #tpu.memory_space<vmem>>, vector<1x8x8xf32>
    %22 = vector.shape_cast %21 : vector<1x8x8xf32> to vector<8x8xf32>
    %23 = vector.extract_strided_slice %9 {offsets = [0, 2], sizes = [8, 1024], strides = [1, 1]} : vector<8x2048xf32> to vector<8x1024xf32>
    %cst_20 = arith.constant dense<0.000000e+00> : vector<8x1024xf32>
    %24 = tpu.matmul %22, %23, %cst_20 {dimension_numbers = #tpu.dot_dimension_numbers<[1], [0], [0], [1], [0, 0, 1, 1], [], []>} : vector<8x8xf32>, vector<8x1024xf32>, vector<8x1024xf32> -> vector<8x1024xf32>
    %25 = arith.addf %20, %24 : vector<8x1024xf32>
    %c3 = arith.constant 3 : index
    %c0_21 = arith.constant 0 : index
    %c0_22 = arith.constant 0 : index
    %26 = vector.load %arg4[%c3, %c0_21, %c0_22] : memref<27x8x8xf32, #tpu.memory_space<vmem>>, vector<1x8x8xf32>
    %27 = vector.shape_cast %26 : vector<1x8x8xf32> to vector<8x8xf32>
    %28 = vector.extract_strided_slice %9 {offsets = [0, 18], sizes = [8, 1024], strides = [1, 1]} : vector<8x2048xf32> to vector<8x1024xf32>
    %cst_23 = arith.constant dense<0.000000e+00> : vector<8x1024xf32>
    %29 = tpu.matmul %27, %28, %cst_23 {dimension_numbers = #tpu.dot_dimension_numbers<[1], [0], [0], [1], [0, 0, 1, 1], [], []>} : vector<8x8xf32>, vector<8x1024xf32>, vector<8x1024xf32> -> vector<8x1024xf32>
    %30 = arith.addf %25, %29 : vector<8x1024xf32>
    %c4 = arith.constant 4 : index
    %c0_24 = arith.constant 0 : index
    %c0_25 = arith.constant 0 : index
    %31 = vector.load %arg4[%c4, %c0_24, %c0_25] : memref<27x8x8xf32, #tpu.memory_space<vmem>>, vector<1x8x8xf32>
    %32 = vector.shape_cast %31 : vector<1x8x8xf32> to vector<8x8xf32>
    %33 = vector.extract_strided_slice %9 {offsets = [0, 19], sizes = [8, 1024], strides = [1, 1]} : vector<8x2048xf32> to vector<8x1024xf32>
    %cst_26 = arith.constant dense<0.000000e+00> : vector<8x1024xf32>
    %34 = tpu.matmul %32, %33, %cst_26 {dimension_numbers = #tpu.dot_dimension_numbers<[1], [0], [0], [1], [0, 0, 1, 1], [], []>} : vector<8x8xf32>, vector<8x1024xf32>, vector<8x1024xf32> -> vector<8x1024xf32>
    %35 = arith.addf %30, %34 : vector<8x1024xf32>
    %c5 = arith.constant 5 : index
    %c0_27 = arith.constant 0 : index
    %c0_28 = arith.constant 0 : index
    %36 = vector.load %arg4[%c5, %c0_27, %c0_28] : memref<27x8x8xf32, #tpu.memory_space<vmem>>, vector<1x8x8xf32>
    %37 = vector.shape_cast %36 : vector<1x8x8xf32> to vector<8x8xf32>
    %38 = vector.extract_strided_slice %9 {offsets = [0, 20], sizes = [8, 1024], strides = [1, 1]} : vector<8x2048xf32> to vector<8x1024xf32>
    %cst_29 = arith.constant dense<0.000000e+00> : vector<8x1024xf32>
    %39 = tpu.matmul %37, %38, %cst_29 {dimension_numbers = #tpu.dot_dimension_numbers<[1], [0], [0], [1], [0, 0, 1, 1], [], []>} : vector<8x8xf32>, vector<8x1024xf32>, vector<8x1024xf32> -> vector<8x1024xf32>
    %40 = arith.addf %35, %39 : vector<8x1024xf32>
    %c6 = arith.constant 6 : index
    %c0_30 = arith.constant 0 : index
    %c0_31 = arith.constant 0 : index
    %41 = vector.load %arg4[%c6, %c0_30, %c0_31] : memref<27x8x8xf32, #tpu.memory_space<vmem>>, vector<1x8x8xf32>
    %42 = vector.shape_cast %41 : vector<1x8x8xf32> to vector<8x8xf32>
    %43 = vector.extract_strided_slice %9 {offsets = [0, 36], sizes = [8, 1024], strides = [1, 1]} : vector<8x2048xf32> to vector<8x1024xf32>
    %cst_32 = arith.constant dense<0.000000e+00> : vector<8x1024xf32>
    %44 = tpu.matmul %42, %43, %cst_32 {dimension_numbers = #tpu.dot_dimension_numbers<[1], [0], [0], [1], [0, 0, 1, 1], [], []>} : vector<8x8xf32>, vector<8x1024xf32>, vector<8x1024xf32> -> vector<8x1024xf32>
    %45 = arith.addf %40, %44 : vector<8x1024xf32>
    %c7 = arith.constant 7 : index
    %c0_33 = arith.constant 0 : index
    %c0_34 = arith.constant 0 : index
    %46 = vector.load %arg4[%c7, %c0_33, %c0_34] : memref<27x8x8xf32, #tpu.memory_space<vmem>>, vector<1x8x8xf32>
    %47 = vector.shape_cast %46 : vector<1x8x8xf32> to vector<8x8xf32>
    %48 = vector.extract_strided_slice %9 {offsets = [0, 37], sizes = [8, 1024], strides = [1, 1]} : vector<8x2048xf32> to vector<8x1024xf32>
    %cst_35 = arith.constant dense<0.000000e+00> : vector<8x1024xf32>
    %49 = tpu.matmul %47, %48, %cst_35 {dimension_numbers = #tpu.dot_dimension_numbers<[1], [0], [0], [1], [0, 0, 1, 1], [], []>} : vector<8x8xf32>, vector<8x1024xf32>, vector<8x1024xf32> -> vector<8x1024xf32>
    %50 = arith.addf %45, %49 : vector<8x1024xf32>
    %c8 = arith.constant 8 : index
    %c0_36 = arith.constant 0 : index
    %c0_37 = arith.constant 0 : index
    %51 = vector.load %arg4[%c8, %c0_36, %c0_37] : memref<27x8x8xf32, #tpu.memory_space<vmem>>, vector<1x8x8xf32>
    %52 = vector.shape_cast %51 : vector<1x8x8xf32> to vector<8x8xf32>
    %53 = vector.extract_strided_slice %9 {offsets = [0, 38], sizes = [8, 1024], strides = [1, 1]} : vector<8x2048xf32> to vector<8x1024xf32>
    %cst_38 = arith.constant dense<0.000000e+00> : vector<8x1024xf32>
    %54 = tpu.matmul %52, %53, %cst_38 {dimension_numbers = #tpu.dot_dimension_numbers<[1], [0], [0], [1], [0, 0, 1, 1], [], []>} : vector<8x8xf32>, vector<8x1024xf32>, vector<8x1024xf32> -> vector<8x1024xf32>
    %55 = arith.addf %50, %54 : vector<8x1024xf32>
    %c9 = arith.constant 9 : index
    %c0_39 = arith.constant 0 : index
    %c0_40 = arith.constant 0 : index
    %56 = vector.load %arg4[%c9, %c0_39, %c0_40] : memref<27x8x8xf32, #tpu.memory_space<vmem>>, vector<1x8x8xf32>
    %57 = vector.shape_cast %56 : vector<1x8x8xf32> to vector<8x8xf32>
    %58 = vector.extract_strided_slice %9 {offsets = [0, 324], sizes = [8, 1024], strides = [1, 1]} : vector<8x2048xf32> to vector<8x1024xf32>
    %cst_41 = arith.constant dense<0.000000e+00> : vector<8x1024xf32>
    %59 = tpu.matmul %57, %58, %cst_41 {dimension_numbers = #tpu.dot_dimension_numbers<[1], [0], [0], [1], [0, 0, 1, 1], [], []>} : vector<8x8xf32>, vector<8x1024xf32>, vector<8x1024xf32> -> vector<8x1024xf32>
    %60 = arith.addf %55, %59 : vector<8x1024xf32>
    %c10 = arith.constant 10 : index
    %c0_42 = arith.constant 0 : index
    %c0_43 = arith.constant 0 : index
    %61 = vector.load %arg4[%c10, %c0_42, %c0_43] : memref<27x8x8xf32, #tpu.memory_space<vmem>>, vector<1x8x8xf32>
    %62 = vector.shape_cast %61 : vector<1x8x8xf32> to vector<8x8xf32>
    %63 = vector.extract_strided_slice %9 {offsets = [0, 325], sizes = [8, 1024], strides = [1, 1]} : vector<8x2048xf32> to vector<8x1024xf32>
    %cst_44 = arith.constant dense<0.000000e+00> : vector<8x1024xf32>
    %64 = tpu.matmul %62, %63, %cst_44 {dimension_numbers = #tpu.dot_dimension_numbers<[1], [0], [0], [1], [0, 0, 1, 1], [], []>} : vector<8x8xf32>, vector<8x1024xf32>, vector<8x1024xf32> -> vector<8x1024xf32>
    %65 = arith.addf %60, %64 : vector<8x1024xf32>
    %c11 = arith.constant 11 : index
    %c0_45 = arith.constant 0 : index
    %c0_46 = arith.constant 0 : index
    %66 = vector.load %arg4[%c11, %c0_45, %c0_46] : memref<27x8x8xf32, #tpu.memory_space<vmem>>, vector<1x8x8xf32>
    %67 = vector.shape_cast %66 : vector<1x8x8xf32> to vector<8x8xf32>
    %68 = vector.extract_strided_slice %9 {offsets = [0, 326], sizes = [8, 1024], strides = [1, 1]} : vector<8x2048xf32> to vector<8x1024xf32>
    %cst_47 = arith.constant dense<0.000000e+00> : vector<8x1024xf32>
    %69 = tpu.matmul %67, %68, %cst_47 {dimension_numbers = #tpu.dot_dimension_numbers<[1], [0], [0], [1], [0, 0, 1, 1], [], []>} : vector<8x8xf32>, vector<8x1024xf32>, vector<8x1024xf32> -> vector<8x1024xf32>
    %70 = arith.addf %65, %69 : vector<8x1024xf32>
    %c12 = arith.constant 12 : index
    %c0_48 = arith.constant 0 : index
    %c0_49 = arith.constant 0 : index
    %71 = vector.load %arg4[%c12, %c0_48, %c0_49] : memref<27x8x8xf32, #tpu.memory_space<vmem>>, vector<1x8x8xf32>
    %72 = vector.shape_cast %71 : vector<1x8x8xf32> to vector<8x8xf32>
    %73 = vector.extract_strided_slice %9 {offsets = [0, 342], sizes = [8, 1024], strides = [1, 1]} : vector<8x2048xf32> to vector<8x1024xf32>
    %cst_50 = arith.constant dense<0.000000e+00> : vector<8x1024xf32>
    %74 = tpu.matmul %72, %73, %cst_50 {dimension_numbers = #tpu.dot_dimension_numbers<[1], [0], [0], [1], [0, 0, 1, 1], [], []>} : vector<8x8xf32>, vector<8x1024xf32>, vector<8x1024xf32> -> vector<8x1024xf32>
    %75 = arith.addf %70, %74 : vector<8x1024xf32>
    %c13 = arith.constant 13 : index
    %c0_51 = arith.constant 0 : index
    %c0_52 = arith.constant 0 : index
    %76 = vector.load %arg4[%c13, %c0_51, %c0_52] : memref<27x8x8xf32, #tpu.memory_space<vmem>>, vector<1x8x8xf32>
    %77 = vector.shape_cast %76 : vector<1x8x8xf32> to vector<8x8xf32>
    %78 = vector.extract_strided_slice %9 {offsets = [0, 343], sizes = [8, 1024], strides = [1, 1]} : vector<8x2048xf32> to vector<8x1024xf32>
    %cst_53 = arith.constant dense<0.000000e+00> : vector<8x1024xf32>
    %79 = tpu.matmul %77, %78, %cst_53 {dimension_numbers = #tpu.dot_dimension_numbers<[1], [0], [0], [1], [0, 0, 1, 1], [], []>} : vector<8x8xf32>, vector<8x1024xf32>, vector<8x1024xf32> -> vector<8x1024xf32>
    %80 = arith.addf %75, %79 : vector<8x1024xf32>
    %c14 = arith.constant 14 : index
    %c0_54 = arith.constant 0 : index
    %c0_55 = arith.constant 0 : index
    %81 = vector.load %arg4[%c14, %c0_54, %c0_55] : memref<27x8x8xf32, #tpu.memory_space<vmem>>, vector<1x8x8xf32>
    %82 = vector.shape_cast %81 : vector<1x8x8xf32> to vector<8x8xf32>
    %83 = vector.extract_strided_slice %9 {offsets = [0, 344], sizes = [8, 1024], strides = [1, 1]} : vector<8x2048xf32> to vector<8x1024xf32>
    %cst_56 = arith.constant dense<0.000000e+00> : vector<8x1024xf32>
    %84 = tpu.matmul %82, %83, %cst_56 {dimension_numbers = #tpu.dot_dimension_numbers<[1], [0], [0], [1], [0, 0, 1, 1], [], []>} : vector<8x8xf32>, vector<8x1024xf32>, vector<8x1024xf32> -> vector<8x1024xf32>
    %85 = arith.addf %80, %84 : vector<8x1024xf32>
    %c15 = arith.constant 15 : index
    %c0_57 = arith.constant 0 : index
    %c0_58 = arith.constant 0 : index
    %86 = vector.load %arg4[%c15, %c0_57, %c0_58] : memref<27x8x8xf32, #tpu.memory_space<vmem>>, vector<1x8x8xf32>
    %87 = vector.shape_cast %86 : vector<1x8x8xf32> to vector<8x8xf32>
    %88 = vector.extract_strided_slice %9 {offsets = [0, 360], sizes = [8, 1024], strides = [1, 1]} : vector<8x2048xf32> to vector<8x1024xf32>
    %cst_59 = arith.constant dense<0.000000e+00> : vector<8x1024xf32>
    %89 = tpu.matmul %87, %88, %cst_59 {dimension_numbers = #tpu.dot_dimension_numbers<[1], [0], [0], [1], [0, 0, 1, 1], [], []>} : vector<8x8xf32>, vector<8x1024xf32>, vector<8x1024xf32> -> vector<8x1024xf32>
    %90 = arith.addf %85, %89 : vector<8x1024xf32>
    %c16 = arith.constant 16 : index
    %c0_60 = arith.constant 0 : index
    %c0_61 = arith.constant 0 : index
    %91 = vector.load %arg4[%c16, %c0_60, %c0_61] : memref<27x8x8xf32, #tpu.memory_space<vmem>>, vector<1x8x8xf32>
    %92 = vector.shape_cast %91 : vector<1x8x8xf32> to vector<8x8xf32>
    %93 = vector.extract_strided_slice %9 {offsets = [0, 361], sizes = [8, 1024], strides = [1, 1]} : vector<8x2048xf32> to vector<8x1024xf32>
    %cst_62 = arith.constant dense<0.000000e+00> : vector<8x1024xf32>
    %94 = tpu.matmul %92, %93, %cst_62 {dimension_numbers = #tpu.dot_dimension_numbers<[1], [0], [0], [1], [0, 0, 1, 1], [], []>} : vector<8x8xf32>, vector<8x1024xf32>, vector<8x1024xf32> -> vector<8x1024xf32>
    %95 = arith.addf %90, %94 : vector<8x1024xf32>
    %c17 = arith.constant 17 : index
    %c0_63 = arith.constant 0 : index
    %c0_64 = arith.constant 0 : index
    %96 = vector.load %arg4[%c17, %c0_63, %c0_64] : memref<27x8x8xf32, #tpu.memory_space<vmem>>, vector<1x8x8xf32>
    %97 = vector.shape_cast %96 : vector<1x8x8xf32> to vector<8x8xf32>
    %98 = vector.extract_strided_slice %9 {offsets = [0, 362], sizes = [8, 1024], strides = [1, 1]} : vector<8x2048xf32> to vector<8x1024xf32>
    %cst_65 = arith.constant dense<0.000000e+00> : vector<8x1024xf32>
    %99 = tpu.matmul %97, %98, %cst_65 {dimension_numbers = #tpu.dot_dimension_numbers<[1], [0], [0], [1], [0, 0, 1, 1], [], []>} : vector<8x8xf32>, vector<8x1024xf32>, vector<8x1024xf32> -> vector<8x1024xf32>
    %100 = arith.addf %95, %99 : vector<8x1024xf32>
    %c18 = arith.constant 18 : index
    %c0_66 = arith.constant 0 : index
    %c0_67 = arith.constant 0 : index
    %101 = vector.load %arg4[%c18, %c0_66, %c0_67] : memref<27x8x8xf32, #tpu.memory_space<vmem>>, vector<1x8x8xf32>
    %102 = vector.shape_cast %101 : vector<1x8x8xf32> to vector<8x8xf32>
    %103 = vector.extract_strided_slice %9 {offsets = [0, 648], sizes = [8, 1024], strides = [1, 1]} : vector<8x2048xf32> to vector<8x1024xf32>
    %cst_68 = arith.constant dense<0.000000e+00> : vector<8x1024xf32>
    %104 = tpu.matmul %102, %103, %cst_68 {dimension_numbers = #tpu.dot_dimension_numbers<[1], [0], [0], [1], [0, 0, 1, 1], [], []>} : vector<8x8xf32>, vector<8x1024xf32>, vector<8x1024xf32> -> vector<8x1024xf32>
    %105 = arith.addf %100, %104 : vector<8x1024xf32>
    %c19 = arith.constant 19 : index
    %c0_69 = arith.constant 0 : index
    %c0_70 = arith.constant 0 : index
    %106 = vector.load %arg4[%c19, %c0_69, %c0_70] : memref<27x8x8xf32, #tpu.memory_space<vmem>>, vector<1x8x8xf32>
    %107 = vector.shape_cast %106 : vector<1x8x8xf32> to vector<8x8xf32>
    %108 = vector.extract_strided_slice %9 {offsets = [0, 649], sizes = [8, 1024], strides = [1, 1]} : vector<8x2048xf32> to vector<8x1024xf32>
    %cst_71 = arith.constant dense<0.000000e+00> : vector<8x1024xf32>
    %109 = tpu.matmul %107, %108, %cst_71 {dimension_numbers = #tpu.dot_dimension_numbers<[1], [0], [0], [1], [0, 0, 1, 1], [], []>} : vector<8x8xf32>, vector<8x1024xf32>, vector<8x1024xf32> -> vector<8x1024xf32>
    %110 = arith.addf %105, %109 : vector<8x1024xf32>
    %c20 = arith.constant 20 : index
    %c0_72 = arith.constant 0 : index
    %c0_73 = arith.constant 0 : index
    %111 = vector.load %arg4[%c20, %c0_72, %c0_73] : memref<27x8x8xf32, #tpu.memory_space<vmem>>, vector<1x8x8xf32>
    %112 = vector.shape_cast %111 : vector<1x8x8xf32> to vector<8x8xf32>
    %113 = vector.extract_strided_slice %9 {offsets = [0, 650], sizes = [8, 1024], strides = [1, 1]} : vector<8x2048xf32> to vector<8x1024xf32>
    %cst_74 = arith.constant dense<0.000000e+00> : vector<8x1024xf32>
    %114 = tpu.matmul %112, %113, %cst_74 {dimension_numbers = #tpu.dot_dimension_numbers<[1], [0], [0], [1], [0, 0, 1, 1], [], []>} : vector<8x8xf32>, vector<8x1024xf32>, vector<8x1024xf32> -> vector<8x1024xf32>
    %115 = arith.addf %110, %114 : vector<8x1024xf32>
    %c21 = arith.constant 21 : index
    %c0_75 = arith.constant 0 : index
    %c0_76 = arith.constant 0 : index
    %116 = vector.load %arg4[%c21, %c0_75, %c0_76] : memref<27x8x8xf32, #tpu.memory_space<vmem>>, vector<1x8x8xf32>
    %117 = vector.shape_cast %116 : vector<1x8x8xf32> to vector<8x8xf32>
    %118 = vector.extract_strided_slice %9 {offsets = [0, 666], sizes = [8, 1024], strides = [1, 1]} : vector<8x2048xf32> to vector<8x1024xf32>
    %cst_77 = arith.constant dense<0.000000e+00> : vector<8x1024xf32>
    %119 = tpu.matmul %117, %118, %cst_77 {dimension_numbers = #tpu.dot_dimension_numbers<[1], [0], [0], [1], [0, 0, 1, 1], [], []>} : vector<8x8xf32>, vector<8x1024xf32>, vector<8x1024xf32> -> vector<8x1024xf32>
    %120 = arith.addf %115, %119 : vector<8x1024xf32>
    %c22 = arith.constant 22 : index
    %c0_78 = arith.constant 0 : index
    %c0_79 = arith.constant 0 : index
    %121 = vector.load %arg4[%c22, %c0_78, %c0_79] : memref<27x8x8xf32, #tpu.memory_space<vmem>>, vector<1x8x8xf32>
    %122 = vector.shape_cast %121 : vector<1x8x8xf32> to vector<8x8xf32>
    %123 = vector.extract_strided_slice %9 {offsets = [0, 667], sizes = [8, 1024], strides = [1, 1]} : vector<8x2048xf32> to vector<8x1024xf32>
    %cst_80 = arith.constant dense<0.000000e+00> : vector<8x1024xf32>
    %124 = tpu.matmul %122, %123, %cst_80 {dimension_numbers = #tpu.dot_dimension_numbers<[1], [0], [0], [1], [0, 0, 1, 1], [], []>} : vector<8x8xf32>, vector<8x1024xf32>, vector<8x1024xf32> -> vector<8x1024xf32>
    %125 = arith.addf %120, %124 : vector<8x1024xf32>
    %c23 = arith.constant 23 : index
    %c0_81 = arith.constant 0 : index
    %c0_82 = arith.constant 0 : index
    %126 = vector.load %arg4[%c23, %c0_81, %c0_82] : memref<27x8x8xf32, #tpu.memory_space<vmem>>, vector<1x8x8xf32>
    %127 = vector.shape_cast %126 : vector<1x8x8xf32> to vector<8x8xf32>
    %128 = vector.extract_strided_slice %9 {offsets = [0, 668], sizes = [8, 1024], strides = [1, 1]} : vector<8x2048xf32> to vector<8x1024xf32>
    %cst_83 = arith.constant dense<0.000000e+00> : vector<8x1024xf32>
    %129 = tpu.matmul %127, %128, %cst_83 {dimension_numbers = #tpu.dot_dimension_numbers<[1], [0], [0], [1], [0, 0, 1, 1], [], []>} : vector<8x8xf32>, vector<8x1024xf32>, vector<8x1024xf32> -> vector<8x1024xf32>
    %130 = arith.addf %125, %129 : vector<8x1024xf32>
    %c24 = arith.constant 24 : index
    %c0_84 = arith.constant 0 : index
    %c0_85 = arith.constant 0 : index
    %131 = vector.load %arg4[%c24, %c0_84, %c0_85] : memref<27x8x8xf32, #tpu.memory_space<vmem>>, vector<1x8x8xf32>
    %132 = vector.shape_cast %131 : vector<1x8x8xf32> to vector<8x8xf32>
    %133 = vector.extract_strided_slice %9 {offsets = [0, 684], sizes = [8, 1024], strides = [1, 1]} : vector<8x2048xf32> to vector<8x1024xf32>
    %cst_86 = arith.constant dense<0.000000e+00> : vector<8x1024xf32>
    %134 = tpu.matmul %132, %133, %cst_86 {dimension_numbers = #tpu.dot_dimension_numbers<[1], [0], [0], [1], [0, 0, 1, 1], [], []>} : vector<8x8xf32>, vector<8x1024xf32>, vector<8x1024xf32> -> vector<8x1024xf32>
    %135 = arith.addf %130, %134 : vector<8x1024xf32>
    %c25 = arith.constant 25 : index
    %c0_87 = arith.constant 0 : index
    %c0_88 = arith.constant 0 : index
    %136 = vector.load %arg4[%c25, %c0_87, %c0_88] : memref<27x8x8xf32, #tpu.memory_space<vmem>>, vector<1x8x8xf32>
    %137 = vector.shape_cast %136 : vector<1x8x8xf32> to vector<8x8xf32>
    %138 = vector.extract_strided_slice %9 {offsets = [0, 685], sizes = [8, 1024], strides = [1, 1]} : vector<8x2048xf32> to vector<8x1024xf32>
    %cst_89 = arith.constant dense<0.000000e+00> : vector<8x1024xf32>
    %139 = tpu.matmul %137, %138, %cst_89 {dimension_numbers = #tpu.dot_dimension_numbers<[1], [0], [0], [1], [0, 0, 1, 1], [], []>} : vector<8x8xf32>, vector<8x1024xf32>, vector<8x1024xf32> -> vector<8x1024xf32>
    %140 = arith.addf %135, %139 : vector<8x1024xf32>
    %c26 = arith.constant 26 : index
    %c0_90 = arith.constant 0 : index
    %c0_91 = arith.constant 0 : index
    %141 = vector.load %arg4[%c26, %c0_90, %c0_91] : memref<27x8x8xf32, #tpu.memory_space<vmem>>, vector<1x8x8xf32>
    %142 = vector.shape_cast %141 : vector<1x8x8xf32> to vector<8x8xf32>
    %143 = vector.extract_strided_slice %9 {offsets = [0, 686], sizes = [8, 1024], strides = [1, 1]} : vector<8x2048xf32> to vector<8x1024xf32>
    %cst_92 = arith.constant dense<0.000000e+00> : vector<8x1024xf32>
    %144 = tpu.matmul %142, %143, %cst_92 {dimension_numbers = #tpu.dot_dimension_numbers<[1], [0], [0], [1], [0, 0, 1, 1], [], []>} : vector<8x8xf32>, vector<8x1024xf32>, vector<8x1024xf32> -> vector<8x1024xf32>
    %145 = arith.addf %140, %144 : vector<8x1024xf32>
    %c0_93 = arith.constant 0 : index
    %c0_94 = arith.constant 0 : index
    %c0_95 = arith.constant 0 : index
    %146 = vector.load %arg6[%c0_93, %c0_94, %c0_95] : memref<1x8x1024xf32, #tpu.memory_space<vmem>>, vector<1x8x1024xf32>
    %147 = vector.shape_cast %146 : vector<1x8x1024xf32> to vector<8x1024xf32>
    %148 = vector.shape_cast %145 : vector<8x1024xf32> to vector<1x8x1024xf32>
    tpu.vector_store %arg6[%c0_93, %c0_94, %c0_95], %148 {strides = array<i32>} : memref<1x8x1024xf32, #tpu.memory_space<vmem>>, vector<1x8x1024xf32>,
    %c0_96 = arith.constant 0 : index
    %c0_97 = arith.constant 0 : index
    %149 = vector.load %arg5[%c0_96, %c0_97] : memref<1x1024xf32, #tpu.memory_space<vmem>>, vector<1x1024xf32>
    %150 = vector.broadcast %149 : vector<1x1024xf32> to vector<8x1024xf32>
    %151 = arith.mulf %145, %150 : vector<8x1024xf32>
    %c0_98 = arith.constant 0 : index
    %c0_99 = arith.constant 0 : index
    %c0_100 = arith.constant 0 : index
    %152 = vector.load %arg7[%c0_98, %c0_99, %c0_100] : memref<1x8x2xf32, #tpu.memory_space<vmem>>, vector<1x8x1xf32>
    %153 = vector.shape_cast %152 : vector<1x8x1xf32> to vector<8x1xf32>
    %cst_101 = arith.constant dense<0.000000e+00> : vector<8xf32>
    %154 = vector.multi_reduction <add>, %151, %cst_101 [1] : vector<8x1024xf32> to vector<8xf32>
    %155 = vector.shape_cast %154 : vector<8xf32> to vector<8x1xf32>
    %156 = arith.addf %153, %155 : vector<8x1xf32>
    %c0_102 = arith.constant 0 : index
    %c0_103 = arith.constant 0 : index
    %c0_104 = arith.constant 0 : index
    %157 = vector.load %arg7[%c0_102, %c0_103, %c0_104] : memref<1x8x2xf32, #tpu.memory_space<vmem>>, vector<1x8x1xf32>
    %158 = vector.shape_cast %157 : vector<1x8x1xf32> to vector<8x1xf32>
    %159 = vector.shape_cast %156 : vector<8x1xf32> to vector<1x8x1xf32>
    tpu.vector_store %arg7[%c0_102, %c0_103, %c0_104], %159 {strides = array<i32>} : memref<1x8x2xf32, #tpu.memory_space<vmem>>, vector<1x8x1xf32>,
    %c0_105 = arith.constant 0 : index
    %c0_106 = arith.constant 0 : index
    %c1_107 = arith.constant 1 : index
    %160 = vector.load %arg7[%c0_105, %c0_106, %c1_107] : memref<1x8x2xf32, #tpu.memory_space<vmem>>, vector<1x8x1xf32>
    %161 = vector.shape_cast %160 : vector<1x8x1xf32> to vector<8x1xf32>
    %162 = arith.mulf %151, %145 : vector<8x1024xf32>
    %cst_108 = arith.constant dense<0.000000e+00> : vector<8xf32>
    %163 = vector.multi_reduction <add>, %162, %cst_108 [1] : vector<8x1024xf32> to vector<8xf32>
    %164 = vector.shape_cast %163 : vector<8xf32> to vector<8x1xf32>
    %165 = arith.addf %161, %164 : vector<8x1xf32>
    %c0_109 = arith.constant 0 : index
    %c0_110 = arith.constant 0 : index
    %c1_111 = arith.constant 1 : index
    %166 = vector.load %arg7[%c0_109, %c0_110, %c1_111] : memref<1x8x2xf32, #tpu.memory_space<vmem>>, vector<1x8x1xf32>
    %167 = vector.shape_cast %166 : vector<1x8x1xf32> to vector<8x1xf32>
    %168 = vector.shape_cast %165 : vector<8x1xf32> to vector<1x8x1xf32>
    tpu.vector_store %arg7[%c0_109, %c0_110, %c1_111], %168 {strides = array<i32>} : memref<1x8x2xf32, #tpu.memory_space<vmem>>, vector<1x8x1xf32>,
    return
  }
  func.func @transform_0(%arg0: i32, %arg1: i32) -> (i32, i32, i32) {
    %c0_i32 = arith.constant 0 : i32
    %c0_i32_0 = arith.constant 0 : i32
    return %arg0, %c0_i32, %arg1 : i32, i32, i32
  }
  func.func @transform_1(%arg0: i32, %arg1: i32) -> (i32, i32, i32) {
    %c1_i32 = arith.constant 1 : i32
    %0 = arith.addi %arg1, %c1_i32 : i32
    %c0_i32 = arith.constant 0 : i32
    %c0_i32_0 = arith.constant 0 : i32
    return %arg0, %c0_i32, %0 : i32, i32, i32
  }
  func.func @transform_2(%arg0: i32, %arg1: i32) -> (i32, i32, i32) {
    %c0_i32 = arith.constant 0 : i32
    %c0_i32_0 = arith.constant 0 : i32
    %c0_i32_1 = arith.constant 0 : i32
    %c0_i32_2 = arith.constant 0 : i32
    return %c0_i32, %c0_i32_0, %c0_i32_1 : i32, i32, i32
  }
  func.func @transform_3(%arg0: i32, %arg1: i32) -> (i32, i32) {
    %c0_i32 = arith.constant 0 : i32
    %c0_i32_0 = arith.constant 0 : i32
    return %c0_i32, %arg1 : i32, i32
  }
  func.func @transform_4(%arg0: i32, %arg1: i32) -> (i32, i32, i32) {
    %c0_i32 = arith.constant 0 : i32
    %c0_i32_0 = arith.constant 0 : i32
    return %arg0, %c0_i32, %arg1 : i32, i32, i32
  }
  func.func @transform_5(%arg0: i32, %arg1: i32) -> (i32, i32, i32) {
    %c0_i32 = arith.constant 0 : i32
    %c0_i32_0 = arith.constant 0 : i32
    %c0_i32_1 = arith.constant 0 : i32
    return %arg0, %c0_i32, %c0_i32_0 : i32, i32, i32
  }
}

</mosaic_0001>

<bundles_post_ra>
// kernel: tpu_custom_call.1
= control target key start
LH: loop header
LB: loop body
LE: loop exit
PB: predicated region body
PF: predicated region fallthrough
CT: control target
= control target key end

     0   :  { %s11738_s0 = inlined_call_operand.hbm [shape: f32[2,8,7168], index: 0, kind: input, shape index: {}]   ;;  %s11739_s1 = inlined_call_operand.hbm [shape: f32[2,8,7168], index: 1, kind: input, shape index: {}]   ;;  %s11740_s2 = inlined_call_operand.vmem [shape: f32[27,8,8], index: 2, kind: input, shape index: {}]   ;;  %s11741_s3 = inlined_call_operand.vmem [shape: f32[1,6144], index: 3, kind: input, shape index: {}]   ;;  %s11742_s4 = inlined_call_operand.hbm [shape: f32[2,8,6144], index: 4, kind: output, shape index: {0}]   ;;  %s11743_s5 = inlined_call_operand.vmem [shape: f32[2,8,2], index: 5, kind: output, shape index: {1}]  }
   0x1   :  { %11754 = sst [smem:[#allocation37_spill]] %s11740_s2 }
   0x2   :  { %11755 = sst [smem:[#allocation38_spill]] %s11742_s4 }
   0x3   :  { %11 = vsyncpa [#allocation4], 0 }
   0x4   :  { %13 = vsyncpa [#allocation4 + $0x1], 0 }
   0x5   :  { %14 = vsyncpa [#allocation7], 0 }
   0x6   :  { %16 = vsyncpa [#allocation7 + $0x1], 0 }
   0x7   :  { %17 = vsyncpa [#allocation5], 0 }
   0x8   :  { %19 = vsyncpa [#allocation5 + $0x1], 0  ;;  %s10129_s18 = smov 0   ;;  %s10131_s19 = smov 0  }
   0x9   :  { %s10133_s20 = smov 0   ;;  %s10135_s21 = smov 0  }
   0xa   :  { %s10137_s22 = smov 0   ;;  %s10139_s23 = smov 0  }
   0xb   :  { %s10141_s24 = smov 0   ;;  %s10143_s25 = smov 0  }
   0xc   :  { %s10145_s26 = smov 0   ;;  %s10147_s27 = smov 0  }
   0xd   :  { %s10149_s28 = smov 0  }
   0xe LB: > { %11756 = sst [smem:[#allocation12_spill]] %s10046_s23  ;;  %s9580_s29 = sadd.s32 4294967295, %s10066_s28   ;;  %s10066_s28 = sphi %s10149_s28, %s25_s28   ;;  %s10062_s27 = sphi %s10147_s27, %s11823_s27   ;;  %s10058_s26 = sphi %s10145_s26, %s11822_s26   ;;  %s10054_s25 = sphi %s10143_s25, %s11821_s25   ;;  %s10050_s24 = sphi %s10141_s24, %s11820_s24   ;;  %s10046_s23 = sphi %s10139_s23, %s11819_s23   ;;  %s10042_s22 = sphi %s10137_s22, %s11828_s22   ;;  %s10038_s21 = sphi %s10135_s21, %s11827_s21   ;;  %s10034_s20 = sphi %s10133_s20, %s11826_s20   ;;  %s10030_s19 = sphi %s10131_s19, %s11825_s19   ;;  %s10026_s18 = sphi %s10129_s18, %s11824_s18  }
   0xf   : > { %11757 = sst [smem:[#allocation13_spill]] %s10058_s26  ;;  %s9581_s30 = sadd.s32 4294967294, %s10066_s28  }
  0x10   : > { %11758 = sst [smem:[#allocation14_spill]] %s10062_s27  ;;  %s34_s6 = sadd.s32 1, %s10058_s26 }
  0x11   : > { %s37_s7 = sadd.s32 1, %s10062_s27  ;;  %p35_p0 = scmp.ge.s32.totalorder %s34_s6, 6 }
  0x12   : > { %s46_s8 = sadd.s32 1, %s10046_s23  ;;  %p53_p1 = scmp.ne.s32.totalorder %s10046_s23, %s10042_s22 }
  0x13   : > { %p11751_p2 = scmp.eq.s32.totalorder %s10066_s28, 0  ;;  %s11830_s7 = smov (!%p35_p0, %s37_s7), %s10062_s27 }
  0x14   : > { %s10192_s9 = scalar_select %p35_p0, 0, %s34_s6  }
  0x15   : > { %p10202_p3 = por %p11751_p2, %p53_p1  ;;  %p39_p4 = scmp.ge.s32.totalorder %s11830_s7, 2 }
  0x16   : > { %11759 = sst [smem:[#allocation15_spill]] %s10192_s9  ;;  %s42_s10 = ssub.s32 %s10058_s26, %s10192_s9 }
  0x17   : > { %p59_p5 = scmp.ne.s32.totalorder %s10042_s22, %s10038_s21  ;;  %p10208_p6 = scmp.eq.s32.totalorder %s9580_s29, 0 }
  0x18   : > { %s70_s13 = sadd.s32 1, %s10192_s9  ;;  %s11832_s7 = smov (%p39_p4, %s11830_s7), 0 }
  0x19   : > { %11762 = sst [smem:[#allocation16_spill]] %s11832_s7  ;;  %p10220_p7 = por %p10208_p6, %p59_p5 }
  0x1a   : > { %s72_s15 = ssub.s32 %s34_s6, %s70_s13  ;;  %s41_s16 = ssub.s32 %s10062_s27, %s11832_s7 }
  0x1b   : > { %p162_p8 = scmp.eq.s32.totalorder %s9580_s29, 11  ;;  %s43_s17 = sor.u32 %s42_s10, %s41_s16 }
  0x1c   : > { %s73_s4 = sor.u32 %s72_s15, %s41_s16  ;;  %p44_p9 = scmp.eq.s32.totalorder %s43_s17, 0 }
  0x1d   : > { %p10226_p10 = scmp.eq.s32.totalorder %s73_s4, 0  ;;  %p10233_p11 = por %p162_p8, %p53_p1 }
  0x1e   : > { %p168_p12 = scmp.eq.s32.totalorder %s9581_s30, 11  ;;  %p11753_p0 = scmp.lt.s32.totalorder %s10066_s28, 12 }
  0x1f   : > { %s10238_s6 = scalar_select %p44_p9, %s10046_s23, %s46_s8  }
  0x20   : > { %p10243_p13 = por %p168_p12, %p59_p5  ;;  %s217_s10 = sand.u32 1, %s10046_s23  }
  0x21   : > { %11766 = sst [smem:[#allocation17_spill]] %s10238_s6  ;;  %s9584_s4 = sshll.u32 %s217_s10, 6 }
  0x22   : > { %s11767_s29 = scalar_select %p10243_p13, 1, 0 }
  0x23   : > { %s9585_s13 = sshll.u32 %s10058_s26, 3  ;;  %s9736_s15 = smul.u32 56, %s10062_s27 }
  0x24   : > { %11768 = sst [smem:[#allocation18_spill]] %s11767_s29  ;;  %s221_s16 = scalar_lea.vmem [#allocation3], %s9584_s4 }
  0x25   : > { %s231_s17 = sshll.u32 %s221_s16, 4  ;;  %p10255_p1 = pnand %p11753_p0, %p10202_p3  ;;  %s232_s17 = int_to_ptr.vmem [resolvable:$true] %s231_s17 }
  0x26   : > { %s227_s8 = sadd.s32 %s9736_s15, %s9585_s13  ;;  %p266_p5 = scmp.lt.s32.totalorder %s10066_s28, 13 }
  0x27   : > { %s9586_s7 = sshll.u32 %s227_s8, 7  ;;  %s218_s26 = scalar_lea.sflag [#allocation4], %s217_s10 }
  0x28   : > { %s229_s23 = scalar_lea.hbm %s11738_s0, %s9586_s7  ;;  %p9887_p8 = pneg %p10255_p1 }
  0x29   : > { %s9898_s4 = scalar_lea.vmem %s232_s17, 1024  ;;  %s10068_s11 = smov [#allocation3]  }
  0x2a   : > { %p9899_p9 = scmp.ne.s32.totalorder %s232_s17, %s9898_s4  ;;  %s9903_s16 = sshll.u32 %s10068_s11, 4  ;;  %s9904_s16 = int_to_ptr.vmem [resolvable:$false] %s9903_s16 }
  0x2b   : > { %s9905_s27 = scalar_lea.vmem %s9904_s16, 2048  ;;  %p9906_p3 = scmp.lt.s32.totalorder %s232_s17, %s9904_s16 }
  0x2c   : > { %p9901_p12 = pnand %p9899_p9, %p9887_p8  ;;  %p9907_p0 = scmp.lt.s32.totalorder %s9905_s27, %s9898_s4 }
  0x2e   : > { %p9902_p2 = pneg %p9901_p12  ;;  %p9908_p4 = por %p9907_p0, %p9906_p3 }
  0x30   : > { %p9909_p13 = pnand %p9908_p4, %p9902_p2 }
  0x32   : > { %9912 = shalt.err (!%p9909_p13)
}
  0x33   : > { %9747 = dma.hbm_to_vmem [thread:$0]  (!%p10255_p1), %s229_s23, 1024, %s232_s17, %s218_s26  }
  0x34   : > { %p11770_p0 = scmp.ge.s32.totalorder %s10066_s28, 1  ;;  %s76_s6 = sadd.s32 1, %s10034_s20 }
  0x35   : > { %s10280_s29 = scalar_select %p10226_p10, %s10034_s20, %s76_s6  }
  0x36   : > { %p10272_p2 = pnand %p11770_p0, %p266_p5  ;;  %p83_p13 = scmp.ne.s32.totalorder %s10034_s20, %s10030_s19 }
  0x37   : > { %p89_p4 = scmp.ne.s32.totalorder %s10030_s19, %s10026_s18  ;;  %s238_s10 = sand.u32 1, %s10034_s20  }
  0x38   : > { %s9482_s30 = scalar_lea.hbm %s11739_s1, %s9586_s7  ;;  %p11772_p8 = scmp.eq.s32.totalorder %s10066_s28, 0 }
  0x39   : > { %p10294_p1 = por %p89_p4, %p10208_p6  ;;  %s9587_s26 = sshll.u32 %s238_s10, 6 }
  0x3a   : > { %p85_p9 = por %p83_p13, %p11772_p8  ;;  %s9483_s17 = scalar_lea.hbm %s9482_s30, 1024 }
  0x3b   : > { %s242_s8 = scalar_lea.vmem [#allocation6], %s9587_s26  ;;  %p11774_p10 = scmp.lt.s32.totalorder %s10066_s28, 12 }
  0x3c   : > { %s253_s9 = sshll.u32 %s242_s8, 4  ;;  %s239_s18 = scalar_lea.sflag [#allocation7], %s238_s10  ;;  %s254_s9 = int_to_ptr.vmem [resolvable:$true] %s253_s9 }
  0x3d   : > { %p10300_p5 = pnand %p11774_p10, %p85_p9  ;;  %s9926_s7 = scalar_lea.vmem %s254_s9, 1024 }
  0x3e   : > { %p9927_p3 = scmp.ne.s32.totalorder %s254_s9, %s9926_s7  ;;  %s10069_s12 = smov [#allocation6]  }
  0x3f   : > { %p9915_p12 = pneg %p10300_p5  ;;  %s9931_s11 = sshll.u32 %s10069_s12, 4  ;;  %s9932_s11 = int_to_ptr.vmem [resolvable:$false] %s9931_s11 }
  0x40   : > { %s9933_s16 = scalar_lea.vmem %s9932_s11, 2048  ;;  %p9934_p13 = scmp.lt.s32.totalorder %s254_s9, %s9932_s11 }
  0x41   : > { %p9929_p6 = pnand %p9927_p3, %p9915_p12  ;;  %p9935_p4 = scmp.lt.s32.totalorder %s9933_s16, %s9926_s7 }
  0x43   : > { %p9930_p0 = pneg %p9929_p6  ;;  %p9936_p8 = por %p9935_p4, %p9934_p13 }
  0x45   : > { %p9937_p9 = pnand %p9936_p8, %p9930_p0 }
  0x47   : > { %9940 = shalt.err (!%p9937_p9)
}
  0x48   : > { %9750 = dma.hbm_to_vmem [thread:$0]  (!%p10300_p5), %s9483_s17, 1024, %s254_s9, %s239_s18  }
  0x49   : > { %270 = sbr.rel (%p10272_p2) target bundleno = 1037 (0x40d), region = 36 }
  0x4e   : > { %s10311_s6 = sand.u32 1, %s10042_s22  }
  0x4f   : > { %s9591_s10 = sshll.u32 %s10311_s6, 6  ;;  %s273_s13 = scalar_lea.sflag [#allocation4], %s10311_s6 }
  0x50   : > { %s10315_s15 = scalar_lea.vmem [#allocation3], %s9591_s10 }
  0x51   : > { %10013 = dma.done.wait (%p10220_p7), %s273_s13, 1024  }
  0x52   : > { %10015 = vsyncadd (%p10220_p7), %s273_s13, 4294966272  ;;  %s281_s30 = sand.u32 1, %s10030_s19  }
  0x53   : > { %s9592_s27 = sshll.u32 %s281_s30, 6  ;;  %s282_s26 = scalar_lea.sflag [#allocation7], %s281_s30 }
  0x54   : > { %s10322_s17 = scalar_lea.vmem [#allocation6], %s9592_s27 }
  0x55   : > { %10017 = dma.done.wait (%p10294_p1), %s282_s26, 1024  }
  0x56   : > { %10019 = vsyncadd (%p10294_p1), %s282_s26, 4294966272  ;;  %s10329_s8 = sshll.u32 %s10050_s24, 3  ;;  %p334_p2 = scmp.lt.s32.totalorder %s10054_s25, 1 }
  0x57   : > { %p329_p7 = scmp.lt.s32.totalorder %s10329_s8, 47  ;;  %s10346_s13 = scalar_lea.vmem [#allocation8], %s9591_s10 }
  0x58   : > { %s335_s9 = scalar_select %p334_p2, %s10054_s25, 1 }
  0x59   : > { %s10334_s14 = scalar_select %p329_p7, %s10329_s8, 47 }
  0x5a   : > { %s9595_s12 = sshll.u32 %s335_s9, 3  ;;  %p9596_p1 = scmp.ne.s32.totalorder %s10050_s24, 0 }
  0x5b   : > { %s331_s7 = scalar_lea.vmem %s11741_s3, %s10334_s14  ;;  %s10344_s16 = scalar_lea.vmem %s11743_s5, %s9595_s12 }
  0x5c   : > { %341 = sbr.rel (%p9596_p1) target bundleno = 99 (0x63), region = 48 }
  0x61   : > { %vm342_vm0 = vcmask 15360   ;;  %v10070_v0 = vmov 0.0  }
  0x62   : > { %343 = vst.msk [vmem:[%s10344_s16] sm:$0xff] %vm342_vm0, %v10070_v0 }
  0x63 PF: > { %v10351_v1 = vld [vmem:[%s10315_s15 + $0x8] sm:$0xff]  ;;  %v10354_v2 = vld [vmem:[%s10315_s15] sm:$0xff]  ;;  %s10071_s10 = smov 127   ;;  %v10359_v3 = vld [vmem:[%s10315_s15 + $0x10] sm:$0xff]  ;;  %v10072_v5 = vmov 0.0   ;;  %s10073_s24 = smov 126  }
  0x64   : > { %404 = vrot.lane.b32.xlu0 %v10351_v1, %s10071_s10  ;;  %402 = vrot.lane.b32.xlu1 %v10354_v2, %s10071_s10  ;;  %v10362_v4 = vld [vmem:[%s10315_s15 + $0x18] sm:$0xff]  ;;  %v10369_v6 = vld [vmem:[%s10315_s15 + $0x20] sm:$0xff]  ;;  %s10074_s30 = smov 110   ;;  %s10075_s27 = smov 109   ;;  %vm420_vm1 = vcmask 1039360   ;;  %vm437_vm2 = vcmask 64512  }
  0x65   : > { %505 = vmatprep.mubr.f32.mxu0 %v10072_v5  ;;  %576 = vmatprep.mubr.f32.mxu1 %v10072_v5  ;;  %v10372_v7 = vld [vmem:[%s10315_s15 + $0x28] sm:$0xff]  ;;  %v10377_v8 = vld [vmem:[%s10315_s15 + $0x30] sm:$0xff]  ;;  %v10380_v9 = vld [vmem:[%s10315_s15 + $0x38] sm:$0xff]  ;;  %s10076_s26 = smov 108   ;;  %s10077_s9 = smov 92   ;;  %vm1032_vm3 = vcmask 1031168  }
  0x66   : > { %v10385_v10 = vld [vmem:[%s10322_s17] sm:$0xff]  ;;  %s10078_s4 = smov 91   ;;  %s11776_s23 = sld [smem:[#allocation37_spill]]  ;;  %vm1364_vm4 = vcmask 900096   ;;  %v10534_v55 = vld [vmem:[%s10322_s17 + $0x8] sm:$0xff]  ;;  %v10543_v58 = vld [vmem:[%s10322_s17 + $0x10] sm:$0xff] }
  0x67   : > { %s10081_s12 = smov 59   ;;  %vm1696_vm5 = vcmask 891904   ;;  %vm2028_vm6 = vcmask 883712   ;;  %vm2360_vm7 = vcmask 752640   ;;  %s10084_s18 = smov 41   ;;  %vm2692_vm8 = vcmask 744448  }
  0x68   : > { %406 = vrot.lane.b32.xlu0 %v10359_v3, %s10071_s10  ;;  %408 = vrot.lane.b32.xlu1 %v10362_v4, %s10071_s10  ;;  %vm3024_vm9 = vcmask 736256   ;;  %vm3358_vm10 = vcmask 490496   ;;  %vm3690_vm11 = vcmask 482304   ;;  %vm4022_vm12 = vcmask 474112   ;;  %s9737_s14 = smul.u32 48, %s10054_s25 }
  0x69   : > { %vm4354_vm13 = vcmask 343040   ;;  %vm4686_vm14 = vcmask 334848   ;;  %vm5018_vm15 = vcmask 326656   ;;  %vm5350_vm0 = vcmask 195584  }
  0x6c   : > { %410 = vrot.lane.b32.xlu0 %v10369_v6, %s10071_s10  ;;  %412 = vrot.lane.b32.xlu1 %v10372_v7, %s10071_s10  ;;  %s11777_s11 = smov %s11776_s23  ;;  %v9597_v16 = vld [vmem:[%s11776_s23 + $0x8] sm:$0xff]  ;;  %s10088_s23 = smov 22  }
  0x6d   : > { %v390_v29 = vld [vmem:[%s11777_s11] sm:$0xff]  ;;  %v9606_v42 = vld [vmem:[%s11777_s11 + $0x10] sm:$0xff]  ;;  %v9611_v53 = vld [vmem:[%s11777_s11 + $0x18] sm:$0xff] }
  0x70   : > { %414 = vrot.lane.b32.xlu0 %v10377_v8, %s10071_s10  ;;  %416 = vrot.lane.b32.xlu1 %v10380_v9, %s10071_s10 }
  0x74   : > { %418 = vrot.lane.b32.xlu0 %v10385_v10, %s10071_s10  ;;  %1016 = vrot.lane.b32.xlu1 %v10351_v1, %s10073_s24  ;;  %s10079_s10 = smov 90  }
  0x78   : > { %1018 = vrot.lane.b32.xlu0 %v10359_v3, %s10073_s24  ;;  %1014 = vrot.lane.b32.xlu1 %v10354_v2, %s10073_s24 }
  0x7c   : > { %1020 = vrot.lane.b32.xlu0 %v10362_v4, %s10073_s24  ;;  %1022 = vrot.lane.b32.xlu1 %v10369_v6, %s10073_s24 }
  0x80   : > { %1024 = vrot.lane.b32.xlu0 %v10372_v7, %s10073_s24  ;;  %1026 = vrot.lane.b32.xlu1 %v10377_v8, %s10073_s24 }
  0x84   : > { %1028 = vrot.lane.b32.xlu0 %v10380_v9, %s10073_s24  ;;  %1030 = vrot.lane.b32.xlu1 %v10385_v10, %s10073_s24  ;;  %s10082_s24 = smov 58  }
  0x88   : > { %1348 = vrot.lane.b32.xlu0 %v10351_v1, %s10074_s30  ;;  %1350 = vrot.lane.b32.xlu1 %v10359_v3, %s10074_s30 }
  0x8c   : > { %1346 = vrot.lane.b32.xlu0 %v10354_v2, %s10074_s30  ;;  %1352 = vrot.lane.b32.xlu1 %v10362_v4, %s10074_s30 }
  0x90   : > { %1354 = vrot.lane.b32.xlu0 %v10369_v6, %s10074_s30  ;;  %1356 = vrot.lane.b32.xlu1 %v10372_v7, %s10074_s30 }
  0x94   : > { %1358 = vrot.lane.b32.xlu0 %v10377_v8, %s10074_s30  ;;  %1360 = vrot.lane.b32.xlu1 %v10380_v9, %s10074_s30 }
  0x98   : > { %1362 = vrot.lane.b32.xlu0 %v10385_v10, %s10074_s30  ;;  %1680 = vrot.lane.b32.xlu1 %v10351_v1, %s10075_s27  ;;  %s10089_s30 = smov 120  }
  0x9c   : > { %1682 = vrot.lane.b32.xlu0 %v10359_v3, %s10075_s27  ;;  %1678 = vrot.lane.b32.xlu1 %v10354_v2, %s10075_s27 }
  0xa0   : > { %1684 = vrot.lane.b32.xlu0 %v10362_v4, %s10075_s27  ;;  %1686 = vrot.lane.b32.xlu1 %v10369_v6, %s10075_s27 }
  0xa4   : > { %1688 = vrot.lane.b32.xlu0 %v10372_v7, %s10075_s27  ;;  %1690 = vrot.lane.b32.xlu1 %v10377_v8, %s10075_s27 }
  0xa8   : > { %1692 = vrot.lane.b32.xlu0 %v10380_v9, %s10075_s27  ;;  %1694 = vrot.lane.b32.xlu1 %v10385_v10, %s10075_s27  ;;  %s10086_s27 = smov 24  }
  0xac   : > { %2012 = vrot.lane.b32.xlu0 %v10351_v1, %s10076_s26  ;;  %2014 = vrot.lane.b32.xlu1 %v10359_v3, %s10076_s26 }
  0xb0   : > { %2010 = vrot.lane.b32.xlu0 %v10354_v2, %s10076_s26  ;;  %2016 = vrot.lane.b32.xlu1 %v10362_v4, %s10076_s26 }
  0xb4   : > { %2018 = vrot.lane.b32.xlu0 %v10369_v6, %s10076_s26  ;;  %2020 = vrot.lane.b32.xlu1 %v10372_v7, %s10076_s26 }
  0xb8   : > { %2022 = vrot.lane.b32.xlu0 %v10377_v8, %s10076_s26  ;;  %2024 = vrot.lane.b32.xlu1 %v10380_v9, %s10076_s26 }
  0xbc   : > { %2026 = vrot.lane.b32.xlu0 %v10385_v10, %s10076_s26  ;;  %2344 = vrot.lane.b32.xlu1 %v10351_v1, %s10077_s9  ;;  %s10083_s26 = smov 42  }
  0xc0   : > { %2346 = vrot.lane.b32.xlu0 %v10359_v3, %s10077_s9  ;;  %2342 = vrot.lane.b32.xlu1 %v10354_v2, %s10077_s9 }
  0xc4   : > { %2348 = vrot.lane.b32.xlu0 %v10362_v4, %s10077_s9  ;;  %2350 = vrot.lane.b32.xlu1 %v10369_v6, %s10077_s9 }
  0xc8   : > { %2352 = vrot.lane.b32.xlu0 %v10372_v7, %s10077_s9  ;;  %2354 = vrot.lane.b32.xlu1 %v10377_v8, %s10077_s9 }
  0xcc   : > { %2356 = vrot.lane.b32.xlu0 %v10380_v9, %s10077_s9  ;;  %2358 = vrot.lane.b32.xlu1 %v10385_v10, %s10077_s9  ;;  %s10080_s9 = smov 60  }
  0xd0   : > { %2676 = vrot.lane.b32.xlu0 %v10351_v1, %s10078_s4  ;;  %2678 = vrot.lane.b32.xlu1 %v10359_v3, %s10078_s4 }
  0xd4   : > { %2674 = vrot.lane.b32.xlu0 %v10354_v2, %s10078_s4  ;;  %2680 = vrot.lane.b32.xlu1 %v10362_v4, %s10078_s4 }
  0xd6   : > { %v405_v11 = vpop.permute.xlu0 %404  ;;  %v403_v12 = vpop.permute.xlu1 %402 }
  0xd7   : > { %v421_v17 = vsel %vm420_vm1, %v403_v12, %v405_v11 }
  0xd8   : > { %2682 = vrot.lane.b32.xlu0 %v10369_v6, %s10078_s4  ;;  %2684 = vrot.lane.b32.xlu1 %v10372_v7, %s10078_s4 }
  0xda   : > { %v407_v13 = vpop.permute.xlu0 %406  ;;  %v409_v14 = vpop.permute.xlu1 %408 }
  0xdb   : > { %v422_v15 = vsel %vm420_vm1, %v405_v11, %v407_v13  ;;  %v423_v21 = vsel %vm420_vm1, %v407_v13, %v409_v14 }
  0xdc   : > { %471 = vmatprep.subr.mxu0 %v422_v15  ;;  %2686 = vrot.lane.b32.xlu0 %v10377_v8, %s10078_s4 }
  0xdd   : > { %2688 = vrot.lane.b32.xlu1 %v10380_v9, %s10078_s4  ;;  %472 = vmatpush1.msra.mxu0 %v421_v17  ;;  %v9616_v17 = vld [vmem:[%s11777_s11 + $0x20] sm:$0xff] }
  0xde   : > { %v411_v18 = vpop.permute.xlu0 %410  ;;  %v413_v19 = vpop.permute.xlu1 %412  ;;  %9598 = vmatmul.mubr.msk.f32.vlgmr.msra.gmra.mxu0 %vm437_vm2, %v9597_v16 }
  0xdf   : > { %v424_v20 = vsel %vm420_vm1, %v409_v14, %v411_v18  ;;  %647 = vmatprep.mubr.f32.mxu0 %v10072_v5  ;;  %v425_v25 = vsel %vm420_vm1, %v411_v18, %v413_v19 }
  0xe0   : > { %2690 = vrot.lane.b32.xlu0 %v10385_v10, %s10078_s4  ;;  %542 = vmatprep.subr.mxu1 %v424_v20  ;;  %s10087_s4 = smov 23  }
  0xe1   : > { %3008 = vrot.lane.b32.xlu1 %v10351_v1, %s10079_s10  ;;  %543 = vmatpush1.msra.mxu1 %v423_v21 }
  0xe2   : > { %v415_v22 = vpop.permute.xlu0 %414  ;;  %v417_v23 = vpop.permute.xlu1 %416  ;;  %9599 = vmatmul.mubr.msk.f32.vlgmr.msra.gmra.mxu1 %vm437_vm2, %v9597_v16 }
  0xe3   : > { %v426_v24 = vsel %vm420_vm1, %v413_v19, %v415_v22  ;;  %718 = vmatprep.mubr.f32.mxu1 %v10072_v5  ;;  %v427_v30 = vsel %vm420_vm1, %v415_v22, %v417_v23 }
  0xe4   : > { %3010 = vrot.lane.b32.xlu0 %v10359_v3, %s10079_s10  ;;  %613 = vmatprep.subr.mxu0 %v426_v24 }
  0xe5   : > { %3006 = vrot.lane.b32.xlu1 %v10354_v2, %s10079_s10  ;;  %614 = vmatpush1.msra.mxu0 %v425_v25 }
  0xe6   : > { %v419_v26 = vpop.permute.xlu0 %418  ;;  %9600 = vmatmul.mubr.msk.f32.vlgmr.msra.gmra.mxu0 %vm437_vm2, %v9597_v16  ;;  %v1017_v27 = vpop.permute.xlu1 %1016  ;;  %758 = vmatprep.subr.mxu0 %v10351_v1 }
  0xe7   : > { %v428_v28 = vsel %vm420_vm1, %v417_v23, %v419_v26  ;;  %759 = vmatpush1.msra.mxu0 %v10354_v2  ;;  %792 = vmatprep.mubr.f32.mxu0 %v10072_v5  ;;  %vm5682_vm1 = vcmask 187392  }
  0xe8   : > { %3012 = vrot.lane.b32.xlu0 %v10362_v4, %s10079_s10  ;;  %684 = vmatprep.subr.mxu1 %v428_v28 }
  0xe9   : > { %3014 = vrot.lane.b32.xlu1 %v10369_v6, %s10079_s10  ;;  %685 = vmatpush1.msra.mxu1 %v427_v30 }
  0xea   : > { %v1019_v31 = vpop.permute.xlu0 %1018  ;;  %9601 = vmatmul.mubr.msk.f32.vlgmr.msra.gmra.mxu1 %vm437_vm2, %v9597_v16  ;;  %9602 = vmatmul.mubr.msk.f32.vlgmr.msra.gmra.mxu0 %vm437_vm2, %v390_v29  ;;  %v1015_v32 = vpop.permute.xlu1 %1014 }
  0xeb   : > { %900 = vmatprep.subr.mxu0 %v10372_v7  ;;  %829 = vmatprep.subr.mxu1 %v10362_v4  ;;  %v1034_v33 = vsel %vm1032_vm3, %v1017_v27, %v1019_v31  ;;  %v1033_v36 = vsel %vm1032_vm3, %v1015_v32, %v1017_v27 }
  0xec   : > { %901 = vmatpush1.msra.mxu0 %v10369_v6  ;;  %3016 = vrot.lane.b32.xlu0 %v10372_v7, %s10079_s10 }
  0xed   : > { %3018 = vrot.lane.b32.xlu1 %v10377_v8, %s10079_s10  ;;  %1082 = vmatprep.subr.mxu0 %v1034_v33 }
  0xee   : > { %830 = vmatpush1.msra.mxu1 %v10359_v3  ;;  %863 = vmatprep.mubr.f32.mxu1 %v10072_v5  ;;  %v1021_v34 = vpop.permute.xlu0 %1020  ;;  %v1023_v35 = vpop.permute.xlu1 %1022 }
  0xef   : > { %934 = vmatprep.mubr.f32.mxu0 %v10072_v5  ;;  %9603 = vmatmul.mubr.msk.f32.vlgmr.msra.gmra.mxu1 %vm437_vm2, %v390_v29  ;;  %v1036_v37 = vsel %vm1032_vm3, %v1021_v34, %v1023_v35  ;;  %v1035_v41 = vsel %vm1032_vm3, %v1019_v31, %v1021_v34 }
  0xf0   : > { %9604 = vmatmul.mubr.msk.f32.vlgmr.msra.gmra.mxu0 %vm437_vm2, %v390_v29  ;;  %971 = vmatprep.subr.mxu1 %v10380_v9 }
  0xf1   : > { %1083 = vmatpush1.msra.mxu0 %v1033_v36  ;;  %972 = vmatpush1.msra.mxu1 %v10377_v8 }
  0xf2   : > { %3020 = vrot.lane.b32.xlu0 %v10380_v9, %s10079_s10  ;;  %3022 = vrot.lane.b32.xlu1 %v10385_v10, %s10079_s10  ;;  %v1025_v38 = vpop.permute.xlu0 %1024  ;;  %v1027_v39 = vpop.permute.xlu1 %1026  ;;  %s10085_s10 = smov 40  }
  0xf3   : > { %1153 = vmatprep.subr.mxu1 %v1036_v37  ;;  %1005 = vmatprep.mubr.f32.mxu1 %v10072_v5  ;;  %v1038_v40 = vsel %vm1032_vm3, %v1025_v38, %v1027_v39  ;;  %v1037_v43 = vsel %vm1032_vm3, %v1023_v35, %v1025_v38  ;;  %v9621_v35 = vld [vmem:[%s11777_s11 + $0x28] sm:$0xff] }
  0xf4   : > { %9605 = vmatmul.mubr.msk.f32.vlgmr.msra.gmra.mxu1 %vm437_vm2, %v390_v29  ;;  %1116 = vmatprep.mubr.f32.mxu0 %v10072_v5 }
  0xf5   : > { %1154 = vmatpush1.msra.mxu1 %v1035_v41  ;;  %1224 = vmatprep.subr.mxu0 %v1038_v40 }
  0xf6   : > { %3342 = vrot.lane.b32.xlu0 %v10362_v4, %s10080_s9  ;;  %3344 = vrot.lane.b32.xlu1 %v10369_v6, %s10080_s9  ;;  %v1029_v44 = vpop.permute.xlu0 %1028  ;;  %v1031_v45 = vpop.permute.xlu1 %1030 }
  0xf7   : > { %9607 = vmatmul.mubr.msk.f32.vlgmr.msra.gmra.mxu0 %vm437_vm2, %v9606_v42  ;;  %1187 = vmatprep.mubr.f32.mxu1 %v10072_v5  ;;  %v1040_v46 = vsel %vm1032_vm3, %v1029_v44, %v1031_v45  ;;  %v1039_v47 = vsel %vm1032_vm3, %v1027_v39, %v1029_v44  ;;  %vm6014_vm3 = vcmask 179200  }
  0xf8   : > { %1225 = vmatpush1.msra.mxu0 %v1037_v43  ;;  %1295 = vmatprep.subr.mxu1 %v1040_v46 }
  0xf9   : > { %9608 = vmatmul.mubr.msk.f32.vlgmr.msra.gmra.mxu1 %vm437_vm2, %v9606_v42  ;;  %1258 = vmatprep.mubr.f32.mxu0 %v10072_v5 }
  0xfa   : > { %3340 = vrot.lane.b32.xlu0 %v10359_v3, %s10080_s9  ;;  %3346 = vrot.lane.b32.xlu1 %v10372_v7, %s10080_s9  ;;  %v1349_v48 = vpop.permute.xlu0 %1348  ;;  %v1351_v49 = vpop.permute.xlu1 %1350 }
  0xfb   : > { %1296 = vmatpush1.msra.mxu1 %v1039_v47  ;;  %v1366_v50 = vsel %vm1364_vm4, %v1349_v48, %v1351_v49  ;;  %9609 = vmatmul.mubr.msk.f32.vlgmr.msra.gmra.mxu0 %vm437_vm2, %v9606_v42 }
  0xfc   : > { %1414 = vmatprep.subr.mxu0 %v1366_v50  ;;  %1329 = vmatprep.mubr.f32.mxu1 %v10072_v5 }
  0xfd   : > { %9610 = vmatmul.mubr.msk.f32.vlgmr.msra.gmra.mxu1 %vm437_vm2, %v9606_v42  ;;  %1448 = vmatprep.mubr.f32.mxu0 %v10072_v5 }
  0xfe   : > { %3348 = vrot.lane.b32.xlu0 %v10377_v8, %s10080_s9  ;;  %3350 = vrot.lane.b32.xlu1 %v10380_v9, %s10080_s9  ;;  %v1347_v51 = vpop.permute.xlu0 %1346  ;;  %v1353_v52 = vpop.permute.xlu1 %1352 }
  0xff   : > { %v1365_v54 = vsel %vm1364_vm4, %v1347_v51, %v1349_v48  ;;  %1519 = vmatprep.mubr.f32.mxu1 %v10072_v5  ;;  %v1367_v60 = vsel %vm1364_vm4, %v1351_v49, %v1353_v52 }
 0x100   : > { %1415 = vmatpush1.msra.mxu0 %v1365_v54 }
 0x101   : > { %9612 = vmatmul.mubr.msk.f32.vlgmr.msra.gmra.mxu0 %vm437_vm2, %v9611_v53 }
 0x102   : > { %3352 = vrot.lane.b32.xlu0 %v10385_v10, %s10080_s9  ;;  %3354 = vrot.lane.b32.xlu1 %v10534_v55, %s10080_s9  ;;  %v1355_v56 = vpop.permute.xlu0 %1354  ;;  %v1357_v57 = vpop.permute.xlu1 %1356 }
 0x103   : > { %v1368_v59 = vsel %vm1364_vm4, %v1353_v52, %v1355_v56  ;;  %1590 = vmatprep.mubr.f32.mxu0 %v10072_v5  ;;  %v1369_v0 = vsel %vm1364_vm4, %v1355_v56, %v1357_v57 }
 0x104   : > { %1485 = vmatprep.subr.mxu1 %v1368_v59 }
 0x105   : > { %1486 = vmatpush1.msra.mxu1 %v1367_v60 }
 0x106   : > { %3356 = vrot.lane.b32.xlu0 %v10543_v58, %s10080_s9  ;;  %3674 = vrot.lane.b32.xlu1 %v10362_v4, %s10081_s12  ;;  %v1359_v61 = vpop.permute.xlu0 %1358  ;;  %v1361_v62 = vpop.permute.xlu1 %1360  ;;  %s10090_s9 = smov 119  }
 0x107   : > { %v1370_v63 = vsel %vm1364_vm4, %v1357_v57, %v1359_v61  ;;  %9613 = vmatmul.mubr.msk.f32.vlgmr.msra.gmra.mxu1 %vm437_vm2, %v9611_v53  ;;  %v1371_v12 = vsel %vm1364_vm4, %v1359_v61, %v1361_v62 }
 0x108   : > { %1556 = vmatprep.subr.mxu0 %v1370_v63  ;;  %1661 = vmatprep.mubr.f32.mxu1 %v10072_v5 }
 0x109   : > { %1557 = vmatpush1.msra.mxu0 %v1369_v0 }
 0x10a   : > { %3676 = vrot.lane.b32.xlu0 %v10369_v6, %s10081_s12  ;;  %3672 = vrot.lane.b32.xlu1 %v10359_v3, %s10081_s12  ;;  %v1363_v1 = vpop.permute.xlu0 %1362  ;;  %v1681_v2 = vpop.permute.xlu1 %1680 }
 0x10b   : > { %v1372_v11 = vsel %vm1364_vm4, %v1361_v62, %v1363_v1  ;;  %9614 = vmatmul.mubr.msk.f32.vlgmr.msra.gmra.mxu0 %vm437_vm2, %v9611_v53  ;;  %vm6349_vm4 = vcmask 982016  }
 0x10c   : > { %1627 = vmatprep.subr.mxu1 %v1372_v11  ;;  %1780 = vmatprep.mubr.f32.mxu0 %v10072_v5 }
 0x10d   : > { %1628 = vmatpush1.msra.mxu1 %v1371_v12 }
 0x10e   : > { %3678 = vrot.lane.b32.xlu0 %v10372_v7, %s10081_s12  ;;  %3680 = vrot.lane.b32.xlu1 %v10377_v8, %s10081_s12  ;;  %v1683_v13 = vpop.permute.xlu0 %1682  ;;  %v1679_v14 = vpop.permute.xlu1 %1678 }
 0x10f   : > { %v1697_v15 = vsel %vm1696_vm5, %v1679_v14, %v1681_v2  ;;  %v1698_v16 = vsel %vm1696_vm5, %v1681_v2, %v1683_v13  ;;  %9615 = vmatmul.mubr.msk.f32.vlgmr.msra.gmra.mxu1 %vm437_vm2, %v9611_v53  ;;  %v9626_v53 = vld [vmem:[%s11777_s11 + $0x30] sm:$0xff] }
 0x110   : > { %1746 = vmatprep.subr.mxu0 %v1698_v16  ;;  %1851 = vmatprep.mubr.f32.mxu1 %v10072_v5 }
 0x111   : > { %1747 = vmatpush1.msra.mxu0 %v1697_v15 }
 0x112   : > { %3682 = vrot.lane.b32.xlu0 %v10380_v9, %s10081_s12  ;;  %3684 = vrot.lane.b32.xlu1 %v10385_v10, %s10081_s12  ;;  %v1685_v18 = vpop.permute.xlu0 %1684  ;;  %v1687_v19 = vpop.permute.xlu1 %1686 }
 0x113   : > { %v1700_v20 = vsel %vm1696_vm5, %v1685_v18, %v1687_v19  ;;  %v1699_v21 = vsel %vm1696_vm5, %v1683_v13, %v1685_v18  ;;  %9617 = vmatmul.mubr.msk.f32.vlgmr.msra.gmra.mxu0 %vm437_vm2, %v9616_v17 }
 0x114   : > { %1817 = vmatprep.subr.mxu1 %v1700_v20  ;;  %1922 = vmatprep.mubr.f32.mxu0 %v10072_v5 }
 0x115   : > { %1818 = vmatpush1.msra.mxu1 %v1699_v21 }
 0x116   : > { %3686 = vrot.lane.b32.xlu0 %v10534_v55, %s10081_s12  ;;  %3688 = vrot.lane.b32.xlu1 %v10543_v58, %s10081_s12  ;;  %v1689_v22 = vpop.permute.xlu0 %1688  ;;  %v1691_v23 = vpop.permute.xlu1 %1690  ;;  %s10091_s12 = smov 118  }
 0x117   : > { %v1702_v24 = vsel %vm1696_vm5, %v1689_v22, %v1691_v23  ;;  %v1701_v25 = vsel %vm1696_vm5, %v1687_v19, %v1689_v22  ;;  %9618 = vmatmul.mubr.msk.f32.vlgmr.msra.gmra.mxu1 %vm437_vm2, %v9616_v17 }
 0x118   : > { %1888 = vmatprep.subr.mxu0 %v1702_v24  ;;  %1993 = vmatprep.mubr.f32.mxu1 %v10072_v5 }
 0x119   : > { %1889 = vmatpush1.msra.mxu0 %v1701_v25 }
 0x11a   : > { %4006 = vrot.lane.b32.xlu0 %v10362_v4, %s10082_s24  ;;  %4008 = vrot.lane.b32.xlu1 %v10369_v6, %s10082_s24  ;;  %v1693_v26 = vpop.permute.xlu0 %1692  ;;  %v1695_v27 = vpop.permute.xlu1 %1694 }
 0x11b   : > { %v1704_v28 = vsel %vm1696_vm5, %v1693_v26, %v1695_v27  ;;  %v1703_v29 = vsel %vm1696_vm5, %v1691_v23, %v1693_v26  ;;  %9619 = vmatmul.mubr.msk.f32.vlgmr.msra.gmra.mxu0 %vm437_vm2, %v9616_v17  ;;  %vm6681_vm5 = vcmask 973824  }
 0x11c   : > { %1959 = vmatprep.subr.mxu1 %v1704_v28  ;;  %2112 = vmatprep.mubr.f32.mxu0 %v10072_v5 }
 0x11d   : > { %1960 = vmatpush1.msra.mxu1 %v1703_v29 }
 0x11e   : > { %4004 = vrot.lane.b32.xlu0 %v10359_v3, %s10082_s24  ;;  %4010 = vrot.lane.b32.xlu1 %v10372_v7, %s10082_s24  ;;  %v2013_v30 = vpop.permute.xlu0 %2012  ;;  %v2015_v31 = vpop.permute.xlu1 %2014 }
 0x11f   : > { %v2030_v32 = vsel %vm2028_vm6, %v2013_v30, %v2015_v31  ;;  %9620 = vmatmul.mubr.msk.f32.vlgmr.msra.gmra.mxu1 %vm437_vm2, %v9616_v17  ;;  %v9631_v17 = vld [vmem:[%s11777_s11 + $0x38] sm:$0xff] }
 0x120   : > { %2078 = vmatprep.subr.mxu0 %v2030_v32  ;;  %2183 = vmatprep.mubr.f32.mxu1 %v10072_v5 }
 0x122   : > { %4012 = vrot.lane.b32.xlu0 %v10377_v8, %s10082_s24  ;;  %4014 = vrot.lane.b32.xlu1 %v10380_v9, %s10082_s24  ;;  %v2011_v33 = vpop.permute.xlu0 %2010  ;;  %v2017_v34 = vpop.permute.xlu1 %2016 }
 0x123   : > { %v2029_v36 = vsel %vm2028_vm6, %v2011_v33, %v2013_v30  ;;  %v2031_v40 = vsel %vm2028_vm6, %v2015_v31, %v2017_v34 }
 0x124   : > { %2079 = vmatpush1.msra.mxu0 %v2029_v36 }
 0x125   : > { %9622 = vmatmul.mubr.msk.f32.vlgmr.msra.gmra.mxu0 %vm437_vm2, %v9621_v35 }
 0x126   : > { %4016 = vrot.lane.b32.xlu0 %v10385_v10, %s10082_s24  ;;  %4018 = vrot.lane.b32.xlu1 %v10534_v55, %s10082_s24  ;;  %v2019_v37 = vpop.permute.xlu0 %2018  ;;  %v2021_v38 = vpop.permute.xlu1 %2020 }
 0x127   : > { %v2032_v39 = vsel %vm2028_vm6, %v2017_v34, %v2019_v37  ;;  %2254 = vmatprep.mubr.f32.mxu0 %v10072_v5  ;;  %v2033_v44 = vsel %vm2028_vm6, %v2019_v37, %v2021_v38 }
 0x128   : > { %2149 = vmatprep.subr.mxu1 %v2032_v39 }
 0x129   : > { %2150 = vmatpush1.msra.mxu1 %v2031_v40 }
 0x12a   : > { %4020 = vrot.lane.b32.xlu0 %v10543_v58, %s10082_s24  ;;  %4338 = vrot.lane.b32.xlu1 %v10362_v4, %s10083_s26  ;;  %v2023_v41 = vpop.permute.xlu0 %2022  ;;  %v2025_v42 = vpop.permute.xlu1 %2024  ;;  %s10092_s24 = smov 102  }
 0x12b   : > { %v2034_v43 = vsel %vm2028_vm6, %v2021_v38, %v2023_v41  ;;  %9623 = vmatmul.mubr.msk.f32.vlgmr.msra.gmra.mxu1 %vm437_vm2, %v9621_v35  ;;  %v2035_v48 = vsel %vm2028_vm6, %v2023_v41, %v2025_v42 }
 0x12c   : > { %2220 = vmatprep.subr.mxu0 %v2034_v43  ;;  %2325 = vmatprep.mubr.f32.mxu1 %v10072_v5 }
 0x12d   : > { %2221 = vmatpush1.msra.mxu0 %v2033_v44 }
 0x12e   : > { %4340 = vrot.lane.b32.xlu0 %v10369_v6, %s10083_s26  ;;  %4336 = vrot.lane.b32.xlu1 %v10359_v3, %s10083_s26  ;;  %v2027_v45 = vpop.permute.xlu0 %2026  ;;  %v2345_v46 = vpop.permute.xlu1 %2344 }
 0x12f   : > { %v2036_v47 = vsel %vm2028_vm6, %v2025_v42, %v2027_v45  ;;  %9624 = vmatmul.mubr.msk.f32.vlgmr.msra.gmra.mxu0 %vm437_vm2, %v9621_v35  ;;  %vm7013_vm6 = vcmask 965632  }
 0x130   : > { %2291 = vmatprep.subr.mxu1 %v2036_v47  ;;  %2444 = vmatprep.mubr.f32.mxu0 %v10072_v5 }
 0x131   : > { %2292 = vmatpush1.msra.mxu1 %v2035_v48 }
 0x132   : > { %4342 = vrot.lane.b32.xlu0 %v10372_v7, %s10083_s26  ;;  %4344 = vrot.lane.b32.xlu1 %v10377_v8, %s10083_s26  ;;  %v2347_v49 = vpop.permute.xlu0 %2346  ;;  %v2343_v50 = vpop.permute.xlu1 %2342 }
 0x133   : > { %v2361_v51 = vsel %vm2360_vm7, %v2343_v50, %v2345_v46  ;;  %v2362_v52 = vsel %vm2360_vm7, %v2345_v46, %v2347_v49  ;;  %9625 = vmatmul.mubr.msk.f32.vlgmr.msra.gmra.mxu1 %vm437_vm2, %v9621_v35  ;;  %v9636_v35 = vld [vmem:[%s11777_s11 + $0x40] sm:$0xff] }
 0x134   : > { %2410 = vmatprep.subr.mxu0 %v2362_v52  ;;  %2515 = vmatprep.mubr.f32.mxu1 %v10072_v5 }
 0x135   : > { %2411 = vmatpush1.msra.mxu0 %v2361_v51 }
 0x136   : > { %4346 = vrot.lane.b32.xlu0 %v10380_v9, %s10083_s26  ;;  %4348 = vrot.lane.b32.xlu1 %v10385_v10, %s10083_s26  ;;  %v2349_v54 = vpop.permute.xlu0 %2348  ;;  %v2351_v56 = vpop.permute.xlu1 %2350 }
 0x137   : > { %v2364_v57 = vsel %vm2360_vm7, %v2349_v54, %v2351_v56  ;;  %v2363_v59 = vsel %vm2360_vm7, %v2347_v49, %v2349_v54  ;;  %9627 = vmatmul.mubr.msk.f32.vlgmr.msra.gmra.mxu0 %vm437_vm2, %v9626_v53  ;;  %v9641_v54 = vld [vmem:[%s11777_s11 + $0x48] sm:$0xff] }
 0x138   : > { %2481 = vmatprep.subr.mxu1 %v2364_v57  ;;  %2586 = vmatprep.mubr.f32.mxu0 %v10072_v5 }
 0x139   : > { %2482 = vmatpush1.msra.mxu1 %v2363_v59 }
 0x13a   : > { %4350 = vrot.lane.b32.xlu0 %v10534_v55, %s10083_s26  ;;  %4352 = vrot.lane.b32.xlu1 %v10543_v58, %s10083_s26  ;;  %v2353_v60 = vpop.permute.xlu0 %2352  ;;  %v2355_v61 = vpop.permute.xlu1 %2354  ;;  %s10093_s26 = smov 101  }
 0x13b   : > { %v2366_v62 = vsel %vm2360_vm7, %v2353_v60, %v2355_v61  ;;  %v2365_v63 = vsel %vm2360_vm7, %v2351_v56, %v2353_v60  ;;  %9628 = vmatmul.mubr.msk.f32.vlgmr.msra.gmra.mxu1 %vm437_vm2, %v9626_v53 }
 0x13c   : > { %2552 = vmatprep.subr.mxu0 %v2366_v62  ;;  %2657 = vmatprep.mubr.f32.mxu1 %v10072_v5 }
 0x13d   : > { %2553 = vmatpush1.msra.mxu0 %v2365_v63 }
 0x13e   : > { %4670 = vrot.lane.b32.xlu0 %v10362_v4, %s10084_s18  ;;  %4672 = vrot.lane.b32.xlu1 %v10369_v6, %s10084_s18  ;;  %v2357_v0 = vpop.permute.xlu0 %2356  ;;  %v2359_v1 = vpop.permute.xlu1 %2358 }
 0x13f   : > { %v2368_v2 = vsel %vm2360_vm7, %v2357_v0, %v2359_v1  ;;  %v2367_v11 = vsel %vm2360_vm7, %v2355_v61, %v2357_v0  ;;  %9629 = vmatmul.mubr.msk.f32.vlgmr.msra.gmra.mxu0 %vm437_vm2, %v9626_v53  ;;  %vm7345_vm7 = vcmask 834560  }
 0x140   : > { %2623 = vmatprep.subr.mxu1 %v2368_v2  ;;  %2776 = vmatprep.mubr.f32.mxu0 %v10072_v5 }
 0x141   : > { %2624 = vmatpush1.msra.mxu1 %v2367_v11 }
 0x142   : > { %4668 = vrot.lane.b32.xlu0 %v10359_v3, %s10084_s18  ;;  %4674 = vrot.lane.b32.xlu1 %v10372_v7, %s10084_s18  ;;  %v2677_v12 = vpop.permute.xlu0 %2676  ;;  %v2679_v13 = vpop.permute.xlu1 %2678 }
 0x143   : > { %v2694_v14 = vsel %vm2692_vm8, %v2677_v12, %v2679_v13  ;;  %9630 = vmatmul.mubr.msk.f32.vlgmr.msra.gmra.mxu1 %vm437_vm2, %v9626_v53 }
 0x144   : > { %2742 = vmatprep.subr.mxu0 %v2694_v14  ;;  %2847 = vmatprep.mubr.f32.mxu1 %v10072_v5 }
 0x146   : > { %4676 = vrot.lane.b32.xlu0 %v10377_v8, %s10084_s18  ;;  %4678 = vrot.lane.b32.xlu1 %v10380_v9, %s10084_s18  ;;  %v2675_v15 = vpop.permute.xlu0 %2674  ;;  %v2681_v16 = vpop.permute.xlu1 %2680 }
 0x147   : > { %v2693_v18 = vsel %vm2692_vm8, %v2675_v15, %v2677_v12  ;;  %v2695_v22 = vsel %vm2692_vm8, %v2679_v13, %v2681_v16 }
 0x148   : > { %2743 = vmatpush1.msra.mxu0 %v2693_v18 }
 0x149   : > { %9632 = vmatmul.mubr.msk.f32.vlgmr.msra.gmra.mxu0 %vm437_vm2, %v9631_v17 }
 0x14a   : > { %4680 = vrot.lane.b32.xlu0 %v10385_v10, %s10084_s18  ;;  %4682 = vrot.lane.b32.xlu1 %v10534_v55, %s10084_s18  ;;  %v2683_v19 = vpop.permute.xlu0 %2682  ;;  %v2685_v20 = vpop.permute.xlu1 %2684 }
 0x14b   : > { %v2696_v21 = vsel %vm2692_vm8, %v2681_v16, %v2683_v19  ;;  %2918 = vmatprep.mubr.f32.mxu0 %v10072_v5  ;;  %v2697_v26 = vsel %vm2692_vm8, %v2683_v19, %v2685_v20  ;;  %v9873_v19 = vld [vmem:[%s10315_s15 + $0x18] sm:$0xff] }
 0x14c   : > { %2813 = vmatprep.subr.mxu1 %v2696_v21 }
 0x14d   : > { %2814 = vmatpush1.msra.mxu1 %v2695_v22 }
 0x14e   : > { %4684 = vrot.lane.b32.xlu0 %v10543_v58, %s10084_s18  ;;  %5002 = vrot.lane.b32.xlu1 %v10362_v4, %s10085_s10  ;;  %v2687_v23 = vpop.permute.xlu0 %2686  ;;  %s10094_s18 = smov 100  }
 0x14f   : > { %v2689_v24 = vpop.permute.xlu1 %2688  ;;  %v2698_v25 = vsel %vm2692_vm8, %v2685_v20, %v2687_v23  ;;  %9633 = vmatmul.mubr.msk.f32.vlgmr.msra.gmra.mxu1 %vm437_vm2, %v9631_v17  ;;  %v9874_v20 = vld [vmem:[%s10315_s15 + $0x20] sm:$0xff] }
 0x150   : > { %2884 = vmatprep.subr.mxu0 %v2698_v25  ;;  %2989 = vmatprep.mubr.f32.mxu1 %v10072_v5  ;;  %v2699_v30 = vsel %vm2692_vm8, %v2687_v23, %v2689_v24  ;;  %v9875_v25 = vld [vmem:[%s10315_s15 + $0x10] sm:$0xff] }
 0x151   : > { %2885 = vmatpush1.msra.mxu0 %v2697_v26  ;;  %v10823_v26 = vld [vmem:[%s10315_s15 + $0x28] sm:$0xff] }
 0x152   : > { %5004 = vrot.lane.b32.xlu0 %v10369_v6, %s10085_s10  ;;  %5000 = vrot.lane.b32.xlu1 %v10359_v3, %s10085_s10  ;;  %v2691_v27 = vpop.permute.xlu0 %2690 }
 0x153   : > { %v3009_v28 = vpop.permute.xlu1 %3008  ;;  %v2700_v29 = vsel %vm2692_vm8, %v2689_v24, %v2691_v27  ;;  %9634 = vmatmul.mubr.msk.f32.vlgmr.msra.gmra.mxu0 %vm437_vm2, %v9631_v17  ;;  %vm7677_vm8 = vcmask 826368  }
 0x154   : > { %2955 = vmatprep.subr.mxu1 %v2700_v29  ;;  %3108 = vmatprep.mubr.f32.mxu0 %v10072_v5 }
 0x155   : > { %2956 = vmatpush1.msra.mxu1 %v2699_v30  ;;  %v10831_v30 = vld [vmem:[%s10315_s15 + $0x30] sm:$0xff] }
 0x156   : > { %5006 = vrot.lane.b32.xlu0 %v10372_v7, %s10085_s10  ;;  %5008 = vrot.lane.b32.xlu1 %v10377_v8, %s10085_s10  ;;  %v3011_v31 = vpop.permute.xlu0 %3010 }
 0x157   : > { %v3007_v32 = vpop.permute.xlu1 %3006  ;;  %v3026_v33 = vsel %vm3024_vm9, %v3009_v28, %v3011_v31  ;;  %9635 = vmatmul.mubr.msk.f32.vlgmr.msra.gmra.mxu1 %vm437_vm2, %v9631_v17 }
 0x158   : > { %v3025_v34 = vsel %vm3024_vm9, %v3007_v32, %v3009_v28  ;;  %3074 = vmatprep.subr.mxu0 %v3026_v33  ;;  %3179 = vmatprep.mubr.f32.mxu1 %v10072_v5 }
 0x159   : > { %3075 = vmatpush1.msra.mxu0 %v3025_v34 }
 0x15a   : > { %5010 = vrot.lane.b32.xlu0 %v10380_v9, %s10085_s10  ;;  %5012 = vrot.lane.b32.xlu1 %v10385_v10, %s10085_s10  ;;  %v3013_v36 = vpop.permute.xlu0 %3012 }
 0x15b   : > { %v3015_v37 = vpop.permute.xlu1 %3014  ;;  %9637 = vmatmul.mubr.msk.f32.vlgmr.msra.gmra.mxu0 %vm437_vm2, %v9636_v35  ;;  %v3027_v39 = vsel %vm3024_vm9, %v3011_v31, %v3013_v36  ;;  %v10836_v31 = vld [vmem:[%s10315_s15 + $0x38] sm:$0xff] }
 0x15c   : > { %v3028_v38 = vsel %vm3024_vm9, %v3013_v36, %v3015_v37  ;;  %3250 = vmatprep.mubr.f32.mxu0 %v10072_v5  ;;  %v10846_v36 = vld [vmem:[%s10322_s17] sm:$0xff] }
 0x15d   : > { %3145 = vmatprep.subr.mxu1 %v3028_v38 }
 0x15e   : > { %5014 = vrot.lane.b32.xlu0 %v10534_v55, %s10085_s10  ;;  %5016 = vrot.lane.b32.xlu1 %v10543_v58, %s10085_s10  ;;  %v3017_v40 = vpop.permute.xlu0 %3016  ;;  %s10095_s10 = smov 84  }
 0x15f   : > { %3146 = vmatpush1.msra.mxu1 %v3027_v39  ;;  %v3019_v41 = vpop.permute.xlu1 %3018  ;;  %v3029_v43 = vsel %vm3024_vm9, %v3015_v37, %v3017_v40 }
 0x160   : > { %v3030_v42 = vsel %vm3024_vm9, %v3017_v40, %v3019_v41  ;;  %9638 = vmatmul.mubr.msk.f32.vlgmr.msra.gmra.mxu1 %vm437_vm2, %v9636_v35 }
 0x161   : > { %3216 = vmatprep.subr.mxu0 %v3030_v42  ;;  %3321 = vmatprep.mubr.f32.mxu1 %v10072_v5 }
 0x162   : > { %5334 = vrot.lane.b32.xlu0 %v10362_v4, %s10086_s27  ;;  %5336 = vrot.lane.b32.xlu1 %v10369_v6, %s10086_s27 }
 0x163   : > { %3217 = vmatpush1.msra.mxu0 %v3029_v43 }
 0x164   : > { %v3021_v44 = vpop.permute.xlu0 %3020  ;;  %v3023_v45 = vpop.permute.xlu1 %3022  ;;  %9639 = vmatmul.mubr.msk.f32.vlgmr.msra.gmra.mxu0 %vm437_vm2, %v9636_v35 }
 0x165   : > { %v3032_v46 = vsel %vm3024_vm9, %v3021_v44, %v3023_v45  ;;  %v3031_v47 = vsel %vm3024_vm9, %v3019_v41, %v3021_v44  ;;  %3442 = vmatprep.mubr.f32.mxu0 %v10072_v5  ;;  %vm8009_vm9 = vcmask 818176  }
 0x166   : > { %5332 = vrot.lane.b32.xlu0 %v10359_v3, %s10086_s27  ;;  %5338 = vrot.lane.b32.xlu1 %v10372_v7, %s10086_s27 }
 0x167   : > { %3287 = vmatprep.subr.mxu1 %v3032_v46 }
 0x168   : > { %3288 = vmatpush1.msra.mxu1 %v3031_v47  ;;  %v3343_v48 = vpop.permute.xlu0 %3342  ;;  %v3345_v49 = vpop.permute.xlu1 %3344 }
 0x169   : > { %v3360_v50 = vsel %vm3358_vm10, %v3343_v48, %v3345_v49  ;;  %9640 = vmatmul.mubr.msk.f32.vlgmr.msra.gmra.mxu1 %vm437_vm2, %v9636_v35  ;;  %v9651_v35 = vld [vmem:[%s11777_s11 + $0x58] sm:$0xff] }
 0x16a   : > { %5340 = vrot.lane.b32.xlu0 %v10377_v8, %s10086_s27  ;;  %5342 = vrot.lane.b32.xlu1 %v10380_v9, %s10086_s27 }
 0x16b   : > { %3408 = vmatprep.subr.mxu0 %v3360_v50  ;;  %3513 = vmatprep.mubr.f32.mxu1 %v10072_v5 }
 0x16c   : > { %v3341_v51 = vpop.permute.xlu0 %3340  ;;  %v3347_v52 = vpop.permute.xlu1 %3346 }
 0x16d   : > { %v3359_v53 = vsel %vm3358_vm10, %v3341_v51, %v3343_v48  ;;  %v3361_v60 = vsel %vm3358_vm10, %v3345_v49, %v3347_v52  ;;  %v10876_v49 = vld [vmem:[%s10322_s17 + $0x18] sm:$0xff] }
 0x16e   : > { %5344 = vrot.lane.b32.xlu0 %v10385_v10, %s10086_s27  ;;  %5346 = vrot.lane.b32.xlu1 %v10534_v55, %s10086_s27 }
 0x16f   : > { %3409 = vmatpush1.msra.mxu0 %v3359_v53 }
 0x170   : > { %v3349_v56 = vpop.permute.xlu0 %3348  ;;  %v3351_v57 = vpop.permute.xlu1 %3350  ;;  %9642 = vmatmul.mubr.msk.f32.vlgmr.msra.gmra.mxu0 %vm437_vm2, %v9641_v54 }
 0x171   : > { %v3362_v59 = vsel %vm3358_vm10, %v3347_v52, %v3349_v56  ;;  %3584 = vmatprep.mubr.f32.mxu0 %v10072_v5  ;;  %v3363_v0 = vsel %vm3358_vm10, %v3349_v56, %v3351_v57  ;;  %v10890_v56 = vld [vmem:[%s10322_s17 + $0x20] sm:$0xff] }
 0x172   : > { %5348 = vrot.lane.b32.xlu0 %v10543_v58, %s10086_s27  ;;  %5666 = vrot.lane.b32.xlu1 %v10362_v4, %s10087_s4  ;;  %s10096_s27 = smov 83  }
 0x173   : > { %3479 = vmatprep.subr.mxu1 %v3362_v59 }
 0x174   : > { %3480 = vmatpush1.msra.mxu1 %v3361_v60  ;;  %v3353_v61 = vpop.permute.xlu0 %3352  ;;  %v3355_v62 = vpop.permute.xlu1 %3354 }
 0x175   : > { %v3364_v63 = vsel %vm3358_vm10, %v3351_v57, %v3353_v61  ;;  %9643 = vmatmul.mubr.msk.f32.vlgmr.msra.gmra.mxu1 %vm437_vm2, %v9641_v54  ;;  %v10893_v57 = vld [vmem:[%s10322_s17 + $0x28] sm:$0xff] }
 0x176   : > { %5668 = vrot.lane.b32.xlu0 %v10369_v6, %s10087_s4  ;;  %5664 = vrot.lane.b32.xlu1 %v10359_v3, %s10087_s4  ;;  %v3365_v3 = vsel %vm3358_vm10, %v3353_v61, %v3355_v62 }
 0x177   : > { %3550 = vmatprep.subr.mxu0 %v3364_v63  ;;  %3655 = vmatprep.mubr.f32.mxu1 %v10072_v5 }
 0x178   : > { %3551 = vmatpush1.msra.mxu0 %v3363_v0  ;;  %v3357_v4 = vpop.permute.xlu0 %3356  ;;  %v3675_v1 = vpop.permute.xlu1 %3674 }
 0x179   : > { %v3366_v2 = vsel %vm3358_vm10, %v3355_v62, %v3357_v4  ;;  %9644 = vmatmul.mubr.msk.f32.vlgmr.msra.gmra.mxu0 %vm437_vm2, %v9641_v54  ;;  %vm8341_vm10 = vcmask 687104  }
 0x17a   : > { %5670 = vrot.lane.b32.xlu0 %v10372_v7, %s10087_s4  ;;  %5672 = vrot.lane.b32.xlu1 %v10377_v8, %s10087_s4  ;;  %v9646_v7 = vld [vmem:[%s11777_s11 + $0x50] sm:$0xff] }
 0x17b   : > { %3621 = vmatprep.subr.mxu1 %v3366_v2  ;;  %3774 = vmatprep.mubr.f32.mxu0 %v10072_v5 }
 0x17c   : > { %3622 = vmatpush1.msra.mxu1 %v3365_v3  ;;  %v3677_v6 = vpop.permute.xlu0 %3676  ;;  %v3673_v11 = vpop.permute.xlu1 %3672 }
 0x17d   : > { %v3691_v12 = vsel %vm3690_vm11, %v3673_v11, %v3675_v1  ;;  %v3692_v13 = vsel %vm3690_vm11, %v3675_v1, %v3677_v6  ;;  %9645 = vmatmul.mubr.msk.f32.vlgmr.msra.gmra.mxu1 %vm437_vm2, %v9641_v54  ;;  %v9656_v54 = vld [vmem:[%s11777_s11 + $0x60] sm:$0xff] }
 0x17e   : > { %5674 = vrot.lane.b32.xlu0 %v10380_v9, %s10087_s4  ;;  %5676 = vrot.lane.b32.xlu1 %v10385_v10, %s10087_s4 }
 0x17f   : > { %3740 = vmatprep.subr.mxu0 %v3692_v13  ;;  %3845 = vmatprep.mubr.f32.mxu1 %v10072_v5 }
 0x180   : > { %3741 = vmatpush1.msra.mxu0 %v3691_v12  ;;  %v3679_v8 = vpop.permute.xlu0 %3678  ;;  %v3681_v14 = vpop.permute.xlu1 %3680 }
 0x181   : > { %v3694_v15 = vsel %vm3690_vm11, %v3679_v8, %v3681_v14  ;;  %v3693_v16 = vsel %vm3690_vm11, %v3677_v6, %v3679_v8  ;;  %9647 = vmatmul.mubr.msk.f32.vlgmr.msra.gmra.mxu0 %vm437_vm2, %v9646_v7 }
 0x182   : > { %5678 = vrot.lane.b32.xlu0 %v10534_v55, %s10087_s4  ;;  %5680 = vrot.lane.b32.xlu1 %v10543_v58, %s10087_s4  ;;  %s10097_s4 = smov 82  }
 0x183   : > { %3811 = vmatprep.subr.mxu1 %v3694_v15  ;;  %3916 = vmatprep.mubr.f32.mxu0 %v10072_v5 }
 0x184   : > { %3812 = vmatpush1.msra.mxu1 %v3693_v16  ;;  %v3683_v9 = vpop.permute.xlu0 %3682  ;;  %v3685_v10 = vpop.permute.xlu1 %3684 }
 0x185   : > { %v3696_v17 = vsel %vm3690_vm11, %v3683_v9, %v3685_v10  ;;  %v3695_v18 = vsel %vm3690_vm11, %v3681_v14, %v3683_v9  ;;  %9648 = vmatmul.mubr.msk.f32.vlgmr.msra.gmra.mxu1 %vm437_vm2, %v9646_v7 }
 0x186   : > { %5998 = vrot.lane.b32.xlu0 %v9873_v19, %s10088_s23  ;;  %6000 = vrot.lane.b32.xlu1 %v9874_v20, %s10088_s23  ;;  %v10931_v20 = vld [vmem:[%s11777_s11 + $0x68] sm:$0xff] }
 0x187   : > { %3882 = vmatprep.subr.mxu0 %v3696_v17  ;;  %3987 = vmatprep.mubr.f32.mxu1 %v10072_v5 }
 0x188   : > { %3883 = vmatpush1.msra.mxu0 %v3695_v18  ;;  %v3687_v21 = vpop.permute.xlu0 %3686  ;;  %v3689_v22 = vpop.permute.xlu1 %3688 }
 0x189   : > { %v3698_v23 = vsel %vm3690_vm11, %v3687_v21, %v3689_v22  ;;  %v3697_v24 = vsel %vm3690_vm11, %v3685_v10, %v3687_v21  ;;  %9649 = vmatmul.mubr.msk.f32.vlgmr.msra.gmra.mxu0 %vm437_vm2, %v9646_v7  ;;  %vm8673_vm11 = vcmask 678912  }
 0x18a   : > { %5996 = vrot.lane.b32.xlu0 %v9875_v25, %s10088_s23  ;;  %6002 = vrot.lane.b32.xlu1 %v10823_v26, %s10088_s23 }
 0x18b   : > { %3953 = vmatprep.subr.mxu1 %v3698_v23  ;;  %4106 = vmatprep.mubr.f32.mxu0 %v10072_v5 }
 0x18c   : > { %3954 = vmatpush1.msra.mxu1 %v3697_v24  ;;  %v4007_v27 = vpop.permute.xlu0 %4006  ;;  %v4009_v28 = vpop.permute.xlu1 %4008 }
 0x18d   : > { %v4024_v29 = vsel %vm4022_vm12, %v4007_v27, %v4009_v28  ;;  %9650 = vmatmul.mubr.msk.f32.vlgmr.msra.gmra.mxu1 %vm437_vm2, %v9646_v7 }
 0x18e   : > { %6004 = vrot.lane.b32.xlu0 %v10831_v30, %s10088_s23  ;;  %6006 = vrot.lane.b32.xlu1 %v10836_v31, %s10088_s23 }
 0x18f   : > { %4072 = vmatprep.subr.mxu0 %v4024_v29  ;;  %4177 = vmatprep.mubr.f32.mxu1 %v10072_v5 }
 0x190   : > { %v4005_v32 = vpop.permute.xlu0 %4004  ;;  %v4011_v33 = vpop.permute.xlu1 %4010 }
 0x191   : > { %v4023_v34 = vsel %vm4022_vm12, %v4005_v32, %v4007_v27  ;;  %v4025_v40 = vsel %vm4022_vm12, %v4009_v28, %v4011_v33 }
 0x192   : > { %6008 = vrot.lane.b32.xlu0 %v10846_v36, %s10088_s23  ;;  %6010 = vrot.lane.b32.xlu1 %v10534_v55, %s10088_s23 }
 0x193   : > { %4073 = vmatpush1.msra.mxu0 %v4023_v34 }
 0x194   : > { %v4013_v37 = vpop.permute.xlu0 %4012  ;;  %v4015_v38 = vpop.permute.xlu1 %4014  ;;  %9652 = vmatmul.mubr.msk.f32.vlgmr.msra.gmra.mxu0 %vm437_vm2, %v9651_v35 }
 0x195   : > { %v4026_v39 = vsel %vm4022_vm12, %v4011_v33, %v4013_v37  ;;  %4248 = vmatprep.mubr.f32.mxu0 %v10072_v5  ;;  %v4027_v44 = vsel %vm4022_vm12, %v4013_v37, %v4015_v38 }
 0x196   : > { %6012 = vrot.lane.b32.xlu0 %v10543_v58, %s10088_s23  ;;  %6333 = vrot.lane.b32.xlu1 %v10831_v30, %s10089_s30 }
 0x197   : > { %4143 = vmatprep.subr.mxu1 %v4026_v39 }
 0x198   : > { %4144 = vmatpush1.msra.mxu1 %v4025_v40  ;;  %v4017_v41 = vpop.permute.xlu0 %4016  ;;  %v4019_v42 = vpop.permute.xlu1 %4018 }
 0x199   : > { %v4028_v43 = vsel %vm4022_vm12, %v4015_v38, %v4017_v41  ;;  %9653 = vmatmul.mubr.msk.f32.vlgmr.msra.gmra.mxu1 %vm437_vm2, %v9651_v35  ;;  %v4029_v48 = vsel %vm4022_vm12, %v4017_v41, %v4019_v42 }
 0x19a   : > { %6335 = vrot.lane.b32.xlu0 %v10836_v31, %s10089_s30  ;;  %6331 = vrot.lane.b32.xlu1 %v10823_v26, %s10089_s30 }
 0x19b   : > { %4214 = vmatprep.subr.mxu0 %v4028_v43  ;;  %4319 = vmatprep.mubr.f32.mxu1 %v10072_v5 }
 0x19c   : > { %4215 = vmatpush1.msra.mxu0 %v4027_v44  ;;  %v4021_v45 = vpop.permute.xlu0 %4020  ;;  %v4339_v46 = vpop.permute.xlu1 %4338 }
 0x19d   : > { %v4030_v47 = vsel %vm4022_vm12, %v4019_v42, %v4021_v45  ;;  %9654 = vmatmul.mubr.msk.f32.vlgmr.msra.gmra.mxu0 %vm437_vm2, %v9651_v35  ;;  %vm9005_vm12 = vcmask 670720  }
 0x19e   : > { %6337 = vrot.lane.b32.xlu0 %v10846_v36, %s10089_s30  ;;  %6339 = vrot.lane.b32.xlu1 %v10534_v55, %s10089_s30  ;;  %v507_v12 = vpop.f32.mrf.mxu0 }
 0x19f   : > { %4285 = vmatprep.subr.mxu1 %v4030_v47  ;;  %4438 = vmatprep.mubr.f32.mxu0 %v10072_v5 }
 0x1a0   : > { %4286 = vmatpush1.msra.mxu1 %v4029_v48  ;;  %v4341_v50 = vpop.permute.xlu0 %4340  ;;  %v4337_v51 = vpop.permute.xlu1 %4336 }
 0x1a1   : > { %v4355_v52 = vsel %vm4354_vm13, %v4337_v51, %v4339_v46  ;;  %v4356_v53 = vsel %vm4354_vm13, %v4339_v46, %v4341_v50  ;;  %9655 = vmatmul.mubr.msk.f32.vlgmr.msra.gmra.mxu1 %vm437_vm2, %v9651_v35  ;;  %v509_v13 = vpop.f32.mrf.mxu0 }
 0x1a2   : > { %6341 = vrot.lane.b32.xlu0 %v10543_v58, %s10089_s30  ;;  %6343 = vrot.lane.b32.xlu1 %v10876_v49, %s10089_s30  ;;  %v578_v15 = vpop.f32.mrf.mxu1 }
 0x1a3   : > { %4404 = vmatprep.subr.mxu0 %v4356_v53  ;;  %4509 = vmatprep.mubr.f32.mxu1 %v10072_v5 }
 0x1a4   : > { %4405 = vmatpush1.msra.mxu0 %v4355_v52  ;;  %v4343_v59 = vpop.permute.xlu0 %4342  ;;  %v4345_v60 = vpop.permute.xlu1 %4344 }
 0x1a5   : > { %v4358_v61 = vsel %vm4354_vm13, %v4343_v59, %v4345_v60  ;;  %v4357_v62 = vsel %vm4354_vm13, %v4341_v50, %v4343_v59  ;;  %9657 = vmatmul.mubr.msk.f32.vlgmr.msra.gmra.mxu0 %vm437_vm2, %v9656_v54  ;;  %v580_v9 = vpop.f32.mrf.mxu1 }
 0x1a6   : > { %6345 = vrot.lane.b32.xlu0 %v10890_v56, %s10089_s30  ;;  %6347 = vrot.lane.b32.xlu1 %v10893_v57, %s10089_s30  ;;  %v649_v16 = vpop.f32.mrf.mxu0 }
 0x1a7   : > { %4475 = vmatprep.subr.mxu1 %v4358_v61  ;;  %4580 = vmatprep.mubr.f32.mxu0 %v10072_v5 }
 0x1a8   : > { %4476 = vmatpush1.msra.mxu1 %v4357_v62  ;;  %v4347_v63 = vpop.permute.xlu0 %4346  ;;  %v4349_v0 = vpop.permute.xlu1 %4348 }
 0x1a9   : > { %v4360_v4 = vsel %vm4354_vm13, %v4347_v63, %v4349_v0  ;;  %v4359_v1 = vsel %vm4354_vm13, %v4345_v60, %v4347_v63  ;;  %9658 = vmatmul.mubr.msk.f32.vlgmr.msra.gmra.mxu1 %vm437_vm2, %v9656_v54  ;;  %v651_v10 = vpop.f32.mrf.mxu0  ;;  %v10961_v63 = vld [vmem:[%s10322_s17 + $0x8] sm:$0xff] }
 0x1aa   : > { %6665 = vrot.lane.b32.xlu0 %v10831_v30, %s10090_s9  ;;  %6667 = vrot.lane.b32.xlu1 %v10836_v31, %s10090_s9  ;;  %v720_v21 = vpop.f32.mrf.mxu1 }
 0x1ab   : > { %4546 = vmatprep.subr.mxu0 %v4360_v4  ;;  %4651 = vmatprep.mubr.f32.mxu1 %v10072_v5  ;;  %v794_v22 = vpop.f32.mrf.mxu0 }
 0x1ac   : > { %4547 = vmatpush1.msra.mxu0 %v4359_v1  ;;  %v4351_v2 = vpop.permute.xlu0 %4350  ;;  %v4353_v3 = vpop.permute.xlu1 %4352 }
 0x1ad   : > { %v4362_v6 = vsel %vm4354_vm13, %v4351_v2, %v4353_v3  ;;  %v4361_v11 = vsel %vm4354_vm13, %v4349_v0, %v4351_v2  ;;  %9659 = vmatmul.mubr.msk.f32.vlgmr.msra.gmra.mxu0 %vm437_vm2, %v9656_v54  ;;  %v796_v23 = vpop.f32.mrf.mxu0 }
 0x1ae   : > { %6663 = vrot.lane.b32.xlu0 %v10823_v26, %s10090_s9  ;;  %6669 = vrot.lane.b32.xlu1 %v10846_v36, %s10090_s9  ;;  %v797_v28 = vadd.f32 %v796_v23, %v509_v13 }
 0x1af   : > { %4617 = vmatprep.subr.mxu1 %v4362_v6  ;;  %4770 = vmatprep.mubr.f32.mxu0 %v10072_v5 }
 0x1b0   : > { %4618 = vmatpush1.msra.mxu1 %v4361_v11  ;;  %v4671_v7 = vpop.permute.xlu0 %4670  ;;  %v4673_v8 = vpop.permute.xlu1 %4672 }
 0x1b1   : > { %v4688_v14 = vsel %vm4686_vm14, %v4671_v7, %v4673_v8  ;;  %9660 = vmatmul.mubr.msk.f32.vlgmr.msra.gmra.mxu1 %vm437_vm2, %v9656_v54  ;;  %v936_v32 = vpop.f32.mrf.mxu0 }
 0x1b2   : > { %6671 = vrot.lane.b32.xlu0 %v10534_v55, %s10090_s9  ;;  %6673 = vrot.lane.b32.xlu1 %v10543_v58, %s10090_s9  ;;  %v795_v55 = vadd.f32 %v794_v22, %v507_v12  ;;  %v722_v58 = vpop.f32.mrf.mxu1  ;;  %v937_v34 = vadd.f32 %v936_v32, %v649_v16  ;;  %v10972_v16 = vld [vmem:[%s10322_s17 + $0x10] sm:$0xff] }
 0x1b3   : > { %4736 = vmatprep.subr.mxu0 %v4688_v14  ;;  %4841 = vmatprep.mubr.f32.mxu1 %v10072_v5  ;;  %v938_v38 = vpop.f32.mrf.mxu0 }
 0x1b4   : > { %v4669_v17 = vpop.permute.xlu0 %4668  ;;  %v4675_v18 = vpop.permute.xlu1 %4674  ;;  %v939_v43 = vadd.f32 %v938_v38, %v651_v10 }
 0x1b5   : > { %v4687_v19 = vsel %vm4686_vm14, %v4669_v17, %v4671_v7  ;;  %v865_v29 = vpop.f32.mrf.mxu1  ;;  %v4689_v35 = vsel %vm4686_vm14, %v4673_v8, %v4675_v18 }
 0x1b6   : > { %6675 = vrot.lane.b32.xlu0 %v10876_v49, %s10090_s9  ;;  %6677 = vrot.lane.b32.xlu1 %v10890_v56, %s10090_s9  ;;  %v866_v33 = vadd.f32 %v865_v29, %v578_v15 }
 0x1b7   : > { %4737 = vmatpush1.msra.mxu0 %v4687_v19  ;;  %v867_v37 = vpop.f32.mrf.mxu1  ;;  %v1118_v45 = vpop.f32.mrf.mxu0 }
 0x1b8   : > { %v4677_v24 = vpop.permute.xlu0 %4676  ;;  %v4679_v25 = vpop.permute.xlu1 %4678  ;;  %9662 = vmatmul.mubr.msk.f32.vlgmr.msra.gmra.mxu0 %vm437_vm2, %v10931_v20  ;;  %v868_v42 = vadd.f32 %v867_v37, %v580_v9  ;;  %v1336_v47 = vadd.f32 %v1118_v45, %v795_v55  ;;  %v9666_v9 = vld [vmem:[%s11777_s11 + $0x70] sm:$0xff] }
 0x1b9   : > { %v4690_v27 = vsel %vm4686_vm14, %v4675_v18, %v4677_v24  ;;  %4912 = vmatprep.mubr.f32.mxu0 %v10072_v5  ;;  %v1007_v44 = vpop.f32.mrf.mxu1  ;;  %v4691_v48 = vsel %vm4686_vm14, %v4677_v24, %v4679_v25  ;;  %v1120_v51 = vpop.f32.mrf.mxu0 }
 0x1ba   : > { %6679 = vrot.lane.b32.xlu0 %v10893_v57, %s10090_s9  ;;  %6997 = vrot.lane.b32.xlu1 %v10831_v30, %s10091_s12  ;;  %v1008_v46 = vadd.f32 %v1007_v44, %v720_v21  ;;  %v1337_v59 = vadd.f32 %v1120_v51, %v797_v28 }
 0x1bb   : > { %4807 = vmatprep.subr.mxu1 %v4690_v27  ;;  %v1009_v50 = vpop.f32.mrf.mxu1  ;;  %v1260_v62 = vpop.f32.mrf.mxu0 }
 0x1bc   : > { %4808 = vmatpush1.msra.mxu1 %v4689_v35  ;;  %v4681_v39 = vpop.permute.xlu0 %4680  ;;  %v4683_v40 = vpop.permute.xlu1 %4682  ;;  %v1010_v54 = vadd.f32 %v1009_v50, %v722_v58  ;;  %v1340_v4 = vadd.f32 %v1260_v62, %v937_v34 }
 0x1bd   : > { %v4692_v41 = vsel %vm4686_vm14, %v4679_v25, %v4681_v39  ;;  %9663 = vmatmul.mubr.msk.f32.vlgmr.msra.gmra.mxu1 %vm437_vm2, %v10931_v20  ;;  %v1189_v61 = vpop.f32.mrf.mxu1  ;;  %v4693_v1 = vsel %vm4686_vm14, %v4681_v39, %v4683_v40  ;;  %v1262_v3 = vpop.f32.mrf.mxu0 }
 0x1be   : > { %6999 = vrot.lane.b32.xlu0 %v10836_v31, %s10091_s12  ;;  %6995 = vrot.lane.b32.xlu1 %v10823_v26, %s10091_s12  ;;  %v1338_v0 = vadd.f32 %v1189_v61, %v866_v33  ;;  %v1341_v8 = vadd.f32 %v1262_v3, %v939_v43 }
 0x1bf   : > { %4878 = vmatprep.subr.mxu0 %v4692_v41  ;;  %4983 = vmatprep.mubr.f32.mxu1 %v10072_v5  ;;  %v1191_v2 = vpop.f32.mrf.mxu1 }
 0x1c0   : > { %4879 = vmatpush1.msra.mxu0 %v4691_v48  ;;  %v4685_v52 = vpop.permute.xlu0 %4684  ;;  %v5003_v53 = vpop.permute.xlu1 %5002  ;;  %v1339_v7 = vadd.f32 %v1191_v2, %v868_v42 }
 0x1c1   : > { %v4694_v60 = vsel %vm4686_vm14, %v4683_v40, %v4685_v52  ;;  %9664 = vmatmul.mubr.msk.f32.vlgmr.msra.gmra.mxu0 %vm437_vm2, %v10931_v20  ;;  %v1331_v14 = vpop.f32.mrf.mxu1  ;;  %v1450_v15 = vpop.f32.mrf.mxu0 }
 0x1c2   : > { %7001 = vrot.lane.b32.xlu0 %v10846_v36, %s10091_s12  ;;  %7003 = vrot.lane.b32.xlu1 %v10961_v63, %s10091_s12  ;;  %v1342_v10 = vadd.f32 %v1331_v14, %v1008_v46  ;;  %v1668_v17 = vadd.f32 %v1450_v15, %v1336_v47 }
 0x1c3   : > { %4949 = vmatprep.subr.mxu1 %v4694_v60  ;;  %5102 = vmatprep.mubr.f32.mxu0 %v10072_v5  ;;  %v1333_v18 = vpop.f32.mrf.mxu1  ;;  %v1452_v19 = vpop.f32.mrf.mxu0 }
 0x1c4   : > { %4950 = vmatpush1.msra.mxu1 %v4693_v1  ;;  %v5005_v6 = vpop.permute.xlu0 %5004  ;;  %v5001_v11 = vpop.permute.xlu1 %5000  ;;  %v1343_v58 = vadd.f32 %v1333_v18, %v1010_v54  ;;  %v1669_v23 = vadd.f32 %v1452_v19, %v1337_v59  ;;  %v9671_v1 = vld [vmem:[%s11777_s11 + $0x78] sm:$0xff] }
 0x1c5   : > { %v5019_v12 = vsel %vm5018_vm15, %v5001_v11, %v5003_v53  ;;  %v5020_v13 = vsel %vm5018_vm15, %v5003_v53, %v5005_v6  ;;  %9665 = vmatmul.mubr.msk.f32.vlgmr.msra.gmra.mxu1 %vm437_vm2, %v10931_v20 }
 0x1c6   : > { %7005 = vrot.lane.b32.xlu0 %v10972_v16, %s10091_s12  ;;  %7007 = vrot.lane.b32.xlu1 %v10876_v49, %s10091_s12 }
 0x1c7   : > { %5068 = vmatprep.subr.mxu0 %v5020_v13  ;;  %5173 = vmatprep.mubr.f32.mxu1 %v10072_v5  ;;  %v1521_v24 = vpop.f32.mrf.mxu1 }
 0x1c8   : > { %5069 = vmatpush1.msra.mxu0 %v5019_v12  ;;  %v5007_v20 = vpop.permute.xlu0 %5006  ;;  %v5009_v21 = vpop.permute.xlu1 %5008  ;;  %v1670_v25 = vadd.f32 %v1521_v24, %v1338_v0 }
 0x1c9   : > { %v5022_v22 = vsel %vm5018_vm15, %v5007_v20, %v5009_v21  ;;  %v5021_v55 = vsel %vm5018_vm15, %v5005_v6, %v5007_v20  ;;  %9667 = vmatmul.mubr.msk.f32.vlgmr.msra.gmra.mxu0 %vm437_vm2, %v9666_v9  ;;  %v1523_v28 = vpop.f32.mrf.mxu1 }
 0x1ca   : > { %7009 = vrot.lane.b32.xlu0 %v10890_v56, %s10091_s12  ;;  %7011 = vrot.lane.b32.xlu1 %v10893_v57, %s10091_s12  ;;  %v1671_v37 = vadd.f32 %v1523_v28, %v1339_v7 }
 0x1cb   : > { %5139 = vmatprep.subr.mxu1 %v5022_v22  ;;  %5244 = vmatprep.mubr.f32.mxu0 %v10072_v5  ;;  %v1592_v27 = vpop.f32.mrf.mxu0 }
 0x1cc   : > { %5140 = vmatpush1.msra.mxu1 %v5021_v55  ;;  %v5011_v29 = vpop.permute.xlu0 %5010  ;;  %v5013_v32 = vpop.permute.xlu1 %5012  ;;  %v1672_v33 = vadd.f32 %v1592_v27, %v1340_v4 }
 0x1cd   : > { %v5024_v34 = vsel %vm5018_vm15, %v5011_v29, %v5013_v32  ;;  %v5023_v35 = vsel %vm5018_vm15, %v5009_v21, %v5011_v29  ;;  %9668 = vmatmul.mubr.msk.f32.vlgmr.msra.gmra.mxu1 %vm437_vm2, %v9666_v9  ;;  %v1594_v38 = vpop.f32.mrf.mxu0 }
 0x1ce   : > { %7329 = vrot.lane.b32.xlu0 %v10831_v30, %s10092_s24  ;;  %7331 = vrot.lane.b32.xlu1 %v10836_v31, %s10092_s24  ;;  %v1673_v39 = vadd.f32 %v1594_v38, %v1341_v8 }
 0x1cf   : > { %5210 = vmatprep.subr.mxu0 %v5024_v34  ;;  %5315 = vmatprep.mubr.f32.mxu1 %v10072_v5  ;;  %v1663_v40 = vpop.f32.mrf.mxu1 }
 0x1d0   : > { %5211 = vmatpush1.msra.mxu0 %v5023_v35  ;;  %v5015_v41 = vpop.permute.xlu0 %5014  ;;  %v5017_v42 = vpop.permute.xlu1 %5016  ;;  %v1674_v43 = vadd.f32 %v1663_v40, %v1342_v10 }
 0x1d1   : > { %v5026_v44 = vsel %vm5018_vm15, %v5015_v41, %v5017_v42  ;;  %v5025_v45 = vsel %vm5018_vm15, %v5013_v32, %v5015_v41  ;;  %9669 = vmatmul.mubr.msk.f32.vlgmr.msra.gmra.mxu0 %vm437_vm2, %v9666_v9  ;;  %v1665_v46 = vpop.f32.mrf.mxu1 }
 0x1d2   : > { %7327 = vrot.lane.b32.xlu0 %v10823_v26, %s10092_s24  ;;  %7333 = vrot.lane.b32.xlu1 %v10846_v36, %s10092_s24  ;;  %v1675_v47 = vadd.f32 %v1665_v46, %v1343_v58 }
 0x1d3   : > { %5281 = vmatprep.subr.mxu1 %v5026_v44  ;;  %5434 = vmatprep.mubr.f32.mxu0 %v10072_v5  ;;  %v1782_v48 = vpop.f32.mrf.mxu0 }
 0x1d4   : > { %5282 = vmatpush1.msra.mxu1 %v5025_v45  ;;  %v5335_v50 = vpop.permute.xlu0 %5334  ;;  %v5337_v51 = vpop.permute.xlu1 %5336  ;;  %v2000_v52 = vadd.f32 %v1782_v48, %v1668_v17 }
 0x1d5   : > { %v5352_v53 = vsel %vm5350_vm0, %v5335_v50, %v5337_v51  ;;  %9670 = vmatmul.mubr.msk.f32.vlgmr.msra.gmra.mxu1 %vm437_vm2, %v9666_v9  ;;  %v1784_v54 = vpop.f32.mrf.mxu0 }
 0x1d6   : > { %7335 = vrot.lane.b32.xlu0 %v10961_v63, %s10092_s24  ;;  %7337 = vrot.lane.b32.xlu1 %v10972_v16, %s10092_s24  ;;  %v2001_v59 = vadd.f32 %v1784_v54, %v1669_v23 }
 0x1d7   : > { %5400 = vmatprep.subr.mxu0 %v5352_v53  ;;  %5505 = vmatprep.mubr.f32.mxu1 %v10072_v5  ;;  %v1853_v60 = vpop.f32.mrf.mxu1 }
 0x1d8   : > { %v5333_v61 = vpop.permute.xlu0 %5332  ;;  %v5339_v62 = vpop.permute.xlu1 %5338  ;;  %v11013_v0 = vadd.f32 %v1853_v60, %v1670_v25 }
 0x1d9   : > { %v5351_v4 = vsel %vm5350_vm0, %v5333_v61, %v5335_v50  ;;  %v1855_v2 = vpop.f32.mrf.mxu1  ;;  %v5353_v15 = vsel %vm5350_vm0, %v5337_v51, %v5339_v62 }
 0x1da   : > { %7339 = vrot.lane.b32.xlu0 %v10876_v49, %s10092_s24  ;;  %7341 = vrot.lane.b32.xlu1 %v10890_v56, %s10092_s24  ;;  %v11023_v3 = vadd.f32 %v1855_v2, %v1671_v37  ;;  %v9676_v37 = vld [vmem:[%s11777_s11 + $0x80] sm:$0xff] }
 0x1db   : > { %5401 = vmatpush1.msra.mxu0 %v5351_v4  ;;  %v1924_v6 = vpop.f32.mrf.mxu0 }
 0x1dc   : > { %v5341_v11 = vpop.permute.xlu0 %5340  ;;  %v5343_v12 = vpop.permute.xlu1 %5342  ;;  %9672 = vmatmul.mubr.msk.f32.vlgmr.msra.gmra.mxu0 %vm437_vm2, %v9671_v1  ;;  %v11026_v13 = vadd.f32 %v1924_v6, %v1672_v33 }
 0x1dd   : > { %v5354_v7 = vsel %vm5350_vm0, %v5339_v62, %v5341_v11  ;;  %5576 = vmatprep.mubr.f32.mxu0 %v10072_v5  ;;  %v1926_v8 = vpop.f32.mrf.mxu0  ;;  %v5355_v22 = vsel %vm5350_vm0, %v5341_v11, %v5343_v12 }
 0x1de   : > { %7343 = vrot.lane.b32.xlu0 %v10893_v57, %s10092_s24  ;;  %7661 = vrot.lane.b32.xlu1 %v10831_v30, %s10093_s26  ;;  %v11034_v14 = vadd.f32 %v1926_v8, %v1673_v39 }
 0x1df   : > { %5471 = vmatprep.subr.mxu1 %v5354_v7  ;;  %v1995_v9 = vpop.f32.mrf.mxu1 }
 0x1e0   : > { %5472 = vmatpush1.msra.mxu1 %v5353_v15  ;;  %v5345_v10 = vpop.permute.xlu0 %5344  ;;  %v5347_v17 = vpop.permute.xlu1 %5346  ;;  %v11037_v18 = vadd.f32 %v1995_v9, %v1674_v43 }
 0x1e1   : > { %v5356_v19 = vsel %vm5350_vm0, %v5343_v12, %v5345_v10  ;;  %9673 = vmatmul.mubr.msk.f32.vlgmr.msra.gmra.mxu1 %vm437_vm2, %v9671_v1  ;;  %v1997_v20 = vpop.f32.mrf.mxu1  ;;  %v5357_v27 = vsel %vm5350_vm0, %v5345_v10, %v5347_v17 }
 0x1e2   : > { %7663 = vrot.lane.b32.xlu0 %v10836_v31, %s10093_s26  ;;  %7659 = vrot.lane.b32.xlu1 %v10823_v26, %s10093_s26  ;;  %v11045_v21 = vadd.f32 %v1997_v20, %v1675_v47 }
 0x1e3   : > { %5542 = vmatprep.subr.mxu0 %v5356_v19  ;;  %5647 = vmatprep.mubr.f32.mxu1 %v10072_v5 }
 0x1e4   : > { %5543 = vmatpush1.msra.mxu0 %v5355_v22  ;;  %v5349_v55 = vpop.permute.xlu0 %5348  ;;  %v5667_v58 = vpop.permute.xlu1 %5666 }
 0x1e5   : > { %v5358_v23 = vsel %vm5350_vm0, %v5347_v17, %v5349_v55  ;;  %9674 = vmatmul.mubr.msk.f32.vlgmr.msra.gmra.mxu0 %vm437_vm2, %v9671_v1  ;;  %v2114_v24 = vpop.f32.mrf.mxu0 }
 0x1e6   : > { %7665 = vrot.lane.b32.xlu0 %v10846_v36, %s10093_s26  ;;  %7667 = vrot.lane.b32.xlu1 %v10961_v63, %s10093_s26  ;;  %v11055_v25 = vadd.f32 %v2114_v24, %v2000_v52 }
 0x1e7   : > { %5613 = vmatprep.subr.mxu1 %v5358_v23  ;;  %5766 = vmatprep.mubr.f32.mxu0 %v10072_v5  ;;  %v2116_v28 = vpop.f32.mrf.mxu0 }
 0x1e8   : > { %5614 = vmatpush1.msra.mxu1 %v5357_v27  ;;  %v5669_v29 = vpop.permute.xlu0 %5668  ;;  %v5665_v32 = vpop.permute.xlu1 %5664  ;;  %v11059_v33 = vadd.f32 %v2116_v28, %v2001_v59 }
 0x1e9   : > { %v5683_v34 = vsel %vm5682_vm1, %v5665_v32, %v5667_v58  ;;  %v5684_v35 = vsel %vm5682_vm1, %v5667_v58, %v5669_v29  ;;  %9675 = vmatmul.mubr.msk.f32.vlgmr.msra.gmra.mxu1 %vm437_vm2, %v9671_v1 }
 0x1ea   : > { %7669 = vrot.lane.b32.xlu0 %v10972_v16, %s10093_s26  ;;  %7671 = vrot.lane.b32.xlu1 %v10876_v49, %s10093_s26 }
 0x1eb   : > { %5732 = vmatprep.subr.mxu0 %v5684_v35  ;;  %5837 = vmatprep.mubr.f32.mxu1 %v10072_v5  ;;  %v2185_v38 = vpop.f32.mrf.mxu1 }
 0x1ec   : > { %5733 = vmatpush1.msra.mxu0 %v5683_v34  ;;  %v5671_v39 = vpop.permute.xlu0 %5670  ;;  %v5673_v40 = vpop.permute.xlu1 %5672  ;;  %v2334_v41 = vadd.f32 %v2185_v38, %v11013_v0 }
 0x1ed   : > { %v5685_v42 = vsel %vm5682_vm1, %v5669_v29, %v5671_v39  ;;  %v5686_v43 = vsel %vm5682_vm1, %v5671_v39, %v5673_v40  ;;  %9677 = vmatmul.mubr.msk.f32.vlgmr.msra.gmra.mxu0 %vm437_vm2, %v9676_v37  ;;  %v2187_v44 = vpop.f32.mrf.mxu1 }
 0x1ee   : > { %7673 = vrot.lane.b32.xlu0 %v10890_v56, %s10093_s26  ;;  %7675 = vrot.lane.b32.xlu1 %v10893_v57, %s10093_s26  ;;  %v2335_v45 = vadd.f32 %v2187_v44, %v11023_v3 }
 0x1ef   : > { %5803 = vmatprep.subr.mxu1 %v5686_v43  ;;  %5908 = vmatprep.mubr.f32.mxu0 %v10072_v5  ;;  %v2256_v46 = vpop.f32.mrf.mxu0 }
 0x1f0   : > { %5804 = vmatpush1.msra.mxu1 %v5685_v42  ;;  %v5675_v47 = vpop.permute.xlu0 %5674  ;;  %v5677_v48 = vpop.permute.xlu1 %5676  ;;  %v2336_v50 = vadd.f32 %v2256_v46, %v11026_v13 }
 0x1f1   : > { %v5687_v51 = vsel %vm5682_vm1, %v5673_v40, %v5675_v47  ;;  %v5688_v52 = vsel %vm5682_vm1, %v5675_v47, %v5677_v48  ;;  %9678 = vmatmul.mubr.msk.f32.vlgmr.msra.gmra.mxu1 %vm437_vm2, %v9676_v37  ;;  %v2258_v53 = vpop.f32.mrf.mxu0 }
 0x1f2   : > { %7993 = vrot.lane.b32.xlu0 %v10831_v30, %s10094_s18  ;;  %7995 = vrot.lane.b32.xlu1 %v10836_v31, %s10094_s18  ;;  %v2337_v54 = vadd.f32 %v2258_v53, %v11034_v14 }
 0x1f3   : > { %5874 = vmatprep.subr.mxu0 %v5688_v52  ;;  %5979 = vmatprep.mubr.f32.mxu1 %v10072_v5  ;;  %v2327_v59 = vpop.f32.mrf.mxu1  ;;  %v9686_v52 = vld [vmem:[%s11777_s11 + $0x90] sm:$0xff] }
 0x1f4   : > { %5875 = vmatpush1.msra.mxu0 %v5687_v51  ;;  %v5679_v60 = vpop.permute.xlu0 %5678  ;;  %v5681_v61 = vpop.permute.xlu1 %5680  ;;  %v2338_v62 = vadd.f32 %v2327_v59, %v11037_v18  ;;  %v9681_v18 = vld [vmem:[%s11777_s11 + $0x88] sm:$0xff] }
 0x1f5   : > { %v5689_v0 = vsel %vm5682_vm1, %v5677_v48, %v5679_v60  ;;  %9679 = vmatmul.mubr.msk.f32.vlgmr.msra.gmra.mxu0 %vm437_vm2, %v9676_v37  ;;  %v5690_v4 = vsel %vm5682_vm1, %v5679_v60, %v5681_v61  ;;  %v2329_v1 = vpop.f32.mrf.mxu1 }
 0x1f6   : > { %7991 = vrot.lane.b32.xlu0 %v10823_v26, %s10094_s18  ;;  %7997 = vrot.lane.b32.xlu1 %v10846_v36, %s10094_s18  ;;  %v2339_v2 = vadd.f32 %v2329_v1, %v11045_v21 }
 0x1f7   : > { %5945 = vmatprep.subr.mxu1 %v5690_v4  ;;  %6098 = vmatprep.mubr.f32.mxu0 %v10072_v5  ;;  %v2446_v3 = vpop.f32.mrf.mxu0 }
 0x1f8   : > { %5946 = vmatpush1.msra.mxu1 %v5689_v0  ;;  %v5999_v6 = vpop.permute.xlu0 %5998  ;;  %v6001_v11 = vpop.permute.xlu1 %6000  ;;  %v2664_v12 = vadd.f32 %v2446_v3, %v11055_v25 }
 0x1f9   : > { %9680 = vmatmul.mubr.msk.f32.vlgmr.msra.gmra.mxu1 %vm437_vm2, %v9676_v37  ;;  %v6016_v13 = vsel %vm6014_vm3, %v5999_v6, %v6001_v11  ;;  %v2448_v7 = vpop.f32.mrf.mxu0 }
 0x1fa   : > { %7999 = vrot.lane.b32.xlu0 %v10961_v63, %s10094_s18  ;;  %8001 = vrot.lane.b32.xlu1 %v10972_v16, %s10094_s18  ;;  %v2665_v8 = vadd.f32 %v2448_v7, %v11059_v33 }
 0x1fb   : > { %6064 = vmatprep.subr.mxu0 %v6016_v13  ;;  %6169 = vmatprep.mubr.f32.mxu1 %v10072_v5  ;;  %v2517_v14 = vpop.f32.mrf.mxu1 }
 0x1fc   : > { %v5997_v15 = vpop.permute.xlu0 %5996  ;;  %v6003_v9 = vpop.permute.xlu1 %6002  ;;  %v11111_v10 = vadd.f32 %v2517_v14, %v2334_v41 }
 0x1fd   : > { %v6015_v17 = vsel %vm6014_vm3, %v5997_v15, %v5999_v6  ;;  %v2519_v19 = vpop.f32.mrf.mxu1  ;;  %v6017_v27 = vsel %vm6014_vm3, %v6001_v11, %v6003_v9 }
 0x1fe   : > { %8003 = vrot.lane.b32.xlu0 %v10876_v49, %s10094_s18  ;;  %8005 = vrot.lane.b32.xlu1 %v10890_v56, %s10094_s18  ;;  %v11121_v20 = vadd.f32 %v2519_v19, %v2335_v45 }
 0x1ff   : > { %6065 = vmatpush1.msra.mxu0 %v6015_v17  ;;  %v2588_v21 = vpop.f32.mrf.mxu0 }
 0x200   : > { %9682 = vmatmul.mubr.msk.f32.vlgmr.msra.gmra.mxu0 %vm437_vm2, %v9681_v18  ;;  %v6005_v22 = vpop.permute.xlu0 %6004  ;;  %v6007_v55 = vpop.permute.xlu1 %6006  ;;  %v11124_v58 = vadd.f32 %v2588_v21, %v2336_v50 }
 0x201   : > { %v6018_v23 = vsel %vm6014_vm3, %v6003_v9, %v6005_v22  ;;  %6240 = vmatprep.mubr.f32.mxu0 %v10072_v5  ;;  %v2590_v24 = vpop.f32.mrf.mxu0  ;;  %v6019_v38 = vsel %vm6014_vm3, %v6005_v22, %v6007_v55 }
 0x202   : > { %8007 = vrot.lane.b32.xlu0 %v10893_v57, %s10094_s18  ;;  %8325 = vrot.lane.b32.xlu1 %v10831_v30, %s10095_s10  ;;  %v11132_v25 = vadd.f32 %v2590_v24, %v2337_v54 }
 0x203   : > { %6135 = vmatprep.subr.mxu1 %v6018_v23  ;;  %v2659_v28 = vpop.f32.mrf.mxu1 }
 0x204   : > { %6136 = vmatpush1.msra.mxu1 %v6017_v27  ;;  %v6009_v29 = vpop.permute.xlu0 %6008  ;;  %v6011_v32 = vpop.permute.xlu1 %6010  ;;  %v11135_v33 = vadd.f32 %v2659_v28, %v2338_v62 }
 0x205   : > { %9683 = vmatmul.mubr.msk.f32.vlgmr.msra.gmra.mxu1 %vm437_vm2, %v9681_v18  ;;  %v6020_v34 = vsel %vm6014_vm3, %v6007_v55, %v6009_v29  ;;  %v2661_v35 = vpop.f32.mrf.mxu1  ;;  %v6021_v44 = vsel %vm6014_vm3, %v6009_v29, %v6011_v32 }
 0x206   : > { %8327 = vrot.lane.b32.xlu0 %v10836_v31, %s10095_s10  ;;  %8323 = vrot.lane.b32.xlu1 %v10823_v26, %s10095_s10  ;;  %v11143_v37 = vadd.f32 %v2661_v35, %v2339_v2 }
 0x207   : > { %6206 = vmatprep.subr.mxu0 %v6020_v34  ;;  %6311 = vmatprep.mubr.f32.mxu1 %v10072_v5 }
 0x208   : > { %6207 = vmatpush1.msra.mxu0 %v6019_v38  ;;  %v6013_v39 = vpop.permute.xlu0 %6012  ;;  %v6334_v40 = vpop.permute.xlu1 %6333 }
 0x209   : > { %9684 = vmatmul.mubr.msk.f32.vlgmr.msra.gmra.mxu0 %vm437_vm2, %v9681_v18  ;;  %v6022_v41 = vsel %vm6014_vm3, %v6011_v32, %v6013_v39  ;;  %v2778_v42 = vpop.f32.mrf.mxu0 }
 0x20a   : > { %8329 = vrot.lane.b32.xlu0 %v10846_v36, %s10095_s10  ;;  %8331 = vrot.lane.b32.xlu1 %v10961_v63, %s10095_s10  ;;  %v11153_v43 = vadd.f32 %v2778_v42, %v2664_v12 }
 0x20b   : > { %6277 = vmatprep.subr.mxu1 %v6022_v41  ;;  %6433 = vmatprep.mubr.f32.mxu0 %v10072_v5  ;;  %v2780_v45 = vpop.f32.mrf.mxu0 }
 0x20c   : > { %6278 = vmatpush1.msra.mxu1 %v6021_v44  ;;  %v6336_v46 = vpop.permute.xlu0 %6335  ;;  %v6332_v47 = vpop.permute.xlu1 %6331  ;;  %v11157_v48 = vadd.f32 %v2780_v45, %v2665_v8 }
 0x20d   : > { %9685 = vmatmul.mubr.msk.f32.vlgmr.msra.gmra.mxu1 %vm437_vm2, %v9681_v18  ;;  %v6350_v50 = vsel %vm6349_vm4, %v6332_v47, %v6334_v40  ;;  %v6351_v51 = vsel %vm6349_vm4, %v6334_v40, %v6336_v46 }
 0x20e   : > { %8333 = vrot.lane.b32.xlu0 %v10972_v16, %s10095_s10  ;;  %8335 = vrot.lane.b32.xlu1 %v10876_v49, %s10095_s10 }
 0x20f   : > { %6399 = vmatprep.subr.mxu0 %v6351_v51  ;;  %6504 = vmatprep.mubr.f32.mxu1 %v10072_v5  ;;  %v2849_v53 = vpop.f32.mrf.mxu1 }
 0x210   : > { %6400 = vmatpush1.msra.mxu0 %v6350_v50  ;;  %v6338_v54 = vpop.permute.xlu0 %6337  ;;  %v6340_v59 = vpop.permute.xlu1 %6339  ;;  %v2998_v60 = vadd.f32 %v2849_v53, %v11111_v10 }
 0x211   : > { %v6352_v61 = vsel %vm6349_vm4, %v6336_v46, %v6338_v54  ;;  %9687 = vmatmul.mubr.msk.f32.vlgmr.msra.gmra.mxu0 %vm437_vm2, %v9686_v52  ;;  %v6353_v62 = vsel %vm6349_vm4, %v6338_v54, %v6340_v59  ;;  %v2851_v0 = vpop.f32.mrf.mxu1  ;;  %v9882_v46 = vld [vmem:[%s10315_s15 + $0x38] sm:$0xff] }
 0x212   : > { %8337 = vrot.lane.b32.xlu0 %v10890_v56, %s10095_s10  ;;  %8339 = vrot.lane.b32.xlu1 %v10893_v57, %s10095_s10  ;;  %v2999_v4 = vadd.f32 %v2851_v0, %v11121_v20  ;;  %s9430_s10 = sshll.u32 %s10346_s13, 4  ;;  %s9431_s10 = int_to_ptr.vmem [resolvable:$true] %s9430_s10 }
 0x213   : > { %6470 = vmatprep.subr.mxu1 %v6353_v62  ;;  %6575 = vmatprep.mubr.f32.mxu0 %v10072_v5  ;;  %v2920_v1 = vpop.f32.mrf.mxu0 }
 0x214   : > { %6471 = vmatpush1.msra.mxu1 %v6352_v61  ;;  %v6342_v2 = vpop.permute.xlu0 %6341  ;;  %v6344_v3 = vpop.permute.xlu1 %6343  ;;  %v3000_v6 = vadd.f32 %v2920_v1, %v11124_v58 }
 0x215   : > { %v6354_v11 = vsel %vm6349_vm4, %v6340_v59, %v6342_v2  ;;  %9688 = vmatmul.mubr.msk.f32.vlgmr.msra.gmra.mxu1 %vm437_vm2, %v9686_v52  ;;  %v6355_v12 = vsel %vm6349_vm4, %v6342_v2, %v6344_v3  ;;  %v2922_v13 = vpop.f32.mrf.mxu0  ;;  %v9884_v59 = vld [vmem:[%s10322_s17] sm:$0xff]  ;;  %s10098_s17 = smov [#allocation8]  }
 0x216   : > { %8657 = vrot.lane.b32.xlu0 %v10831_v30, %s10096_s27  ;;  %8659 = vrot.lane.b32.xlu1 %v10836_v31, %s10096_s27  ;;  %v3001_v7 = vadd.f32 %v2922_v13, %v11132_v25  ;;  %v9691_v25 = vld [vmem:[%s11777_s11 + $0x98] sm:$0xff]  ;;  %s9946_s18 = sshll.u32 %s10098_s17, 4  ;;  %s9947_s18 = int_to_ptr.vmem [resolvable:$false] %s9946_s18 }
 0x217   : > { %6541 = vmatprep.subr.mxu0 %v6355_v12  ;;  %6646 = vmatprep.mubr.f32.mxu1 %v10072_v5  ;;  %v2991_v8 = vpop.f32.mrf.mxu1  ;;  %s9948_s12 = scalar_lea.vmem %s9947_s18, 2048  ;;  %p9949_p3 = scmp.lt.s32.totalorder %s9431_s10, %s9947_s18 }
 0x218   : > { %6542 = vmatpush1.msra.mxu0 %v6354_v11  ;;  %v6346_v14 = vpop.permute.xlu0 %6345  ;;  %v6348_v15 = vpop.permute.xlu1 %6347  ;;  %v3002_v9 = vadd.f32 %v2991_v8, %v11135_v33 }
 0x219   : > { %v6356_v10 = vsel %vm6349_vm4, %v6344_v3, %v6346_v14  ;;  %9689 = vmatmul.mubr.msk.f32.vlgmr.msra.gmra.mxu0 %vm437_vm2, %v9686_v52  ;;  %v6357_v17 = vsel %vm6349_vm4, %v6346_v14, %v6348_v15  ;;  %v2993_v18 = vpop.f32.mrf.mxu1 }
 0x21a   : > { %8655 = vrot.lane.b32.xlu0 %v10823_v26, %s10096_s27  ;;  %8661 = vrot.lane.b32.xlu1 %v10846_v36, %s10096_s27  ;;  %v3003_v31 = vadd.f32 %v2993_v18, %v11143_v37 }
 0x21b   : > { %6612 = vmatprep.subr.mxu1 %v6357_v17  ;;  %6765 = vmatprep.mubr.f32.mxu0 %v10072_v5  ;;  %v3110_v19 = vpop.f32.mrf.mxu0 }
 0x21c   : > { %6613 = vmatpush1.msra.mxu1 %v6356_v10  ;;  %v6666_v20 = vpop.permute.xlu0 %6665  ;;  %v6668_v21 = vpop.permute.xlu1 %6667  ;;  %v11201_v22 = vadd.f32 %v3110_v19, %v11153_v43 }
 0x21d   : > { %9690 = vmatmul.mubr.msk.f32.vlgmr.msra.gmra.mxu1 %vm437_vm2, %v9686_v52  ;;  %v6683_v26 = vsel %vm6681_vm5, %v6666_v20, %v6668_v21  ;;  %v3112_v55 = vpop.f32.mrf.mxu0 }
 0x21e   : > { %8663 = vrot.lane.b32.xlu0 %v10961_v63, %s10096_s27  ;;  %8665 = vrot.lane.b32.xlu1 %v10972_v16, %s10096_s27  ;;  %v11210_v36 = vadd.f32 %v3112_v55, %v11157_v48 }
 0x21f   : > { %6731 = vmatprep.subr.mxu0 %v6683_v26  ;;  %6836 = vmatprep.mubr.f32.mxu1 %v10072_v5 }
 0x220   : > { %v6664_v58 = vpop.permute.xlu0 %6663  ;;  %v6670_v23 = vpop.permute.xlu1 %6669 }
 0x221   : > { %v6682_v24 = vsel %vm6681_vm5, %v6664_v58, %v6666_v20  ;;  %v3181_v27 = vpop.f32.mrf.mxu1  ;;  %v6684_v39 = vsel %vm6681_vm5, %v6668_v21, %v6670_v23 }
 0x222   : > { %8667 = vrot.lane.b32.xlu0 %v10876_v49, %s10096_s27  ;;  %8669 = vrot.lane.b32.xlu1 %v10890_v56, %s10096_s27  ;;  %v11221_v28 = vadd.f32 %v3181_v27, %v2998_v60 }
 0x223   : > { %6732 = vmatpush1.msra.mxu0 %v6682_v24  ;;  %v3183_v29 = vpop.f32.mrf.mxu1 }
 0x224   : > { %9692 = vmatmul.mubr.msk.f32.vlgmr.msra.gmra.mxu0 %vm437_vm2, %v9691_v25  ;;  %v6672_v32 = vpop.permute.xlu0 %6671  ;;  %v6674_v33 = vpop.permute.xlu1 %6673  ;;  %v11224_v34 = vadd.f32 %v3183_v29, %v2999_v4 }
 0x225   : > { %v6685_v35 = vsel %vm6681_vm5, %v6670_v23, %v6672_v32  ;;  %6907 = vmatprep.mubr.f32.mxu0 %v10072_v5  ;;  %v3252_v37 = vpop.f32.mrf.mxu0  ;;  %v6686_v48 = vsel %vm6681_vm5, %v6672_v32, %v6674_v33 }
 0x226   : > { %8671 = vrot.lane.b32.xlu0 %v10893_v57, %s10096_s27  ;;  %8989 = vrot.lane.b32.xlu1 %v10831_v30, %s10097_s4  ;;  %v11232_v38 = vadd.f32 %v3252_v37, %v3000_v6  ;;  %v9883_v30 = vld [vmem:[%s10315_s15 + $0x28] sm:$0xff]  ;;  %s11814_s27 = sld [smem:[#allocation38_spill]]  ;;  %s9942_s15 = scalar_lea.vmem %s9431_s10, 1024 }
 0x227   : > { %6802 = vmatprep.subr.mxu1 %v6685_v35  ;;  %v3254_v40 = vpop.f32.mrf.mxu0  ;;  %p9943_p10 = scmp.ne.s32.totalorder %s9431_s10, %s9942_s15  ;;  %p9950_p6 = scmp.lt.s32.totalorder %s9948_s12, %s9942_s15 }
 0x228   : > { %6803 = vmatpush1.msra.mxu1 %v6684_v39  ;;  %v6676_v41 = vpop.permute.xlu0 %6675  ;;  %v6678_v42 = vpop.permute.xlu1 %6677  ;;  %v11235_v43 = vadd.f32 %v3254_v40, %v3001_v7 }
 0x229   : > { %9693 = vmatmul.mubr.msk.f32.vlgmr.msra.gmra.mxu1 %vm437_vm2, %v9691_v25  ;;  %v6687_v44 = vsel %vm6681_vm5, %v6674_v33, %v6676_v41  ;;  %v3323_v45 = vpop.f32.mrf.mxu1  ;;  %v6688_v60 = vsel %vm6681_vm5, %v6676_v41, %v6678_v42  ;;  %p9944_p5 = pnand %p9943_p10, %p10233_p11  ;;  %p9951_p0 = por %p9950_p6, %p9949_p3 }
 0x22a   : > { %8991 = vrot.lane.b32.xlu0 %v9882_v46, %s10097_s4  ;;  %8987 = vrot.lane.b32.xlu1 %v9883_v30, %s10097_s4  ;;  %v11243_v47 = vadd.f32 %v3323_v45, %v3002_v9 }
 0x22b   : > { %6873 = vmatprep.subr.mxu0 %v6687_v44  ;;  %6978 = vmatprep.mubr.f32.mxu1 %v10072_v5  ;;  %v3325_v50 = vpop.f32.mrf.mxu1  ;;  %p9945_p12 = pneg %p9944_p5 }
 0x22c   : > { %6874 = vmatpush1.msra.mxu0 %v6686_v48  ;;  %v6680_v51 = vpop.permute.xlu0 %6679  ;;  %v6998_v52 = vpop.permute.xlu1 %6997  ;;  %v11247_v53 = vadd.f32 %v3325_v50, %v3003_v31  ;;  %s11815_s9 = smov %s11814_s27 }
 0x22d   : > { %9694 = vmatmul.mubr.msk.f32.vlgmr.msra.gmra.mxu0 %vm437_vm2, %v9691_v25  ;;  %v6689_v54 = vsel %vm6681_vm5, %v6678_v42, %v6680_v51  ;;  %p9952_p13 = pnand %p9951_p0, %p9945_p12 }
 0x22e   : > { %8993 = vrot.lane.b32.xlu0 %v9884_v59, %s10097_s4  ;;  %8995 = vrot.lane.b32.xlu1 %v10961_v63, %s10097_s4  ;;  %v9696_v63 = vld [vmem:[%s11777_s11 + $0xa0] sm:$0xff] }
 0x22f   : > { %6944 = vmatprep.subr.mxu1 %v6689_v54  ;;  %7097 = vmatprep.mubr.f32.mxu0 %v10072_v5 }
 0x230   : > { %6945 = vmatpush1.msra.mxu1 %v6688_v60  ;;  %v7000_v61 = vpop.permute.xlu0 %6999  ;;  %v6996_v62 = vpop.permute.xlu1 %6995 }
 0x231   : > { %9695 = vmatmul.mubr.msk.f32.vlgmr.msra.gmra.mxu1 %vm437_vm2, %v9691_v25  ;;  %v7014_v0 = vsel %vm7013_vm6, %v6996_v62, %v6998_v52  ;;  %v7015_v4 = vsel %vm7013_vm6, %v6998_v52, %v7000_v61  ;;  %v3444_v1 = vpop.f32.mrf.mxu0 }
 0x232   : > { %8997 = vrot.lane.b32.xlu0 %v10972_v16, %s10097_s4  ;;  %8999 = vrot.lane.b32.xlu1 %v10876_v49, %s10097_s4  ;;  %v3662_v2 = vadd.f32 %v3444_v1, %v11201_v22 }
 0x233   : > { %7063 = vmatprep.subr.mxu0 %v7015_v4  ;;  %7168 = vmatprep.mubr.f32.mxu1 %v10072_v5  ;;  %v3446_v3 = vpop.f32.mrf.mxu0 }
 0x234   : > { %7064 = vmatpush1.msra.mxu0 %v7014_v0  ;;  %v7002_v6 = vpop.permute.xlu0 %7001  ;;  %v7004_v11 = vpop.permute.xlu1 %7003  ;;  %v3663_v12 = vadd.f32 %v3446_v3, %v11210_v36 }
 0x235   : > { %v7016_v16 = vsel %vm7013_vm6, %v7000_v61, %v7002_v6  ;;  %9697 = vmatmul.mubr.msk.f32.vlgmr.msra.gmra.mxu0 %vm437_vm2, %v9696_v63  ;;  %v7017_v49 = vsel %vm7013_vm6, %v7002_v6, %v7004_v11  ;;  %v3515_v13 = vpop.f32.mrf.mxu1 }
 0x236   : > { %9001 = vrot.lane.b32.xlu0 %v10890_v56, %s10097_s4  ;;  %9003 = vrot.lane.b32.xlu1 %v10893_v57, %s10097_s4  ;;  %v3664_v7 = vadd.f32 %v3515_v13, %v11221_v28  ;;  %s9410_s4 = scalar_lea.sflag [#allocation5], %s10311_s6 }
 0x237   : > { %7134 = vmatprep.subr.mxu1 %v7017_v49  ;;  %7239 = vmatprep.mubr.f32.mxu0 %v10072_v5  ;;  %v3517_v8 = vpop.f32.mrf.mxu1 }
 0x238   : > { %7135 = vmatpush1.msra.mxu1 %v7016_v16  ;;  %v7006_v14 = vpop.permute.xlu0 %7005  ;;  %v7008_v15 = vpop.permute.xlu1 %7007  ;;  %v3665_v9 = vadd.f32 %v3517_v8, %v11224_v34  ;;  %v9701_v34 = vld [vmem:[%s11777_s11 + $0xa8] sm:$0xff] }
 0x239   : > { %v7018_v10 = vsel %vm7013_vm6, %v7004_v11, %v7006_v14  ;;  %9698 = vmatmul.mubr.msk.f32.vlgmr.msra.gmra.mxu1 %vm437_vm2, %v9696_v63  ;;  %v7019_v56 = vsel %vm7013_vm6, %v7006_v14, %v7008_v15  ;;  %v3586_v17 = vpop.f32.mrf.mxu0  ;;  %v9706_v11 = vld [vmem:[%s11777_s11 + $0xb0] sm:$0xff] }
 0x23a   : > { %7205 = vmatprep.subr.mxu0 %v7019_v56  ;;  %7310 = vmatprep.mubr.f32.mxu1 %v10072_v5  ;;  %v3666_v57 = vadd.f32 %v3586_v17, %v11232_v38 }
 0x23b   : > { %7206 = vmatpush1.msra.mxu0 %v7018_v10  ;;  %v3588_v18 = vpop.f32.mrf.mxu0 }
 0x23c   : > { %v7010_v31 = vpop.permute.xlu0 %7009  ;;  %9699 = vmatmul.mubr.msk.f32.vlgmr.msra.gmra.mxu0 %vm437_vm2, %v9696_v63  ;;  %v7012_v19 = vpop.permute.xlu1 %7011  ;;  %v3667_v20 = vadd.f32 %v3588_v18, %v11235_v43 }
 0x23d   : > { %v7020_v21 = vsel %vm7013_vm6, %v7008_v15, %v7010_v31  ;;  %v7021_v22 = vsel %vm7013_vm6, %v7010_v31, %v7012_v19  ;;  %7429 = vmatprep.mubr.f32.mxu0 %v10072_v5  ;;  %v3657_v26 = vpop.f32.mrf.mxu1 }
 0x23e   : > { %7276 = vmatprep.subr.mxu1 %v7021_v22  ;;  %v3668_v55 = vadd.f32 %v3657_v26, %v11243_v47 }
 0x23f   : > { %7277 = vmatpush1.msra.mxu1 %v7020_v21  ;;  %v3659_v36 = vpop.f32.mrf.mxu1 }
 0x240   : > { %v7330_v58 = vpop.permute.xlu0 %7329  ;;  %9700 = vmatmul.mubr.msk.f32.vlgmr.msra.gmra.mxu1 %vm437_vm2, %v9696_v63  ;;  %v7332_v23 = vpop.permute.xlu1 %7331  ;;  %v3669_v24 = vadd.f32 %v3659_v36, %v11247_v53 }
 0x241   : > { %v7347_v25 = vsel %vm7345_vm7, %v7330_v58, %v7332_v23  ;;  %7500 = vmatprep.mubr.f32.mxu1 %v10072_v5  ;;  %v3776_v27 = vpop.f32.mrf.mxu0 }
 0x242   : > { %7395 = vmatprep.subr.mxu0 %v7347_v25  ;;  %v3994_v28 = vadd.f32 %v3776_v27, %v3662_v2 }
 0x243   : > { %v3778_v29 = vpop.f32.mrf.mxu0 }
 0x244   : > { %v7328_v32 = vpop.permute.xlu0 %7327  ;;  %v7334_v33 = vpop.permute.xlu1 %7333  ;;  %v3995_v35 = vadd.f32 %v3778_v29, %v3663_v12 }
 0x245   : > { %v7346_v37 = vsel %vm7345_vm7, %v7328_v32, %v7330_v58  ;;  %v3847_v38 = vpop.f32.mrf.mxu1  ;;  %v7348_v46 = vsel %vm7345_vm7, %v7332_v23, %v7334_v33 }
 0x246   : > { %7396 = vmatpush1.msra.mxu0 %v7346_v37  ;;  %v3996_v39 = vadd.f32 %v3847_v38, %v3664_v7 }
 0x247   : > { %9702 = vmatmul.mubr.msk.f32.vlgmr.msra.gmra.mxu0 %vm437_vm2, %v9701_v34  ;;  %v3849_v40 = vpop.f32.mrf.mxu1 }
 0x248   : > { %v7336_v41 = vpop.permute.xlu0 %7335  ;;  %v7338_v42 = vpop.permute.xlu1 %7337  ;;  %7571 = vmatprep.mubr.f32.mxu0 %v10072_v5  ;;  %v3997_v43 = vadd.f32 %v3849_v40, %v3665_v9  ;;  %v9711_v40 = vld [vmem:[%s11777_s11 + $0xb8] sm:$0xff] }
 0x249   : > { %v7349_v44 = vsel %vm7345_vm7, %v7334_v33, %v7336_v41  ;;  %v3918_v45 = vpop.f32.mrf.mxu0  ;;  %v7350_v54 = vsel %vm7345_vm7, %v7336_v41, %v7338_v42 }
 0x24a   : > { %7466 = vmatprep.subr.mxu1 %v7349_v44  ;;  %v3998_v30 = vadd.f32 %v3918_v45, %v3666_v57 }
 0x24b   : > { %7467 = vmatpush1.msra.mxu1 %v7348_v46  ;;  %v3920_v47 = vpop.f32.mrf.mxu0 }
 0x24c   : > { %v7340_v48 = vpop.permute.xlu0 %7339  ;;  %9703 = vmatmul.mubr.msk.f32.vlgmr.msra.gmra.mxu1 %vm437_vm2, %v9701_v34  ;;  %v7342_v50 = vpop.permute.xlu1 %7341  ;;  %v3999_v51 = vadd.f32 %v3920_v47, %v3667_v20 }
 0x24d   : > { %v7351_v52 = vsel %vm7345_vm7, %v7338_v42, %v7340_v48  ;;  %7642 = vmatprep.mubr.f32.mxu1 %v10072_v5  ;;  %v3989_v53 = vpop.f32.mrf.mxu1  ;;  %v7352_v1 = vsel %vm7345_vm7, %v7340_v48, %v7342_v50 }
 0x24e   : > { %7537 = vmatprep.subr.mxu0 %v7351_v52  ;;  %v4000_v59 = vadd.f32 %v3989_v53, %v3668_v55 }
 0x24f   : > { %7538 = vmatpush1.msra.mxu0 %v7350_v54  ;;  %v3991_v60 = vpop.f32.mrf.mxu1 }
 0x250   : > { %v7344_v61 = vpop.permute.xlu0 %7343  ;;  %9704 = vmatmul.mubr.msk.f32.vlgmr.msra.gmra.mxu0 %vm437_vm2, %v9701_v34  ;;  %v7662_v62 = vpop.permute.xlu1 %7661  ;;  %v4001_v0 = vadd.f32 %v3991_v60, %v3669_v24 }
 0x251   : > { %v7353_v4 = vsel %vm7345_vm7, %v7342_v50, %v7344_v61  ;;  %7761 = vmatprep.mubr.f32.mxu0 %v10072_v5 }
 0x252   : > { %7608 = vmatprep.subr.mxu1 %v7353_v4 }
 0x253   : > { %7609 = vmatpush1.msra.mxu1 %v7352_v1 }
 0x254   : > { %v7664_v63 = vpop.permute.xlu0 %7663  ;;  %9705 = vmatmul.mubr.msk.f32.vlgmr.msra.gmra.mxu1 %vm437_vm2, %v9701_v34  ;;  %v7660_v2 = vpop.permute.xlu1 %7659 }
 0x255   : > { %v7678_v3 = vsel %vm7677_vm8, %v7660_v2, %v7662_v62  ;;  %v7679_v6 = vsel %vm7677_vm8, %v7662_v62, %v7664_v63  ;;  %7832 = vmatprep.mubr.f32.mxu1 %v10072_v5  ;;  %v4108_v12 = vpop.f32.mrf.mxu0 }
 0x256   : > { %7727 = vmatprep.subr.mxu0 %v7679_v6  ;;  %v4326_v16 = vadd.f32 %v4108_v12, %v3994_v28 }
 0x257   : > { %7728 = vmatpush1.msra.mxu0 %v7678_v3  ;;  %v4110_v49 = vpop.f32.mrf.mxu0 }
 0x258   : > { %v7666_v13 = vpop.permute.xlu0 %7665  ;;  %9707 = vmatmul.mubr.msk.f32.vlgmr.msra.gmra.mxu0 %vm437_vm2, %v9706_v11  ;;  %v7668_v7 = vpop.permute.xlu1 %7667  ;;  %v4327_v8 = vadd.f32 %v4110_v49, %v3995_v35 }
 0x259   : > { %v7680_v14 = vsel %vm7677_vm8, %v7664_v63, %v7666_v13  ;;  %v7681_v15 = vsel %vm7677_vm8, %v7666_v13, %v7668_v7  ;;  %7903 = vmatprep.mubr.f32.mxu0 %v10072_v5  ;;  %v4179_v9 = vpop.f32.mrf.mxu1 }
 0x25a   : > { %7798 = vmatprep.subr.mxu1 %v7681_v15  ;;  %v4328_v10 = vadd.f32 %v4179_v9, %v3996_v39 }
 0x25b   : > { %7799 = vmatpush1.msra.mxu1 %v7680_v14  ;;  %v4181_v56 = vpop.f32.mrf.mxu1 }
 0x25c   : > { %v7670_v17 = vpop.permute.xlu0 %7669  ;;  %9708 = vmatmul.mubr.msk.f32.vlgmr.msra.gmra.mxu1 %vm437_vm2, %v9706_v11  ;;  %v7672_v57 = vpop.permute.xlu1 %7671  ;;  %v4329_v18 = vadd.f32 %v4181_v56, %v3997_v43 }
 0x25d   : > { %v7682_v31 = vsel %vm7677_vm8, %v7668_v7, %v7670_v17  ;;  %v7683_v19 = vsel %vm7677_vm8, %v7670_v17, %v7672_v57  ;;  %7974 = vmatprep.mubr.f32.mxu1 %v10072_v5  ;;  %v4250_v20 = vpop.f32.mrf.mxu0  ;;  %v9716_v7 = vld [vmem:[%s11777_s11 + $0xc0] sm:$0xff] }
 0x25e   : > { %7869 = vmatprep.subr.mxu0 %v7683_v19  ;;  %v4330_v21 = vadd.f32 %v4250_v20, %v3998_v30 }
 0x25f   : > { %7870 = vmatpush1.msra.mxu0 %v7682_v31  ;;  %v4252_v22 = vpop.f32.mrf.mxu0 }
 0x260   : > { %v7674_v26 = vpop.permute.xlu0 %7673  ;;  %9709 = vmatmul.mubr.msk.f32.vlgmr.msra.gmra.mxu0 %vm437_vm2, %v9706_v11  ;;  %v7676_v55 = vpop.permute.xlu1 %7675  ;;  %v4331_v36 = vadd.f32 %v4252_v22, %v3999_v51 }
 0x261   : > { %v7684_v58 = vsel %vm7677_vm8, %v7672_v57, %v7674_v26  ;;  %v7685_v23 = vsel %vm7677_vm8, %v7674_v26, %v7676_v55  ;;  %8093 = vmatprep.mubr.f32.mxu0 %v10072_v5  ;;  %v4321_v24 = vpop.f32.mrf.mxu1 }
 0x262   : > { %7940 = vmatprep.subr.mxu1 %v7685_v23  ;;  %v4332_v25 = vadd.f32 %v4321_v24, %v4000_v59 }
 0x263   : > { %7941 = vmatpush1.msra.mxu1 %v7684_v58  ;;  %v4323_v27 = vpop.f32.mrf.mxu1 }
 0x264   : > { %v7994_v28 = vpop.permute.xlu0 %7993  ;;  %9710 = vmatmul.mubr.msk.f32.vlgmr.msra.gmra.mxu1 %vm437_vm2, %v9706_v11  ;;  %v7996_v29 = vpop.permute.xlu1 %7995  ;;  %v4333_v32 = vadd.f32 %v4323_v27, %v4001_v0 }
 0x265   : > { %v8011_v33 = vsel %vm8009_vm9, %v7994_v28, %v7996_v29  ;;  %8164 = vmatprep.mubr.f32.mxu1 %v10072_v5  ;;  %v4440_v34 = vpop.f32.mrf.mxu0 }
 0x266   : > { %8059 = vmatprep.subr.mxu0 %v8011_v33  ;;  %v4658_v35 = vadd.f32 %v4440_v34, %v4326_v16 }
 0x267   : > { %v4442_v37 = vpop.f32.mrf.mxu0 }
 0x268   : > { %v7992_v38 = vpop.permute.xlu0 %7991  ;;  %v7998_v39 = vpop.permute.xlu1 %7997  ;;  %v4659_v41 = vadd.f32 %v4442_v37, %v4327_v8 }
 0x269   : > { %v8010_v42 = vsel %vm8009_vm9, %v7992_v38, %v7994_v28  ;;  %v4511_v43 = vpop.f32.mrf.mxu1  ;;  %v8012_v51 = vsel %vm8009_vm9, %v7996_v29, %v7998_v39 }
 0x26a   : > { %8060 = vmatpush1.msra.mxu0 %v8010_v42  ;;  %v4660_v44 = vadd.f32 %v4511_v43, %v4328_v10 }
 0x26b   : > { %9712 = vmatmul.mubr.msk.f32.vlgmr.msra.gmra.mxu0 %vm437_vm2, %v9711_v40  ;;  %v4513_v45 = vpop.f32.mrf.mxu1 }
 0x26c   : > { %v8000_v46 = vpop.permute.xlu0 %7999  ;;  %v8002_v30 = vpop.permute.xlu1 %8001  ;;  %8235 = vmatprep.mubr.f32.mxu0 %v10072_v5  ;;  %v4661_v47 = vadd.f32 %v4513_v45, %v4329_v18  ;;  %v9721_v45 = vld [vmem:[%s11777_s11 + $0xc8] sm:$0xff] }
 0x26d   : > { %v8013_v48 = vsel %vm8009_vm9, %v7998_v39, %v8000_v46  ;;  %v4582_v50 = vpop.f32.mrf.mxu0  ;;  %v8014_v0 = vsel %vm8009_vm9, %v8000_v46, %v8002_v30 }
 0x26e   : > { %8130 = vmatprep.subr.mxu1 %v8013_v48  ;;  %v4662_v52 = vadd.f32 %v4582_v50, %v4330_v21 }
 0x26f   : > { %8131 = vmatpush1.msra.mxu1 %v8012_v51  ;;  %v4584_v53 = vpop.f32.mrf.mxu0 }
 0x270   : > { %v8004_v54 = vpop.permute.xlu0 %8003  ;;  %9713 = vmatmul.mubr.msk.f32.vlgmr.msra.gmra.mxu1 %vm437_vm2, %v9711_v40  ;;  %v8006_v59 = vpop.permute.xlu1 %8005  ;;  %v4663_v60 = vadd.f32 %v4584_v53, %v4331_v36 }
 0x271   : > { %v8015_v61 = vsel %vm8009_vm9, %v8002_v30, %v8004_v54  ;;  %8306 = vmatprep.mubr.f32.mxu1 %v10072_v5  ;;  %v4653_v62 = vpop.f32.mrf.mxu1  ;;  %v8016_v11 = vsel %vm8009_vm9, %v8004_v54, %v8006_v59 }
 0x272   : > { %8201 = vmatprep.subr.mxu0 %v8015_v61  ;;  %v4664_v4 = vadd.f32 %v4653_v62, %v4332_v25 }
 0x273   : > { %8202 = vmatpush1.msra.mxu0 %v8014_v0  ;;  %v4655_v1 = vpop.f32.mrf.mxu1 }
 0x274   : > { %v8008_v63 = vpop.permute.xlu0 %8007  ;;  %9714 = vmatmul.mubr.msk.f32.vlgmr.msra.gmra.mxu0 %vm437_vm2, %v9711_v40  ;;  %v8326_v2 = vpop.permute.xlu1 %8325  ;;  %v4665_v3 = vadd.f32 %v4655_v1, %v4333_v32 }
 0x275   : > { %v8017_v6 = vsel %vm8009_vm9, %v8006_v59, %v8008_v63  ;;  %8425 = vmatprep.mubr.f32.mxu0 %v10072_v5 }
 0x276   : > { %8272 = vmatprep.subr.mxu1 %v8017_v6 }
 0x277   : > { %8273 = vmatpush1.msra.mxu1 %v8016_v11 }
 0x278   : > { %v8328_v12 = vpop.permute.xlu0 %8327  ;;  %9715 = vmatmul.mubr.msk.f32.vlgmr.msra.gmra.mxu1 %vm437_vm2, %v9711_v40  ;;  %v8324_v16 = vpop.permute.xlu1 %8323 }
 0x279   : > { %v8342_v49 = vsel %vm8341_vm10, %v8324_v16, %v8326_v2  ;;  %v8343_v13 = vsel %vm8341_vm10, %v8326_v2, %v8328_v12  ;;  %8496 = vmatprep.mubr.f32.mxu1 %v10072_v5  ;;  %v4772_v8 = vpop.f32.mrf.mxu0 }
 0x27a   : > { %8391 = vmatprep.subr.mxu0 %v8343_v13  ;;  %v4990_v14 = vadd.f32 %v4772_v8, %v4658_v35 }
 0x27b   : > { %8392 = vmatpush1.msra.mxu0 %v8342_v49  ;;  %v4774_v15 = vpop.f32.mrf.mxu0 }
 0x27c   : > { %v8330_v9 = vpop.permute.xlu0 %8329  ;;  %9717 = vmatmul.mubr.msk.f32.vlgmr.msra.gmra.mxu0 %vm437_vm2, %v9716_v7  ;;  %v8332_v10 = vpop.permute.xlu1 %8331  ;;  %v4991_v56 = vadd.f32 %v4774_v15, %v4659_v41 }
 0x27d   : > { %v8344_v17 = vsel %vm8341_vm10, %v8328_v12, %v8330_v9  ;;  %v8345_v57 = vsel %vm8341_vm10, %v8330_v9, %v8332_v10  ;;  %8567 = vmatprep.mubr.f32.mxu0 %v10072_v5  ;;  %v4843_v18 = vpop.f32.mrf.mxu1 }
 0x27e   : > { %8462 = vmatprep.subr.mxu1 %v8345_v57  ;;  %v4992_v31 = vadd.f32 %v4843_v18, %v4660_v44 }
 0x27f   : > { %8463 = vmatpush1.msra.mxu1 %v8344_v17  ;;  %v4845_v19 = vpop.f32.mrf.mxu1 }
 0x280   : > { %v8334_v20 = vpop.permute.xlu0 %8333  ;;  %9718 = vmatmul.mubr.msk.f32.vlgmr.msra.gmra.mxu1 %vm437_vm2, %v9716_v7  ;;  %v8336_v21 = vpop.permute.xlu1 %8335  ;;  %v4993_v22 = vadd.f32 %v4845_v19, %v4661_v47 }
 0x281   : > { %v8346_v26 = vsel %vm8341_vm10, %v8332_v10, %v8334_v20  ;;  %v8347_v55 = vsel %vm8341_vm10, %v8334_v20, %v8336_v21  ;;  %8638 = vmatprep.mubr.f32.mxu1 %v10072_v5  ;;  %v4914_v36 = vpop.f32.mrf.mxu0  ;;  %v9726_v10 = vld [vmem:[%s11777_s11 + $0xd0] sm:$0xff] }
 0x282   : > { %8533 = vmatprep.subr.mxu0 %v8347_v55  ;;  %v4994_v58 = vadd.f32 %v4914_v36, %v4662_v52 }
 0x283   : > { %8534 = vmatpush1.msra.mxu0 %v8346_v26  ;;  %v4916_v23 = vpop.f32.mrf.mxu0 }
 0x284   : > { %v8338_v24 = vpop.permute.xlu0 %8337  ;;  %9719 = vmatmul.mubr.msk.f32.vlgmr.msra.gmra.mxu0 %vm437_vm2, %v9716_v7  ;;  %v8340_v25 = vpop.permute.xlu1 %8339  ;;  %v4995_v27 = vadd.f32 %v4916_v23, %v4663_v60 }
 0x285   : > { %v8348_v28 = vsel %vm8341_vm10, %v8336_v21, %v8338_v24  ;;  %v8349_v29 = vsel %vm8341_vm10, %v8338_v24, %v8340_v25  ;;  %8757 = vmatprep.mubr.f32.mxu0 %v10072_v5  ;;  %v4985_v32 = vpop.f32.mrf.mxu1 }
 0x286   : > { %8604 = vmatprep.subr.mxu1 %v8349_v29  ;;  %v4996_v33 = vadd.f32 %v4985_v32, %v4664_v4 }
 0x287   : > { %8605 = vmatpush1.msra.mxu1 %v8348_v28  ;;  %v4987_v34 = vpop.f32.mrf.mxu1 }
 0x288   : > { %v8658_v35 = vpop.permute.xlu0 %8657  ;;  %9720 = vmatmul.mubr.msk.f32.vlgmr.msra.gmra.mxu1 %vm437_vm2, %v9716_v7  ;;  %v8660_v37 = vpop.permute.xlu1 %8659  ;;  %v4997_v38 = vadd.f32 %v4987_v34, %v4665_v3 }
 0x289   : > { %v8675_v39 = vsel %vm8673_vm11, %v8658_v35, %v8660_v37  ;;  %8828 = vmatprep.mubr.f32.mxu1 %v10072_v5  ;;  %v5104_v40 = vpop.f32.mrf.mxu0 }
 0x28a   : > { %8723 = vmatprep.subr.mxu0 %v8675_v39  ;;  %v5322_v41 = vadd.f32 %v5104_v40, %v4990_v14 }
 0x28b   : > { %v5106_v42 = vpop.f32.mrf.mxu0 }
 0x28c   : > { %v8656_v43 = vpop.permute.xlu0 %8655  ;;  %v8662_v44 = vpop.permute.xlu1 %8661  ;;  %v5323_v46 = vadd.f32 %v5106_v42, %v4991_v56 }
 0x28d   : > { %v8674_v30 = vsel %vm8673_vm11, %v8656_v43, %v8658_v35  ;;  %v5175_v47 = vpop.f32.mrf.mxu1  ;;  %v8676_v60 = vsel %vm8673_vm11, %v8660_v37, %v8662_v44 }
 0x28e   : > { %8724 = vmatpush1.msra.mxu0 %v8674_v30  ;;  %v5324_v48 = vadd.f32 %v5175_v47, %v4992_v31 }
 0x28f   : > { %9722 = vmatmul.mubr.msk.f32.vlgmr.msra.gmra.mxu0 %vm437_vm2, %v9721_v45  ;;  %v5177_v50 = vpop.f32.mrf.mxu1 }
 0x290   : > { %v8664_v51 = vpop.permute.xlu0 %8663  ;;  %v8666_v52 = vpop.permute.xlu1 %8665  ;;  %8899 = vmatprep.mubr.f32.mxu0 %v10072_v5  ;;  %v5325_v53 = vadd.f32 %v5177_v50, %v4993_v22 }
 0x291   : > { %v8677_v54 = vsel %vm8673_vm11, %v8662_v44, %v8664_v51  ;;  %v5246_v59 = vpop.f32.mrf.mxu0  ;;  %v8678_v3 = vsel %vm8673_vm11, %v8664_v51, %v8666_v52 }
 0x292   : > { %8794 = vmatprep.subr.mxu1 %v8677_v54  ;;  %v5326_v61 = vadd.f32 %v5246_v59, %v4994_v58 }
 0x293   : > { %8795 = vmatpush1.msra.mxu1 %v8676_v60  ;;  %v5248_v62 = vpop.f32.mrf.mxu0 }
 0x294   : > { %v8668_v0 = vpop.permute.xlu0 %8667  ;;  %9723 = vmatmul.mubr.msk.f32.vlgmr.msra.gmra.mxu1 %vm437_vm2, %v9721_v45  ;;  %v8670_v4 = vpop.permute.xlu1 %8669  ;;  %v5327_v1 = vadd.f32 %v5248_v62, %v4995_v27 }
 0x295   : > { %v8679_v63 = vsel %vm8673_vm11, %v8666_v52, %v8668_v0  ;;  %8970 = vmatprep.mubr.f32.mxu1 %v10072_v5  ;;  %v5317_v2 = vpop.f32.mrf.mxu1  ;;  %v8680_v7 = vsel %vm8673_vm11, %v8668_v0, %v8670_v4 }
 0x296   : > { %8865 = vmatprep.subr.mxu0 %v8679_v63  ;;  %v5328_v6 = vadd.f32 %v5317_v2, %v4996_v33 }
 0x297   : > { %8866 = vmatpush1.msra.mxu0 %v8678_v3  ;;  %v5319_v11 = vpop.f32.mrf.mxu1 }
 0x298   : > { %v8672_v12 = vpop.permute.xlu0 %8671  ;;  %9724 = vmatmul.mubr.msk.f32.vlgmr.msra.gmra.mxu0 %vm437_vm2, %v9721_v45  ;;  %v8990_v16 = vpop.permute.xlu1 %8989  ;;  %v5329_v49 = vadd.f32 %v5319_v11, %v4997_v38 }
 0x299   : > { %v8681_v13 = vsel %vm8673_vm11, %v8670_v4, %v8672_v12  ;;  %9089 = vmatprep.mubr.f32.mxu0 %v10072_v5 }
 0x29a   : > { %8936 = vmatprep.subr.mxu1 %v8681_v13 }
 0x29b   : > { %8937 = vmatpush1.msra.mxu1 %v8680_v7 }
 0x29c   : > { %v8992_v8 = vpop.permute.xlu0 %8991  ;;  %9725 = vmatmul.mubr.msk.f32.vlgmr.msra.gmra.mxu1 %vm437_vm2, %v9721_v45  ;;  %v8988_v14 = vpop.permute.xlu1 %8987 }
 0x29d   : > { %v9006_v15 = vsel %vm9005_vm12, %v8988_v14, %v8990_v16  ;;  %v9007_v9 = vsel %vm9005_vm12, %v8990_v16, %v8992_v8  ;;  %9160 = vmatprep.mubr.f32.mxu1 %v10072_v5  ;;  %v5436_v56 = vpop.f32.mrf.mxu0 }
 0x29e   : > { %9055 = vmatprep.subr.mxu0 %v9007_v9  ;;  %v11394_v17 = vadd.f32 %v5436_v56, %v5322_v41 }
 0x29f   : > { %9056 = vmatpush1.msra.mxu0 %v9006_v15  ;;  %v5438_v57 = vpop.f32.mrf.mxu0 }
 0x2a0   : > { %v8994_v18 = vpop.permute.xlu0 %8993  ;;  %9727 = vmatmul.mubr.msk.f32.vlgmr.msra.gmra.mxu0 %vm437_vm2, %v9726_v10  ;;  %v8996_v31 = vpop.permute.xlu1 %8995  ;;  %v11397_v19 = vadd.f32 %v5438_v57, %v5323_v46 }
 0x2a1   : > { %v9008_v20 = vsel %vm9005_vm12, %v8992_v8, %v8994_v18  ;;  %v9009_v21 = vsel %vm9005_vm12, %v8994_v18, %v8996_v31  ;;  %9231 = vmatprep.mubr.f32.mxu0 %v10072_v5  ;;  %v5507_v22 = vpop.f32.mrf.mxu1 }
 0x2a2   : > { %9126 = vmatprep.subr.mxu1 %v9009_v21  ;;  %v11402_v26 = vadd.f32 %v5507_v22, %v5324_v48 }
 0x2a3   : > { %9127 = vmatpush1.msra.mxu1 %v9008_v20  ;;  %v5509_v55 = vpop.f32.mrf.mxu1 }
 0x2a4   : > { %v8998_v36 = vpop.permute.xlu0 %8997  ;;  %9728 = vmatmul.mubr.msk.f32.vlgmr.msra.gmra.mxu1 %vm437_vm2, %v9726_v10  ;;  %v9000_v58 = vpop.permute.xlu1 %8999  ;;  %v11405_v23 = vadd.f32 %v5509_v55, %v5325_v53 }
 0x2a5   : > { %v9010_v24 = vsel %vm9005_vm12, %v8996_v31, %v8998_v36  ;;  %v9011_v25 = vsel %vm9005_vm12, %v8998_v36, %v9000_v58  ;;  %v5578_v27 = vpop.f32.mrf.mxu0  ;;  %9302 = vmatprep.mubr.f32.mxu1 %v10072_v5 }
 0x2a6   : > { %9197 = vmatprep.subr.mxu0 %v9011_v25  ;;  %v5658_v28 = vadd.f32 %v5578_v27, %v5326_v61 }
 0x2a7   : > { %9198 = vmatpush1.msra.mxu0 %v9010_v24  ;;  %v5580_v29 = vpop.f32.mrf.mxu0 }
 0x2a8   : > { %v9002_v32 = vpop.permute.xlu0 %9001  ;;  %9729 = vmatmul.mubr.msk.f32.vlgmr.msra.gmra.mxu0 %vm437_vm2, %v9726_v10  ;;  %v9004_v33 = vpop.permute.xlu1 %9003  ;;  %v5659_v34 = vadd.f32 %v5580_v29, %v5327_v1 }
 0x2a9   : > { %v9012_v35 = vsel %vm9005_vm12, %v9000_v58, %v9002_v32  ;;  %v9013_v37 = vsel %vm9005_vm12, %v9002_v32, %v9004_v33  ;;  %v5649_v38 = vpop.f32.mrf.mxu1 }
 0x2aa   : > { %9268 = vmatprep.subr.mxu1 %v9013_v37  ;;  %v5660_v39 = vadd.f32 %v5649_v38, %v5328_v6 }
 0x2ab   : > { %9269 = vmatpush1.msra.mxu1 %v9012_v35  ;;  %v5651_v40 = vpop.f32.mrf.mxu1 }
 0x2ac   : > { %9730 = vmatmul.mubr.msk.f32.vlgmr.msra.gmra.mxu1 %vm437_vm2, %v9726_v10  ;;  %v5661_v5 = vadd.f32 %v5651_v40, %v5329_v49 }
 0x2ad   : > { %v11414_v41 = vpop.f32.mrf.mxu0 }
 0x2af   : > { %v11416_v42 = vpop.f32.mrf.mxu0 }
 0x2b1   : > { %v11418_v43 = vpop.f32.mrf.mxu1 }
 0x2b3   : > { %v11422_v46 = vpop.f32.mrf.mxu1 }
 0x2b5   : > { %v5910_v44 = vpop.f32.mrf.mxu0 }
 0x2b6   : > { %v11420_v45 = vadd.f32 %v5910_v44, %v5658_v28 }
 0x2b7   : > { %v5912_v30 = vpop.f32.mrf.mxu0 }
 0x2b8   : > { %v11424_v47 = vadd.f32 %v5912_v30, %v5659_v34 }
 0x2b9   : > { %v5981_v48 = vpop.f32.mrf.mxu1 }
 0x2ba   : > { %v11426_v50 = vadd.f32 %v5981_v48, %v5660_v39 }
 0x2bb   : > { %v5983_v51 = vpop.f32.mrf.mxu1 }
 0x2bc   : > { %v11428_v52 = vadd.f32 %v5983_v51, %v5661_v5 }
 0x2c0   : > { %v11430_v53 = vpop.f32.mrf.mxu0 }
 0x2c2   : > { %v11432_v54 = vpop.f32.mrf.mxu0 }
 0x2c5   : > { %v11434_v59 = vpop.f32.mrf.mxu1 }
 0x2c7   : > { %v11438_v61 = vpop.f32.mrf.mxu1 }
 0x2c9   : > { %v11436_v60 = vpop.f32.mrf.mxu0 }
 0x2cb   : > { %v11440_v62 = vpop.f32.mrf.mxu0 }
 0x2cd   : > { %v11442_v0 = vpop.f32.mrf.mxu1 }
 0x2cf   : > { %v11444_v1 = vpop.f32.mrf.mxu1 }
 0x2d1   : > { %v6435_v4 = vpop.f32.mrf.mxu0 }
 0x2d3   : > { %v11446_v63 = vpop.f32.mrf.mxu0 }
 0x2d5   : > { %v11448_v2 = vpop.f32.mrf.mxu1 }
 0x2d7   : > { %v11452_v6 = vpop.f32.mrf.mxu1 }
 0x2d9   : > { %v11450_v3 = vpop.f32.mrf.mxu0 }
 0x2db   : > { %v11454_v11 = vpop.f32.mrf.mxu0 }
 0x2dd   : > { %v11456_v12 = vpop.f32.mrf.mxu1 }
 0x2df   : > { %v11458_v49 = vpop.f32.mrf.mxu1 }
 0x2e4   : > { %v6767_v16 = vpop.f32.mrf.mxu0 }
 0x2e6   : > { %v11460_v13 = vpop.f32.mrf.mxu0 }
 0x2e9   : > { %v11462_v7 = vpop.f32.mrf.mxu1 }
 0x2eb   : > { %v11466_v14 = vpop.f32.mrf.mxu1 }
 0x2ed   : > { %v11464_v8 = vpop.f32.mrf.mxu0 }
 0x2ef   : > { %v11468_v15 = vpop.f32.mrf.mxu0 }
 0x2f1   : > { %v11470_v9 = vpop.f32.mrf.mxu1 }
 0x2f3   : > { %v11474_v56 = vpop.f32.mrf.mxu1 }
 0x2f5   : > { %v11472_v10 = vpop.f32.mrf.mxu0 }
 0x2f7   : > { %v11476_v57 = vpop.f32.mrf.mxu0 }
 0x2f9   : > { %v11478_v18 = vpop.f32.mrf.mxu1 }
 0x2fb   : > { %v11482_v20 = vpop.f32.mrf.mxu1 }
 0x2fc   : > { %v11480_v31 = vpop.f32.mrf.mxu0 }
 0x2fe   : > { %v11484_v21 = vpop.f32.mrf.mxu0 }
 0x300   : > { %v11486_v22 = vpop.f32.mrf.mxu1 }
 0x301   : > { %11778 = vst [vmem:[#allocation19_spill] sm:$0xff] %v11486_v22 }
 0x302   : > { %v11490_v36 = vpop.f32.mrf.mxu1 }
 0x303   : > { %11779 = vst [vmem:[#allocation20_spill] sm:$0xff] %v11490_v36  ;;  %v5986_v36 = vadd.f32 %v11414_v41, %v11394_v17 }
 0x307   : > { %v11488_v55 = vpop.f32.mrf.mxu0 }
 0x309   : > { %v11492_v58 = vpop.f32.mrf.mxu0 }
 0x30c   : > { %v11494_v24 = vpop.f32.mrf.mxu1 }
 0x30e   : > { %v11498_v27 = vpop.f32.mrf.mxu1 }
 0x310   : > { %v11496_v25 = vpop.f32.mrf.mxu0 }
 0x311   : > { %11780 = vst [vmem:[#allocation21_spill] sm:$0xff] %v11496_v25 }
 0x312   : > { %v11500_v28 = vpop.f32.mrf.mxu0 }
 0x313   : > { %11781 = vst [vmem:[#allocation22_spill] sm:$0xff] %v11500_v28 }
 0x314   : > { %v11502_v29 = vpop.f32.mrf.mxu1 }
 0x315   : > { %11782 = vst [vmem:[#allocation23_spill] sm:$0xff] %v11502_v29 }
 0x316   : > { %v11506_v33 = vpop.f32.mrf.mxu1 }
 0x317   : > { %11783 = vst [vmem:[#allocation24_spill] sm:$0xff] %v11506_v33 }
 0x318   : > { %v11504_v32 = vpop.f32.mrf.mxu0 }
 0x31a   : > { %v11508_v34 = vpop.f32.mrf.mxu0 }
 0x31c   : > { %v11510_v35 = vpop.f32.mrf.mxu1 }
 0x31e   : > { %v11514_v38 = vpop.f32.mrf.mxu1 }
 0x320   : > { %v11512_v37 = vpop.f32.mrf.mxu0 }
 0x321   : > { %11784 = vst [vmem:[#allocation25_spill] sm:$0xff] %v11512_v37 }
 0x322   : > { %v11516_v39 = vpop.f32.mrf.mxu0 }
 0x323   : > { %11785 = vst [vmem:[#allocation26_spill] sm:$0xff] %v11516_v39 }
 0x324   : > { %v11518_v40 = vpop.f32.mrf.mxu1 }
 0x325   : > { %11786 = vst [vmem:[#allocation27_spill] sm:$0xff] %v11518_v40 }
 0x326   : > { %v11522_v44 = vpop.f32.mrf.mxu1 }
 0x327   : > { %11787 = vst [vmem:[#allocation28_spill] sm:$0xff] %v11522_v44  ;;  %v9327_v44 = vlaneseq }
 0x32b   : > { %v11520_v5 = vpop.f32.mrf.mxu0 }
 0x32d   : > { %v11524_v30 = vpop.f32.mrf.mxu0 }
 0x330   : > { %v11526_v48 = vpop.f32.mrf.mxu1 }
 0x332   : > { %v11530_v33 = vpop.f32.mrf.mxu1 }
 0x333   : > { %11789 = vst [vmem:[#allocation30_spill] sm:$0xff] %v11530_v33 }
 0x334   : > { %v11528_v51 = vpop.f32.mrf.mxu0 }
 0x335   : > { %11788 = vst [vmem:[#allocation29_spill] sm:$0xff] %v11528_v51  ;;  %v5987_v51 = vadd.f32 %v11416_v42, %v11397_v19 }
 0x336   : > { %v11532_v29 = vpop.f32.mrf.mxu0 }
 0x337   : > { %11790 = vst [vmem:[#allocation31_spill] sm:$0xff] %v11532_v29  ;;  %v6318_v29 = vadd.f32 %v11430_v53, %v5986_v36  ;;  %v6324_v53 = vadd.f32 %v11442_v0, %v11426_v50  ;;  %v11586_v50 = vld [vmem:[%s331_s7] sm:$0xff]  ;;  %s9426_s7 = sadd.s32 %s9737_s14, %s10329_s8 }
 0x338   : > { %v11534_v37 = vpop.f32.mrf.mxu1  ;;  %s9733_s23 = sshll.u32 %s9426_s7, 7 }
 0x339   : > { %11791 = vst [vmem:[#allocation32_spill] sm:$0xff] %v11534_v37  ;;  %v5988_v37 = vadd.f32 %v11418_v43, %v11402_v26  ;;  %v6653_v17 = vadd.f32 %v6435_v4, %v6318_v29  ;;  %v6322_v26 = vadd.f32 %v11436_v60, %v11420_v45  ;;  %s9428_s26 = scalar_lea.hbm %s11814_s27, %s9733_s23 }
 0x33a   : > { %v11538_v39 = vpop.f32.mrf.mxu1 }
 0x33b   : > { %11792 = vst [vmem:[#allocation33_spill] sm:$0xff] %v11538_v39  ;;  %v5989_v39 = vadd.f32 %v11422_v46, %v11405_v23  ;;  %v6320_v41 = vadd.f32 %v11434_v59, %v5988_v37  ;;  %v6323_v23 = vadd.f32 %v11440_v62, %v11424_v47  ;;  %v6985_v46 = vadd.f32 %v6767_v16, %v6653_v17 }
 0x33c   : > { %v11536_v28 = vpop.f32.mrf.mxu0  ;;  %v6657_v45 = vadd.f32 %v11450_v3, %v6322_v26 }
 0x33d   : > { %v6655_v59 = vadd.f32 %v11448_v2, %v6320_v41  ;;  %v7317_v60 = vadd.f32 %v11472_v10, %v6985_v46  ;;  %v6658_v2 = vadd.f32 %v11454_v11, %v6323_v23 }
 0x33e   : > { %v11540_v40 = vpop.f32.mrf.mxu0  ;;  %v6989_v17 = vadd.f32 %v11464_v8, %v6657_v45 }
 0x33f   : > { %11793 = vst [vmem:[#allocation34_spill] sm:$0xff] %v11540_v40  ;;  %v6319_v40 = vadd.f32 %v11432_v54, %v5987_v51  ;;  %v6325_v54 = vadd.f32 %v11444_v1, %v11428_v52  ;;  %v6987_v3 = vadd.f32 %v11462_v7, %v6655_v59  ;;  %v7649_v16 = vadd.f32 %v11488_v55, %v7317_v60 }
 0x340   : > { %v11542_v25 = vpop.f32.mrf.mxu1  ;;  %v6990_v41 = vadd.f32 %v11468_v15, %v6658_v2  ;;  %v7321_v15 = vadd.f32 %v11480_v31, %v6989_v17  ;;  %v11808_v17 = vld [vmem:[#allocation29_spill] sm:$0xff] }
 0x341   : > { %11794 = vst [vmem:[#allocation35_spill] sm:$0xff] %v11542_v25  ;;  %v11557_v25 = vshrl.u32 %v9327_v44, 7  ;;  %v6654_v43 = vadd.f32 %v11446_v63, %v6319_v40  ;;  %v6660_v10 = vadd.f32 %v11458_v49, %v6325_v54  ;;  %v7319_v11 = vadd.f32 %v11478_v18, %v6987_v3 }
 0x342   : > { %v11555_v33 = vpop.f32.mrf.mxu1 }
 0x343   : > { %v9329_v4 = vsub.s32 0, %v11557_v25  ;;  %v6986_v47 = vadd.f32 %v11460_v13, %v6654_v43  ;;  %v9333_v62 = vsub.s32 1, %v11557_v25  ;;  %v9337_v0 = vsub.s32 2, %v11557_v25 }
 0x344   : > { %v11546_v22 = vpop.f32.mrf.mxu0  ;;  %v9341_v1 = vsub.s32 3, %v11557_v25  ;;  %v9345_v63 = vsub.s32 4, %v11557_v25  ;;  %v6659_v13 = vadd.f32 %v11456_v12, %v6324_v53  ;;  %v7651_v18 = vadd.f32 %v11494_v24, %v7319_v11 }
 0x345   : > { %11795 = vst [vmem:[#allocation36_spill] sm:$0xff] %v11546_v22  ;;  %v6321_v22 = vadd.f32 %v11438_v61, %v5989_v39  ;;  %v9330_v37 = vrot.slane %v11586_v50, %v9329_v4  ;;  %v9349_v39 = vsub.s32 5, %v11557_v25  ;;  %v9334_v12 = vrot.slane %v11586_v50, %v9333_v62  ;;  %v11800_v62 = vld [vmem:[#allocation22_spill] sm:$0xff] }
 0x346   : > { %v11562_v19 = vpop.f32.mrf.mxu0  ;;  %v11610_v49 = vrot.slane %v11586_v50, %v9337_v0  ;;  %v11613_v55 = vrot.slane %v11586_v50, %v9341_v1  ;;  %v11616_v51 = vrot.slane %v11586_v50, %v9345_v63  ;;  %v9353_v43 = vsub.s32 6, %v11557_v25 }
 0x347   : > { %v6656_v36 = vadd.f32 %v11452_v6, %v6321_v22  ;;  %v7318_v6 = vadd.f32 %v11476_v57, %v6986_v47  ;;  %v7981_v57 = vadd.f32 %v11504_v32, %v7649_v16  ;;  %v11625_v23 = vrot.slane %v11586_v50, %v9349_v39  ;;  %v11804_v16 = vld [vmem:[#allocation24_spill] sm:$0xff]  ;;  %v11806_v39 = vld [vmem:[#allocation26_spill] sm:$0xff] }
 0x348   : > { %v11564_v42 = vpop.f32.mrf.mxu1  ;;  %v6992_v8 = vadd.f32 %v11474_v56, %v6660_v10  ;;  %v7322_v53 = vadd.f32 %v11484_v21, %v6990_v41  ;;  %v11801_v21 = vld [vmem:[#allocation30_spill] sm:$0xff]  ;;  %v11802_v63 = vld [vmem:[#allocation35_spill] sm:$0xff] }
 0x349   : > { %v6988_v40 = vadd.f32 %v11466_v14, %v6656_v36  ;;  %v7650_v7 = vadd.f32 %v11492_v58, %v7318_v6  ;;  %v8313_v32 = vadd.f32 %v11520_v5, %v7981_v57  ;;  %v6991_v5 = vadd.f32 %v11470_v9, %v6659_v13  ;;  %v11796_v36 = vld [vmem:[#allocation34_spill] sm:$0xff]  ;;  %v11799_v9 = vld [vmem:[#allocation21_spill] sm:$0xff] }
 0x34a   : > { %v11588_v52 = vpop.f32.mrf.mxu1  ;;  %v7653_v56 = vadd.f32 %v11799_v9, %v7321_v15  ;;  %v7654_v31 = vadd.f32 %v11800_v62, %v7322_v53  ;;  %v11805_v13 = vld [vmem:[#allocation25_spill] sm:$0xff] }
 0x34b   : > { %v7320_v14 = vadd.f32 %v11482_v20, %v6988_v40  ;;  %v7982_v58 = vadd.f32 %v11508_v34, %v7650_v7  ;;  %v7983_v20 = vadd.f32 %v11510_v35, %v7651_v18  ;;  %v8645_v34 = vadd.f32 %v11536_v28, %v8313_v32  ;;  %v11798_v28 = vld [vmem:[#allocation20_spill] sm:$0xff]  ;;  %v11807_v32 = vld [vmem:[#allocation27_spill] sm:$0xff]  ;;  %v11813_v9 = vld [vmem:[#allocation33_spill] sm:$0xff] }
 0x34c   : > { %v7324_v60 = vadd.f32 %v11798_v28, %v6992_v8  ;;  %v7985_v10 = vadd.f32 %v11805_v13, %v7653_v56  ;;  %v7986_v40 = vadd.f32 %v11806_v39, %v7654_v31 }
 0x34d   : > { %v7652_v46 = vadd.f32 %v11498_v27, %v7320_v14  ;;  %v8314_v24 = vadd.f32 %v11524_v30, %v7982_v58  ;;  %v8315_v27 = vadd.f32 %v11526_v48, %v7983_v20  ;;  %v11797_v30 = vld [vmem:[#allocation19_spill] sm:$0xff] }
 0x34e   : > { %v7323_v47 = vadd.f32 %v11797_v30, %v6991_v5  ;;  %v11803_v48 = vld [vmem:[#allocation23_spill] sm:$0xff]  ;;  %v8317_v41 = vadd.f32 %v11808_v17, %v7985_v10  ;;  %v11810_v5 = vld [vmem:[#allocation28_spill] sm:$0xff] }
 0x34f   : > { %v8759_v61 = vpop.f32.mrf.mxu0  ;;  %v7984_v4 = vadd.f32 %v11514_v38, %v7652_v46  ;;  %v8646_v35 = vadd.f32 %v11796_v36, %v8314_v24  ;;  %v8647_v2 = vadd.f32 %v11802_v63, %v8315_v27  ;;  %v11809_v46 = vld [vmem:[#allocation31_spill] sm:$0xff] }
 0x350   : > { %v8977_v45 = vadd.f32 %v8759_v61, %v8645_v34  ;;  %v7655_v6 = vadd.f32 %v11803_v48, %v7323_v47  ;;  %v7656_v61 = vadd.f32 %v11804_v16, %v7324_v60  ;;  %v8318_v20 = vadd.f32 %v11809_v46, %v7986_v40 }
 0x351   : > { %v8761_v22 = vpop.f32.mrf.mxu0  ;;  %v8316_v1 = vadd.f32 %v11801_v21, %v7984_v4  ;;  %v9357_v34 = vsub.s32 7, %v11557_v25 }
 0x352   : > { %v8978_v38 = vadd.f32 %v8761_v22, %v8646_v35  ;;  %v7987_v22 = vadd.f32 %v11807_v32, %v7655_v6  ;;  %v7988_v8 = vadd.f32 %v11810_v5, %v7656_v61  ;;  %v8650_v36 = vadd.f32 %v11562_v19, %v8318_v20 }
 0x353   : > { %v8648_v57 = vadd.f32 %v11555_v33, %v8316_v1 }
 0x354   : > { %v8830_v29 = vpop.f32.mrf.mxu1 }
 0x355   : > { %v8979_v14 = vadd.f32 %v8830_v29, %v8647_v2  ;;  %v11811_v29 = vld [vmem:[#allocation32_spill] sm:$0xff] }
 0x356   : > { %v8832_v26 = vpop.f32.mrf.mxu1  ;;  %v8319_v4 = vadd.f32 %v11811_v29, %v7987_v22 }
 0x357   : > { %v8980_v15 = vadd.f32 %v8832_v26, %v8648_v57  ;;  %v8320_v26 = vadd.f32 %v11813_v9, %v7988_v8 }
 0x358   : > { %v11606_v44 = vpop.f32.mrf.mxu0 }
 0x359   : > { %v8652_v63 = vadd.f32 %v11588_v52, %v8320_v26 }
 0x35a   : > { %v8903_v54 = vpop.f32.mrf.mxu0 }
 0x35b   : > { %v8982_v62 = vadd.f32 %v8903_v54, %v8650_v36 }
 0x35c   : > { %v8972_v59 = vpop.f32.mrf.mxu1 }
 0x35e   : > { %v8974_v11 = vpop.f32.mrf.mxu1 }
 0x35f   : > { %v8984_v52 = vadd.f32 %v8974_v11, %v8652_v63 }
 0x360   : > { %v9091_v0 = vpop.f32.mrf.mxu0 }
 0x361   : > { %v9309_v3 = vadd.f32 %v9091_v0, %v8977_v45 }
 0x362   : > { %v9093_v7 = vpop.f32.mrf.mxu0 }
 0x363   : > { %9317 = vst [vmem:[%s10346_s13] sm:$0xff] %v9309_v3  ;;  %v9367_v18 = vmul.f32 %v9330_v37, %v9309_v3  ;;  %v9310_v58 = vadd.f32 %v9093_v7, %v8978_v38  ;;  %v11812_v37 = vld [vmem:[#allocation36_spill] sm:$0xff] }
 0x364   : > { %v9162_v24 = vpop.f32.mrf.mxu1  ;;  %v8649_v27 = vadd.f32 %v11812_v37, %v8317_v41 }
 0x365   : > { %9318 = vst [vmem:[%s10346_s13 + $0x8] sm:$0xff] %v9310_v58  ;;  %v9368_v53 = vmul.f32 %v9334_v12, %v9310_v58  ;;  %v9311_v33 = vadd.f32 %v9162_v24, %v8979_v14  ;;  %v9389_v35 = vmul.f32 %v9367_v18, %v9309_v3  ;;  %v8651_v12 = vadd.f32 %v11564_v42, %v8319_v4 }
 0x366   : > { %v9164_v45 = vpop.f32.mrf.mxu1  ;;  %v8981_v56 = vadd.f32 %v11606_v44, %v8649_v27  ;;  %v9354_v42 = vrot.slane %v11586_v50, %v9353_v43 }
 0x367   : > { %v9376_v30 = vadd.f32 %v9368_v53, %v9367_v18  ;;  %v9390_v47 = vmul.f32 %v9368_v53, %v9310_v58  ;;  %9319 = vst [vmem:[%s10346_s13 + $0x10] sm:$0xff] %v9311_v33  ;;  %v9369_v28 = vmul.f32 %v11610_v49, %v9311_v33  ;;  %v9312_v60 = vadd.f32 %v9164_v45, %v8980_v15 }
 0x368   : > { %v9233_v31 = vpop.f32.mrf.mxu0  ;;  %v8983_v49 = vadd.f32 %v8972_v59, %v8651_v12 }
 0x369   : > { %v9397_v0 = vadd.f32 %v9390_v47, %v9389_v35  ;;  %v9377_v19 = vadd.f32 %v9376_v30, %v9369_v28  ;;  %v9391_v21 = vmul.f32 %v9369_v28, %v9311_v33  ;;  %9320 = vst [vmem:[%s10346_s13 + $0x18] sm:$0xff] %v9312_v60  ;;  %v9370_v1 = vmul.f32 %v11613_v55, %v9312_v60 }
 0x36a   : > { %v9313_v2 = vadd.f32 %v9233_v31, %v8981_v56  ;;  %v9235_v38 = vpop.f32.mrf.mxu0  ;;  %v9358_v55 = vrot.slane %v11586_v50, %v9357_v34 }
 0x36b   : > { %v9398_v44 = vadd.f32 %v9397_v0, %v9391_v21  ;;  %v9378_v54 = vadd.f32 %v9377_v19, %v9370_v1  ;;  %v9392_v3 = vmul.f32 %v9370_v1, %v9312_v60  ;;  %v9314_v48 = vadd.f32 %v9235_v38, %v8982_v62 }
 0x36c   : > { %9321 = vst [vmem:[%s10346_s13 + $0x20] sm:$0xff] %v9313_v2  ;;  %v9371_v6 = vmul.f32 %v11616_v51, %v9313_v2  ;;  %v9304_v16 = vpop.f32.mrf.mxu1 }
 0x36d   : > { %v9399_v59 = vadd.f32 %v9398_v44, %v9392_v3  ;;  %9322 = vst [vmem:[%s10346_s13 + $0x28] sm:$0xff] %v9314_v48  ;;  %v9372_v61 = vmul.f32 %v11625_v23, %v9314_v48  ;;  %v9315_v25 = vadd.f32 %v9304_v16, %v8983_v49 }
 0x36e   : > { %v9379_v13 = vadd.f32 %v9378_v54, %v9371_v6  ;;  %v9393_v43 = vmul.f32 %v9371_v6, %v9313_v2  ;;  %v9306_v10 = vpop.f32.mrf.mxu1 }
 0x36f   : > { %v9394_v39 = vmul.f32 %v9372_v61, %v9314_v48  ;;  %9323 = vst [vmem:[%s10346_s13 + $0x30] sm:$0xff] %v9315_v25  ;;  %v9373_v40 = vmul.f32 %v9354_v42, %v9315_v25  ;;  %v9316_v7 = vadd.f32 %v9306_v10, %v8984_v52 }
 0x370   : > { %v9400_v51 = vadd.f32 %v9399_v59, %v9393_v43  ;;  %v9380_v57 = vadd.f32 %v9379_v13, %v9372_v61 }
 0x371   : > { %v9395_v50 = vmul.f32 %v9373_v40, %v9315_v25  ;;  %9324 = vst [vmem:[%s10346_s13 + $0x38] sm:$0xff] %v9316_v7  ;;  %v9374_v11 = vmul.f32 %v9358_v55, %v9316_v7 }
 0x372   : > { %v9401_v14 = vadd.f32 %v9400_v51, %v9394_v39  ;;  %v9381_v18 = vadd.f32 %v9380_v57, %v9373_v40 }
 0x373   : > { %v9396_v23 = vmul.f32 %v9374_v11, %v9316_v7 }
 0x374   : > { %v9382_v58 = vadd.f32 %v9381_v18, %v9374_v11  ;;  %v9402_v32 = vadd.f32 %v9401_v14, %v9395_v50 }
 0x376   : > { %9383 = vadd.xlane.f32.xlu0 %v9382_v58  ;;  %v9403_v22 = vadd.f32 %v9402_v32, %v9396_v23 }
 0x378   : > { %9404 = vadd.xlane.f32.xlu1 %v9403_v22 }
 0x379   : > { %9955 = shalt.err (!%p9952_p13)
}
 0x37a   : > { %s9956_s25 = scalar_lea.hbm %s9428_s26, 1024  ;;  %s9960_s13 = scalar_lea.hbm %s11815_s9, 12288 }
 0x37b   : > { %p9957_p4 = scmp.ne.s32.totalorder %s9428_s26, %s9956_s25  ;;  %p9961_p7 = scmp.lt.s32.totalorder %s9428_s26, %s11815_s9 }
 0x37c   : > { %p9962_p2 = scmp.lt.s32.totalorder %s9960_s13, %s9956_s25 }
 0x37d   : > { %p9958_p8 = pnand %p9957_p4, %p10233_p11 }
 0x37e   : > { %p9963_p1 = por %p9962_p2, %p9961_p7 }
 0x37f   : > { %p9959_p9 = pneg %p9958_p8 }
 0x381   : > { %p9964_p10 = pnand %p9963_p1, %p9959_p9 }
 0x383   : > { %9967 = shalt.err (!%p9964_p10)
}
 0x384   : > { %9742 = dma.vmem_to_hbm [thread:$0]  (%p10233_p11), %s9431_s10, 1024, %s9428_s26, %s9410_s4   ;;  %v9375_v17 = vld [vmem:[%s10344_s16] sm:$0xff]  ;;  %vm9386_vm2 = vcmask 7168   ;;  %vm9407_vm13 = vcmask 15368  }
 0x3ff   : > { %v9384_v41 = vpop.xlane.xlu0 %9383 }
 0x400   : > { %v9385_v46 = vadd.f32 %v9384_v41, %v9375_v17 }
 0x401   : > { %v9405_v20 = vpop.xlane.xlu1 %9404 }
 0x402   : > { %9387 = vst.msk [vmem:[%s10344_s16] sm:$0xff] %vm9386_vm2, %v9385_v46 }
 0x409   : > { %v9388_v24 = vld [vmem:[%s10344_s16] sm:$0xff] }
 0x40a   : > { %v9406_v34 = vadd.f32 %v9405_v20, %v9388_v24 }
 0x40c   : > { %9408 = vst.msk [vmem:[%s10344_s16] sm:$0xff] %vm9407_vm13, %v9406_v34 }
 0x40d PF: > { %s11816_s23 = sld [smem:[#allocation18_spill]]  ;;  %p9756_p5 = scmp.ge.s32.totalorder %s10066_s28, 2 }
 0x40e   : > { %s9445_s2 = sand.u32 1, %s10038_s21  }
 0x40f   : > { %s9446_s10 = scalar_lea.sflag [#allocation5], %s9445_s2 }
 0x413   : > { %p11817_p12 = scmp.ne.s32.totalorder %s11816_s23, 0 }
 0x415   : > { %p9752_p3 = pnand %p9756_p5, %p11817_p12 }
 0x417   : > { %p9753_p6 = pneg %p9752_p3 }
 0x419   : > { %10021 = dma.done.wait (%p9753_p6), %s9446_s10, 1024  }
 0x41a   : > { %10023 = vsyncadd (%p9753_p6), %s9446_s10, 4294966272  ;;  %s25_s28 = sadd.s32 1, %s10066_s28   ;;  %s11818_s16 = sld [smem:[#allocation12_spill]] }
 0x41b   : > { %p22_p11 = scmp.ge.s32.totalorder %s25_s28, 14   ;;  %s11819_s23 = sld [smem:[#allocation17_spill]] }
 0x41c   : > { %s11820_s24 = sld [smem:[#allocation13_spill]]  ;;  %s11824_s18 = smov %s10030_s19 }
 0x41d   : > { %s11821_s25 = sld [smem:[#allocation14_spill]]  ;;  %s11825_s19 = smov %s10034_s20 }
 0x41e   : > { %s11822_s26 = sld [smem:[#allocation15_spill]]  ;;  %s11826_s20 = smov %s10280_s29 }
 0x41f   : > { %s11823_s27 = sld [smem:[#allocation16_spill]]  ;;  %s11827_s21 = smov %s10042_s22 }
 0x420   : > { %s11828_s22 = smov %s11818_s16  ;;  %24 = sbr.rel (!%p22_p11) target bundleno = 14 (0xe), region = 139 }
 0x425   :  { %9458 = vsyncpa [#allocation4], 1 }
 0x426   :  { %9460 = vsyncpa [#allocation4 + $0x1], 1 }
 0x427   :  { %9461 = vsyncpa [#allocation7], 1 }
 0x428   :  { %9463 = vsyncpa [#allocation7 + $0x1], 1 }
 0x429   :  { %9464 = vsyncpa [#allocation5], 1 }
 0x42a   :  { %9466 = vsyncpa [#allocation5 + $0x1], 1 }

</bundles_post_ra>
